<compile_context>
chip_gen: v6e
topology: v6e:2x2x1
jax: 0.10.0
libtpu: 0.0.40
codegen_flags: <defaults>
</compile_context>

<pallas_src>
import functools

import jax
import jax.numpy as jnp
import numpy as np
from jax.experimental import pallas as pl
from jax.experimental.pallas import tpu as pltpu

EPS = 1e-5
LANE = 128                  # output channels zero-padded to this lane width
SUBLANE = 8
MXU_DTYPE = jnp.bfloat16    # MXU operand dtype (accumulation stays f32)
M_CHUNK = 128               # rows per MXU call (keeps operands in the vreg file)


def _round_up(x, m):
    return (x + m - 1) // m * m


# ------------------------------ Pallas kernel --------------------------------

def _make_block_kernel(h, w, wp, cop, has_proj):
    """Fused ResidualBlock forward for one batch element per grid step.

    Spatial positions live on a flat padded-width grid of hwp = h * wp rows
    (wp = round_up(w, 8)); columns w..wp-1 are don't-care and sliced off by the
    wrapper.  y1 is staged in a VMEM slab of shape ((h+2)*wp, 3*cop) whose three
    lane blocks hold the dw = 0/1/2 shifted copies of the zero-padded y1, so
    conv2 only needs three aligned dh-slab reads + K = 3*cop matmuls.
    """
    hwp = h * wp

    def body(xcol_ref, w1c_ref, sb1_ref, w2k_ref, sb2_ref, short_ref, sb3_ref,
             o_ref, y1e_ref):
        f32 = jnp.float32

        # ---- conv1 + BN1 + ReLU: one lane-dense matmul (K = 9*Cin -> 128) ---
        sb1 = sb1_ref[...]                                  # (2, cop) f32
        y1 = jnp.dot(xcol_ref[...], w1c_ref[...],
                     preferred_element_type=f32)            # (hwp, cop) f32
        y1 = y1 * sb1[0:1, :] + sb1[1:2, :]
        y1b = jnp.maximum(y1, 0.0).astype(y1e_ref.dtype)    # (hwp, cop) bf16

        # ---- stage y1 into the dw-expanded, row-padded VMEM slab ------------
        zero_rows = jnp.zeros((wp, 3 * cop), y1e_ref.dtype)
        y1e_ref[pl.ds(0, wp), :] = zero_rows                # top halo rows
        y1e_ref[pl.ds((h + 1) * wp, wp), :] = zero_rows     # bottom halo rows
        # dw = 1 (center) block: fully aligned store.
        y1e_ref[pl.ds(wp, hwp), pl.ds(cop, cop)] = y1b

        col = jax.lax.broadcasted_iota(jnp.int32, (hwp, 1), 0) % wp
        # dw = 0 block: value at column w-1  ==  center block shifted by -1 row
        v0 = y1e_ref[pl.ds(wp - 1, hwp), pl.ds(cop, cop)]
        v0 = jnp.where(col == 0, jnp.zeros_like(v0), v0)
        y1e_ref[pl.ds(wp, hwp), pl.ds(0, cop)] = v0
        # dw = 2 block: value at column w+1  ==  center block shifted by +1 row
        v2 = y1e_ref[pl.ds(wp + 1, hwp), pl.ds(cop, cop)]
        v2 = jnp.where(col == (w - 1), jnp.zeros_like(v2), v2)
        y1e_ref[pl.ds(wp, hwp), pl.ds(2 * cop, cop)] = v2

        # ---- conv2 + BN2 + shortcut + residual + ReLU, chunked over rows ----
        sb2 = sb2_ref[...]
        for m0 in range(0, hwp, M_CHUNK):
            rows = min(M_CHUNK, hwp - m0)
            acc = None
            for dh in range(3):
                slab = y1e_ref[pl.ds(dh * wp + m0, rows), :]   # aligned (rows, 3*cop)
                part = jnp.dot(slab, w2k_ref[dh, :, :],
                               preferred_element_type=f32)
                acc = part if acc is None else acc + part
            acc = acc * sb2[0:1, :] + sb2[1:2, :]
            if has_proj:
                sb3 = sb3_ref[...]
                res = jnp.dot(xcol_ref[pl.ds(m0, rows), :], short_ref[...],
                              preferred_element_type=f32)
                res = res * sb3[0:1, :] + sb3[1:2, :]
            else:
                res = short_ref[pl.ds(m0, rows), :].astype(f32)
            o_ref[pl.ds(m0, rows), :] = jnp.maximum(acc + res, 0.0)

    if has_proj:
        def kernel(xcol_ref, w1c_ref, sb1_ref, w2k_ref, sb2_ref, w3c_ref,
                   sb3_ref, o_ref, y1e_ref):
            body(xcol_ref, w1c_ref, sb1_ref, w2k_ref, sb2_ref, w3c_ref,
                 sb3_ref, o_ref, y1e_ref)
    else:
        def kernel(xcol_ref, w1c_ref, sb1_ref, w2k_ref, sb2_ref, xres_ref,
                   o_ref, y1e_ref):
            body(xcol_ref, w1c_ref, sb1_ref, w2k_ref, sb2_ref, xres_ref,
                 None, o_ref, y1e_ref)
    return kernel


# -------------------------- parameter preparation ----------------------------

def bn_fold(gamma, beta, mean, var):
    scale = gamma / jnp.sqrt(var + EPS)
    bias = beta - mean * scale
    return scale.astype(jnp.float32), bias.astype(jnp.float32)


def _pad_sb(scale, bias, cop):
    cout = scale.shape[0]
    return jnp.stack([jnp.pad(scale, (0, cop - cout)),
                      jnp.pad(bias, (0, cop - cout))]).astype(jnp.float32)


def prep_conv_im2col(w_oihw, gamma, beta, mean, var, k1, cop):
    """torch (Cout,Cin,3,3) -> (k1, cop) bf16 im2col weights + (2, cop) f32 BN."""
    scale, bias = bn_fold(gamma, beta, mean, var)
    cout, cin, kh, kw = w_oihw.shape
    wm = jnp.transpose(w_oihw, (2, 3, 1, 0)).reshape(kh * kw * cin, cout)
    wm = jnp.pad(wm, ((0, k1 - kh * kw * cin), (0, cop - cout))).astype(MXU_DTYPE)
    return wm, _pad_sb(scale, bias, cop)


def prep_conv_dh(w_oihw, gamma, beta, mean, var, cip, cop):
    """torch (Cout,Cin,3,3) -> (3, 3*cip, cop) bf16: per-dh weights with the
    three dw taps concatenated along K (matches the dw-expanded y1 slab)."""
    scale, bias = bn_fold(gamma, beta, mean, var)
    cout, cin, kh, kw = w_oihw.shape
    wt = jnp.transpose(w_oihw, (2, 3, 1, 0))                    # (3,3,cin,cout)
    wt = jnp.pad(wt, ((0, 0), (0, 0), (0, cip - cin), (0, cop - cout)))
    wk = wt.reshape(kh, kw * cip, cop).astype(MXU_DTYPE)
    return wk, _pad_sb(scale, bias, cop)


def init_params(key, inchannel, outchannel):
    ks = jax.random.split(key, 16)

    def conv_w(k, co, ci):
        fan_in = ci * 9
        bound = 1.0 / np.sqrt(fan_in)
        return jax.random.uniform(k, (co, ci, 3, 3), jnp.float32, -bound, bound)

    def bn_params(k):
        k1, k2, k3, k4 = jax.random.split(k, 4)
        gamma = jax.random.uniform(k1, (outchannel,), jnp.float32, 0.5, 1.5)
        beta = 0.1 * jax.random.normal(k2, (outchannel,), jnp.float32)
        mean = 0.1 * jax.random.normal(k3, (outchannel,), jnp.float32)
        var = jax.random.uniform(k4, (outchannel,), jnp.float32, 0.5, 1.5)
        return gamma, beta, mean, var

    params = {
        "w1": conv_w(ks[0], outchannel, inchannel),
        "bn1": bn_params(ks[1]),
        "w2": conv_w(ks[2], outchannel, outchannel),
        "bn2": bn_params(ks[3]),
    }
    if inchannel != outchannel:
        params["w3"] = conv_w(ks[4], outchannel, inchannel)
        params["bn3"] = bn_params(ks[5])
    return params


# ------------------------------ forward pass ---------------------------------

def residual_block_forward(x_nchw, params, inchannel, outchannel):
    """Pallas implementation of ResidualBlock.forward (stride=1, eval-mode BN)."""
    n, c, h, w = x_nchw.shape
    assert c == inchannel
    wp = _round_up(w, SUBLANE)              # padded width (flat-grid row stride)
    hwp = h * wp
    cop = _round_up(outchannel, LANE)       # lane-dense output channels
    k1 = _round_up(9 * inchannel, LANE)     # im2col K for the small-Cin convs
    has_proj = inchannel != outchannel

    x_nhwc = jnp.transpose(x_nchw, (0, 2, 3, 1)).astype(jnp.float32)

    # Wrapper-side im2col for conv1 / projection shortcut (Cin is small, so the
    # HBM blow-up is negligible and both convs become one K=k1 matmul).
    xpad = jnp.pad(x_nhwc, ((0, 0), (1, 1), (1, 1), (0, 0)))
    taps = [xpad[:, dh:dh + h, dw:dw + w, :] for dh in range(3) for dw in range(3)]
    patches = jnp.concatenate(taps, axis=-1)                    # (n, h, w, 9c)
    patches = jnp.pad(patches, ((0, 0), (0, 0), (0, wp - w), (0, k1 - 9 * c)))
    xcol = patches.reshape(n, hwp, k1).astype(MXU_DTYPE)

    w1c, sb1 = prep_conv_im2col(params["w1"], *params["bn1"], k1, cop)
    w2k, sb2 = prep_conv_dh(params["w2"], *params["bn2"], cop, cop)

    in_specs = [
        pl.BlockSpec((None, hwp, k1), lambda b: (b, 0, 0)),       # xcol (stream)
        pl.BlockSpec((k1, cop), lambda b: (0, 0)),                # w1c (resident)
        pl.BlockSpec((2, cop), lambda b: (0, 0)),                 # sb1
        pl.BlockSpec((3, 3 * cop, cop), lambda b: (0, 0, 0)),     # w2k (resident)
        pl.BlockSpec((2, cop), lambda b: (0, 0)),                 # sb2
    ]
    args = [xcol, w1c, sb1, w2k, sb2]
    if has_proj:
        w3c, sb3 = prep_conv_im2col(params["w3"], *params["bn3"], k1, cop)
        in_specs += [pl.BlockSpec((k1, cop), lambda b: (0, 0)),
                     pl.BlockSpec((2, cop), lambda b: (0, 0))]
        args += [w3c, sb3]
    else:
        # Identity shortcut streamed in bf16 on the padded-width grid.
        # TODO(synk): read x at native channel count and pad lanes in-kernel to
        # shave the remaining cop/outchannel blow-up of this (small) stream.
        xres = jnp.pad(x_nhwc, ((0, 0), (0, 0), (0, wp - w), (0, cop - c)))
        xres = xres.reshape(n, hwp, cop).astype(MXU_DTYPE)
        in_specs.append(pl.BlockSpec((None, hwp, cop), lambda b: (b, 0, 0)))
        args.append(xres)

    # Tight VMEM budget: 2x (double-buffered) blocks + scratch + headroom,
    # capped at 32 MiB so the same launch fits v7x's 64 MiB VMEM per core.
    blk_bytes = (hwp * k1 * 2 + k1 * cop * 2 + 2 * cop * 4
                 + 3 * 3 * cop * cop * 2 + 2 * cop * 4 + hwp * cop * 4)
    blk_bytes += (k1 * cop * 2 + 2 * cop * 4) if has_proj else hwp * cop * 2
    scratch_bytes = (h + 2) * wp * 3 * cop * 2
    vmem_limit = int(min(32 << 20, max(8 << 20,
                                       2 * blk_bytes + scratch_bytes + (2 << 20))))

    kernel = _make_block_kernel(h, w, wp, cop, has_proj)
    out = pl.pallas_call(
        kernel,
        out_shape=jax.ShapeDtypeStruct((n, hwp, cop), jnp.float32),
        grid_spec=pltpu.PrefetchScalarGridSpec(
            num_scalar_prefetch=0,
            grid=(n,),
            in_specs=in_specs,
            out_specs=pl.BlockSpec((None, hwp, cop), lambda b: (b, 0, 0)),
            scratch_shapes=[pltpu.VMEM(((h + 2) * wp, 3 * cop), MXU_DTYPE)],
        ),
        compiler_params=pltpu.CompilerParams(
            dimension_semantics=("parallel",),
            vmem_limit_bytes=vmem_limit,
        ),
    )(*args)

    out = out.reshape(n, h, wp, cop)[:, :, :w, :outchannel]      # drop pads
    return jnp.transpose(out, (0, 3, 1, 2))                       # back to NCHW


# -------------------------- pure-JAX reference check -------------------------

def _conv3x3_ref(x_nchw, wgt):
    return jax.lax.conv_general_dilated(
        x_nchw, wgt, window_strides=(1, 1), padding=((1, 1), (1, 1)),
        dimension_numbers=("NCHW", "OIHW", "NCHW"),
        precision=jax.lax.Precision.HIGHEST)


def _bn_ref(x_nchw, gamma, beta, mean, var):
    g = gamma.reshape(1, -1, 1, 1)
    b = beta.reshape(1, -1, 1, 1)
    m = mean.reshape(1, -1, 1, 1)
    v = var.reshape(1, -1, 1, 1)
    return (x_nchw - m) / jnp.sqrt(v + EPS) * g + b


def residual_block_ref(x_nchw, params, inchannel, outchannel):
    left = _bn_ref(_conv3x3_ref(x_nchw, params["w1"]), *params["bn1"])
    left = jnp.maximum(left, 0.0)
    left = _bn_ref(_conv3x3_ref(left, params["w2"]), *params["bn2"])
    if inchannel != outchannel:
        right = _bn_ref(_conv3x3_ref(x_nchw, params["w3"]), *params["bn3"])
    else:
        right = x_nchw
    return jnp.maximum(left + right, 0.0)


# ---------------------------------- main --------------------------------------

def _run_case(key, n, cin, cout, hh, ww):
    k_x, k_p = jax.random.split(key)
    x = jax.random.normal(k_x, (n, cin, hh, ww), jnp.float32)
    params = init_params(k_p, cin, cout)
    fwd = jax.jit(functools.partial(residual_block_forward,
                                    inchannel=cin, outchannel=cout))
    out = jax.block_until_ready(fwd(x, params))
    ref = jax.block_until_ready(residual_block_ref(x, params, cin, cout))
    assert out.shape == (n, cout, hh, ww)
    # bf16 MXU operands / bf16 y1 staging (f32 accumulation) -> loose tolerance.
    np.testing.assert_allclose(np.asarray(out), np.asarray(ref),
                               rtol=2e-2, atol=2e-2)


if __name__ == "__main__":
    key = jax.random.PRNGKey(0)
    k_a, k_b = jax.random.split(key)

    # Projection-shortcut path (inchannel != outchannel).
    _run_case(k_a, n=2, cin=4, cout=8, hh=16, ww=16)
    # Identity-shortcut path + width that is not a multiple of 8.
    _run_case(k_b, n=2, cin=8, cout=8, hh=12, ww=12)

    print("KERNEL_OK")
</pallas_src>

<mosaic_0001>
module attributes {stable_mosaic.version = 11 : i64} {
  func.func @kernel(%arg0: i32, %arg1: memref<1x256x128xbf16, #tpu.memory_space<vmem>>, %arg2: memref<128x128xbf16, #tpu.memory_space<vmem>>, %arg3: memref<2x128xf32, #tpu.memory_space<vmem>>, %arg4: memref<3x384x128xbf16, #tpu.memory_space<vmem>>, %arg5: memref<2x128xf32, #tpu.memory_space<vmem>>, %arg6: memref<128x128xbf16, #tpu.memory_space<vmem>>, %arg7: memref<2x128xf32, #tpu.memory_space<vmem>>, %arg8: memref<1x256x128xf32, #tpu.memory_space<vmem>>, %arg9: memref<288x384xbf16, #tpu.memory_space<vmem>>) attributes {dimension_semantics = [#tpu.dimension_semantics<parallel>], iteration_bounds = array<i64: 2>, scalar_prefetch = 0 : i64, scratch_operands = 1 : i64, tpu.core_type = #tpu.core_type<tc>, window_params = [{transform_indices = @transform_0, window_bounds = array<i64: 1, 256, 128>}, {pipeline_mode = #tpu.pipeline_mode<synchronous>, transform_indices = @transform_1, window_bounds = array<i64: 128, 128>}, {pipeline_mode = #tpu.pipeline_mode<synchronous>, transform_indices = @transform_2, window_bounds = array<i64: 2, 128>}, {pipeline_mode = #tpu.pipeline_mode<synchronous>, transform_indices = @transform_3, window_bounds = array<i64: 3, 384, 128>}, {pipeline_mode = #tpu.pipeline_mode<synchronous>, transform_indices = @transform_4, window_bounds = array<i64: 2, 128>}, {pipeline_mode = #tpu.pipeline_mode<synchronous>, transform_indices = @transform_5, window_bounds = array<i64: 128, 128>}, {pipeline_mode = #tpu.pipeline_mode<synchronous>, transform_indices = @transform_6, window_bounds = array<i64: 2, 128>}, {transform_indices = @transform_7, window_bounds = array<i64: 1, 256, 128>}]} {
    %c0 = arith.constant 0 : index
    %c0_0 = arith.constant 0 : index
    %0 = vector.load %arg3[%c0, %c0_0] : memref<2x128xf32, #tpu.memory_space<vmem>>, vector<2x128xf32>
    %c0_1 = arith.constant 0 : index
    %c0_2 = arith.constant 0 : index
    %c0_3 = arith.constant 0 : index
    %1 = vector.load %arg1[%c0_1, %c0_2, %c0_3] : memref<1x256x128xbf16, #tpu.memory_space<vmem>>, vector<1x256x128xbf16>
    %2 = vector.shape_cast %1 : vector<1x256x128xbf16> to vector<256x128xbf16>
    %c0_4 = arith.constant 0 : index
    %c0_5 = arith.constant 0 : index
    %3 = vector.load %arg2[%c0_4, %c0_5] : memref<128x128xbf16, #tpu.memory_space<vmem>>, vector<128x128xbf16>
    %cst = arith.constant dense<0.000000e+00> : vector<256x128xf32>
    %4 = tpu.matmul %2, %3, %cst {dimension_numbers = #tpu.dot_dimension_numbers<[1], [0], [0], [1], [0, 0, 1, 1], [], []>} : vector<256x128xbf16>, vector<128x128xbf16>, vector<256x128xf32> -> vector<256x128xf32>
    %5 = vector.extract_strided_slice %0 {offsets = [0, 0], sizes = [1, 128], strides = [1, 1]} : vector<2x128xf32> to vector<1x128xf32>
    %6 = vector.broadcast %5 : vector<1x128xf32> to vector<256x128xf32>
    %7 = arith.mulf %4, %6 : vector<256x128xf32>
    %8 = vector.extract_strided_slice %0 {offsets = [1, 0], sizes = [1, 128], strides = [1, 1]} : vector<2x128xf32> to vector<1x128xf32>
    %9 = vector.broadcast %8 : vector<1x128xf32> to vector<256x128xf32>
    %10 = arith.addf %7, %9 : vector<256x128xf32>
    %cst_6 = arith.constant 0.000000e+00 : f32
    %11 = vector.broadcast %cst_6 : f32 to vector<256x128xf32>
    %12 = arith.maximumf %10, %11 : vector<256x128xf32>
    %13 = arith.truncf %12 : vector<256x128xf32> to vector<256x128xbf16>
    %cst_7 = arith.constant 0.000000e+00 : bf16
    %14 = vector.broadcast %cst_7 : bf16 to vector<16x384xbf16>
    %c0_8 = arith.constant 0 : index
    %c0_9 = arith.constant 0 : index
    %15 = vector.load %arg9[%c0_8, %c0_9] : memref<288x384xbf16, #tpu.memory_space<vmem>>, vector<16x384xbf16>
    tpu.vector_store %arg9[%c0_8, %c0_9], %14 {strides = array<i32>} : memref<288x384xbf16, #tpu.memory_space<vmem>>, vector<16x384xbf16>,
    %c272 = arith.constant 272 : index
    %c0_10 = arith.constant 0 : index
    %16 = vector.load %arg9[%c272, %c0_10] : memref<288x384xbf16, #tpu.memory_space<vmem>>, vector<16x384xbf16>
    tpu.vector_store %arg9[%c272, %c0_10], %14 {strides = array<i32>} : memref<288x384xbf16, #tpu.memory_space<vmem>>, vector<16x384xbf16>,
    %c16 = arith.constant 16 : index
    %c128 = arith.constant 128 : index
    %17 = vector.load %arg9[%c16, %c128] : memref<288x384xbf16, #tpu.memory_space<vmem>>, vector<256x128xbf16>
    tpu.vector_store %arg9[%c16, %c128], %13 {strides = array<i32>} : memref<288x384xbf16, #tpu.memory_space<vmem>>, vector<256x128xbf16>,
    %18 = tpu.iota {dimensions = array<i32: 0>} : vector<256x1xi32>
    %c16_i32 = arith.constant 16 : i32
    %c0_i32 = arith.constant 0 : i32
    %19 = arith.cmpi eq, %c16_i32, %c0_i32 : i32
    %c1_i32 = arith.constant 1 : i32
    %20 = arith.select %19, %c1_i32, %c16_i32 : i32
    %21 = vector.broadcast %20 : i32 to vector<256x1xi32>
    %22 = arith.remsi %18, %21 : vector<256x1xi32>
    %c0_i32_11 = arith.constant 0 : i32
    %23 = vector.broadcast %c0_i32_11 : i32 to vector<256x1xi32>
    %24 = arith.cmpi ne, %22, %23 : vector<256x1xi32>
    %c0_i32_12 = arith.constant 0 : i32
    %25 = vector.broadcast %c0_i32_12 : i32 to vector<256x1xi32>
    %26 = arith.cmpi slt, %22, %25 : vector<256x1xi32>
    %c0_i32_13 = arith.constant 0 : i32
    %27 = arith.cmpi slt, %20, %c0_i32_13 : i32
    %28 = vector.broadcast %27 : i1 to vector<256x1xi1>
    %29 = vector.broadcast %28 : vector<256x1xi1> to vector<256x1xi1>
    %30 = arith.xori %26, %29 : vector<256x1xi1>
    %31 = arith.andi %30, %24 : vector<256x1xi1>
    %32 = vector.broadcast %20 : i32 to vector<256x1xi32>
    %33 = arith.addi %22, %32 : vector<256x1xi32>
    %34 = arith.select %31, %33, %22 : vector<256x1xi1>, vector<256x1xi32>
    %c15 = arith.constant 15 : index
    %c128_14 = arith.constant 128 : index
    %35 = vector.load %arg9[%c15, %c128_14] : memref<288x384xbf16, #tpu.memory_space<vmem>>, vector<256x128xbf16>
    %c0_i32_15 = arith.constant 0 : i32
    %36 = vector.broadcast %c0_i32_15 : i32 to vector<256x1xi32>
    %37 = arith.cmpi eq, %34, %36 : vector<256x1xi32>
    %cst_16 = arith.constant 0.000000e+00 : bf16
    %38 = vector.broadcast %cst_16 : bf16 to vector<256x128xbf16>
    %39 = vector.shape_cast %37 : vector<256x1xi1> to vector<256x1xi1>
    %40 = vector.broadcast %39 : vector<256x1xi1> to vector<256x128xi1>
    %41 = arith.select %40, %38, %35 : vector<256x128xi1>, vector<256x128xbf16>
    %c16_17 = arith.constant 16 : index
    %c0_18 = arith.constant 0 : index
    %42 = vector.load %arg9[%c16_17, %c0_18] : memref<288x384xbf16, #tpu.memory_space<vmem>>, vector<256x128xbf16>
    tpu.vector_store %arg9[%c16_17, %c0_18], %41 {strides = array<i32>} : memref<288x384xbf16, #tpu.memory_space<vmem>>, vector<256x128xbf16>,
    %c17 = arith.constant 17 : index
    %c128_19 = arith.constant 128 : index
    %43 = vector.load %arg9[%c17, %c128_19] : memref<288x384xbf16, #tpu.memory_space<vmem>>, vector<256x128xbf16>
    %c15_i32 = arith.constant 15 : i32
    %44 = vector.broadcast %c15_i32 : i32 to vector<256x1xi32>
    %45 = arith.cmpi eq, %34, %44 : vector<256x1xi32>
    %cst_20 = arith.constant 0.000000e+00 : bf16
    %46 = vector.broadcast %cst_20 : bf16 to vector<256x128xbf16>
    %47 = vector.shape_cast %45 : vector<256x1xi1> to vector<256x1xi1>
    %48 = vector.broadcast %47 : vector<256x1xi1> to vector<256x128xi1>
    %49 = arith.select %48, %46, %43 : vector<256x128xi1>, vector<256x128xbf16>
    %c16_21 = arith.constant 16 : index
    %c256 = arith.constant 256 : index
    %50 = vector.load %arg9[%c16_21, %c256] : memref<288x384xbf16, #tpu.memory_space<vmem>>, vector<256x128xbf16>
    tpu.vector_store %arg9[%c16_21, %c256], %49 {strides = array<i32>} : memref<288x384xbf16, #tpu.memory_space<vmem>>, vector<256x128xbf16>,
    %c0_22 = arith.constant 0 : index
    %c0_23 = arith.constant 0 : index
    %51 = vector.load %arg5[%c0_22, %c0_23] : memref<2x128xf32, #tpu.memory_space<vmem>>, vector<2x128xf32>
    %c0_24 = arith.constant 0 : index
    %c0_25 = arith.constant 0 : index
    %52 = vector.load %arg9[%c0_24, %c0_25] : memref<288x384xbf16, #tpu.memory_space<vmem>>, vector<128x384xbf16>
    %c0_26 = arith.constant 0 : index
    %c0_27 = arith.constant 0 : index
    %c0_28 = arith.constant 0 : index
    %53 = vector.load %arg4[%c0_26, %c0_27, %c0_28] : memref<3x384x128xbf16, #tpu.memory_space<vmem>>, vector<1x384x128xbf16>
    %54 = vector.shape_cast %53 : vector<1x384x128xbf16> to vector<384x128xbf16>
    %cst_29 = arith.constant dense<0.000000e+00> : vector<128x128xf32>
    %55 = tpu.matmul %52, %54, %cst_29 {dimension_numbers = #tpu.dot_dimension_numbers<[1], [0], [0], [1], [0, 0, 1, 1], [], []>} : vector<128x384xbf16>, vector<384x128xbf16>, vector<128x128xf32> -> vector<128x128xf32>
    %c16_30 = arith.constant 16 : index
    %c0_31 = arith.constant 0 : index
    %56 = vector.load %arg9[%c16_30, %c0_31] : memref<288x384xbf16, #tpu.memory_space<vmem>>, vector<128x384xbf16>
    %c1 = arith.constant 1 : index
    %c0_32 = arith.constant 0 : index
    %c0_33 = arith.constant 0 : index
    %57 = vector.load %arg4[%c1, %c0_32, %c0_33] : memref<3x384x128xbf16, #tpu.memory_space<vmem>>, vector<1x384x128xbf16>
    %58 = vector.shape_cast %57 : vector<1x384x128xbf16> to vector<384x128xbf16>
    %cst_34 = arith.constant dense<0.000000e+00> : vector<128x128xf32>
    %59 = tpu.matmul %56, %58, %cst_34 {dimension_numbers = #tpu.dot_dimension_numbers<[1], [0], [0], [1], [0, 0, 1, 1], [], []>} : vector<128x384xbf16>, vector<384x128xbf16>, vector<128x128xf32> -> vector<128x128xf32>
    %60 = arith.addf %55, %59 : vector<128x128xf32>
    %c32 = arith.constant 32 : index
    %c0_35 = arith.constant 0 : index
    %61 = vector.load %arg9[%c32, %c0_35] : memref<288x384xbf16, #tpu.memory_space<vmem>>, vector<128x384xbf16>
    %c2 = arith.constant 2 : index
    %c0_36 = arith.constant 0 : index
    %c0_37 = arith.constant 0 : index
    %62 = vector.load %arg4[%c2, %c0_36, %c0_37] : memref<3x384x128xbf16, #tpu.memory_space<vmem>>, vector<1x384x128xbf16>
    %63 = vector.shape_cast %62 : vector<1x384x128xbf16> to vector<384x128xbf16>
    %cst_38 = arith.constant dense<0.000000e+00> : vector<128x128xf32>
    %64 = tpu.matmul %61, %63, %cst_38 {dimension_numbers = #tpu.dot_dimension_numbers<[1], [0], [0], [1], [0, 0, 1, 1], [], []>} : vector<128x384xbf16>, vector<384x128xbf16>, vector<128x128xf32> -> vector<128x128xf32>
    %65 = arith.addf %60, %64 : vector<128x128xf32>
    %66 = vector.extract_strided_slice %51 {offsets = [0, 0], sizes = [1, 128], strides = [1, 1]} : vector<2x128xf32> to vector<1x128xf32>
    %67 = vector.broadcast %66 : vector<1x128xf32> to vector<128x128xf32>
    %68 = arith.mulf %65, %67 : vector<128x128xf32>
    %69 = vector.extract_strided_slice %51 {offsets = [1, 0], sizes = [1, 128], strides = [1, 1]} : vector<2x128xf32> to vector<1x128xf32>
    %70 = vector.broadcast %69 : vector<1x128xf32> to vector<128x128xf32>
    %71 = arith.addf %68, %70 : vector<128x128xf32>
    %c0_39 = arith.constant 0 : index
    %c0_40 = arith.constant 0 : index
    %72 = vector.load %arg7[%c0_39, %c0_40] : memref<2x128xf32, #tpu.memory_space<vmem>>, vector<2x128xf32>
    %c0_41 = arith.constant 0 : index
    %c0_42 = arith.constant 0 : index
    %c0_43 = arith.constant 0 : index
    %73 = vector.load %arg1[%c0_41, %c0_42, %c0_43] : memref<1x256x128xbf16, #tpu.memory_space<vmem>>, vector<1x128x128xbf16>
    %74 = vector.shape_cast %73 : vector<1x128x128xbf16> to vector<128x128xbf16>
    %c0_44 = arith.constant 0 : index
    %c0_45 = arith.constant 0 : index
    %75 = vector.load %arg6[%c0_44, %c0_45] : memref<128x128xbf16, #tpu.memory_space<vmem>>, vector<128x128xbf16>
    %cst_46 = arith.constant dense<0.000000e+00> : vector<128x128xf32>
    %76 = tpu.matmul %74, %75, %cst_46 {dimension_numbers = #tpu.dot_dimension_numbers<[1], [0], [0], [1], [0, 0, 1, 1], [], []>} : vector<128x128xbf16>, vector<128x128xbf16>, vector<128x128xf32> -> vector<128x128xf32>
    %77 = vector.extract_strided_slice %72 {offsets = [0, 0], sizes = [1, 128], strides = [1, 1]} : vector<2x128xf32> to vector<1x128xf32>
    %78 = vector.broadcast %77 : vector<1x128xf32> to vector<128x128xf32>
    %79 = arith.mulf %76, %78 : vector<128x128xf32>
    %80 = vector.extract_strided_slice %72 {offsets = [1, 0], sizes = [1, 128], strides = [1, 1]} : vector<2x128xf32> to vector<1x128xf32>
    %81 = vector.broadcast %80 : vector<1x128xf32> to vector<128x128xf32>
    %82 = arith.addf %79, %81 : vector<128x128xf32>
    %83 = arith.addf %71, %82 : vector<128x128xf32>
    %cst_47 = arith.constant 0.000000e+00 : f32
    %84 = vector.broadcast %cst_47 : f32 to vector<128x128xf32>
    %85 = arith.maximumf %83, %84 : vector<128x128xf32>
    %c0_48 = arith.constant 0 : index
    %c0_49 = arith.constant 0 : index
    %c0_50 = arith.constant 0 : index
    %86 = vector.load %arg8[%c0_48, %c0_49, %c0_50] : memref<1x256x128xf32, #tpu.memory_space<vmem>>, vector<1x128x128xf32>
    %87 = vector.shape_cast %86 : vector<1x128x128xf32> to vector<128x128xf32>
    %88 = vector.shape_cast %85 : vector<128x128xf32> to vector<1x128x128xf32>
    tpu.vector_store %arg8[%c0_48, %c0_49, %c0_50], %88 {strides = array<i32>} : memref<1x256x128xf32, #tpu.memory_space<vmem>>, vector<1x128x128xf32>,
    %c128_51 = arith.constant 128 : index
    %c0_52 = arith.constant 0 : index
    %89 = vector.load %arg9[%c128_51, %c0_52] : memref<288x384xbf16, #tpu.memory_space<vmem>>, vector<128x384xbf16>
    %c0_53 = arith.constant 0 : index
    %c0_54 = arith.constant 0 : index
    %c0_55 = arith.constant 0 : index
    %90 = vector.load %arg4[%c0_53, %c0_54, %c0_55] : memref<3x384x128xbf16, #tpu.memory_space<vmem>>, vector<1x384x128xbf16>
    %91 = vector.shape_cast %90 : vector<1x384x128xbf16> to vector<384x128xbf16>
    %cst_56 = arith.constant dense<0.000000e+00> : vector<128x128xf32>
    %92 = tpu.matmul %89, %91, %cst_56 {dimension_numbers = #tpu.dot_dimension_numbers<[1], [0], [0], [1], [0, 0, 1, 1], [], []>} : vector<128x384xbf16>, vector<384x128xbf16>, vector<128x128xf32> -> vector<128x128xf32>
    %c144 = arith.constant 144 : index
    %c0_57 = arith.constant 0 : index
    %93 = vector.load %arg9[%c144, %c0_57] : memref<288x384xbf16, #tpu.memory_space<vmem>>, vector<128x384xbf16>
    %c1_58 = arith.constant 1 : index
    %c0_59 = arith.constant 0 : index
    %c0_60 = arith.constant 0 : index
    %94 = vector.load %arg4[%c1_58, %c0_59, %c0_60] : memref<3x384x128xbf16, #tpu.memory_space<vmem>>, vector<1x384x128xbf16>
    %95 = vector.shape_cast %94 : vector<1x384x128xbf16> to vector<384x128xbf16>
    %cst_61 = arith.constant dense<0.000000e+00> : vector<128x128xf32>
    %96 = tpu.matmul %93, %95, %cst_61 {dimension_numbers = #tpu.dot_dimension_numbers<[1], [0], [0], [1], [0, 0, 1, 1], [], []>} : vector<128x384xbf16>, vector<384x128xbf16>, vector<128x128xf32> -> vector<128x128xf32>
    %97 = arith.addf %92, %96 : vector<128x128xf32>
    %c160 = arith.constant 160 : index
    %c0_62 = arith.constant 0 : index
    %98 = vector.load %arg9[%c160, %c0_62] : memref<288x384xbf16, #tpu.memory_space<vmem>>, vector<128x384xbf16>
    %c2_63 = arith.constant 2 : index
    %c0_64 = arith.constant 0 : index
    %c0_65 = arith.constant 0 : index
    %99 = vector.load %arg4[%c2_63, %c0_64, %c0_65] : memref<3x384x128xbf16, #tpu.memory_space<vmem>>, vector<1x384x128xbf16>
    %100 = vector.shape_cast %99 : vector<1x384x128xbf16> to vector<384x128xbf16>
    %cst_66 = arith.constant dense<0.000000e+00> : vector<128x128xf32>
    %101 = tpu.matmul %98, %100, %cst_66 {dimension_numbers = #tpu.dot_dimension_numbers<[1], [0], [0], [1], [0, 0, 1, 1], [], []>} : vector<128x384xbf16>, vector<384x128xbf16>, vector<128x128xf32> -> vector<128x128xf32>
    %102 = arith.addf %97, %101 : vector<128x128xf32>
    %103 = vector.extract_strided_slice %51 {offsets = [0, 0], sizes = [1, 128], strides = [1, 1]} : vector<2x128xf32> to vector<1x128xf32>
    %104 = vector.broadcast %103 : vector<1x128xf32> to vector<128x128xf32>
    %105 = arith.mulf %102, %104 : vector<128x128xf32>
    %106 = vector.extract_strided_slice %51 {offsets = [1, 0], sizes = [1, 128], strides = [1, 1]} : vector<2x128xf32> to vector<1x128xf32>
    %107 = vector.broadcast %106 : vector<1x128xf32> to vector<128x128xf32>
    %108 = arith.addf %105, %107 : vector<128x128xf32>
    %c0_67 = arith.constant 0 : index
    %c0_68 = arith.constant 0 : index
    %109 = vector.load %arg7[%c0_67, %c0_68] : memref<2x128xf32, #tpu.memory_space<vmem>>, vector<2x128xf32>
    %c0_69 = arith.constant 0 : index
    %c128_70 = arith.constant 128 : index
    %c0_71 = arith.constant 0 : index
    %110 = vector.load %arg1[%c0_69, %c128_70, %c0_71] : memref<1x256x128xbf16, #tpu.memory_space<vmem>>, vector<1x128x128xbf16>
    %111 = vector.shape_cast %110 : vector<1x128x128xbf16> to vector<128x128xbf16>
    %c0_72 = arith.constant 0 : index
    %c0_73 = arith.constant 0 : index
    %112 = vector.load %arg6[%c0_72, %c0_73] : memref<128x128xbf16, #tpu.memory_space<vmem>>, vector<128x128xbf16>
    %cst_74 = arith.constant dense<0.000000e+00> : vector<128x128xf32>
    %113 = tpu.matmul %111, %112, %cst_74 {dimension_numbers = #tpu.dot_dimension_numbers<[1], [0], [0], [1], [0, 0, 1, 1], [], []>} : vector<128x128xbf16>, vector<128x128xbf16>, vector<128x128xf32> -> vector<128x128xf32>
    %114 = vector.extract_strided_slice %109 {offsets = [0, 0], sizes = [1, 128], strides = [1, 1]} : vector<2x128xf32> to vector<1x128xf32>
    %115 = vector.broadcast %114 : vector<1x128xf32> to vector<128x128xf32>
    %116 = arith.mulf %113, %115 : vector<128x128xf32>
    %117 = vector.extract_strided_slice %109 {offsets = [1, 0], sizes = [1, 128], strides = [1, 1]} : vector<2x128xf32> to vector<1x128xf32>
    %118 = vector.broadcast %117 : vector<1x128xf32> to vector<128x128xf32>
    %119 = arith.addf %116, %118 : vector<128x128xf32>
    %120 = arith.addf %108, %119 : vector<128x128xf32>
    %cst_75 = arith.constant 0.000000e+00 : f32
    %121 = vector.broadcast %cst_75 : f32 to vector<128x128xf32>
    %122 = arith.maximumf %120, %121 : vector<128x128xf32>
    %c0_76 = arith.constant 0 : index
    %c128_77 = arith.constant 128 : index
    %c0_78 = arith.constant 0 : index
    %123 = vector.load %arg8[%c0_76, %c128_77, %c0_78] : memref<1x256x128xf32, #tpu.memory_space<vmem>>, vector<1x128x128xf32>
    %124 = vector.shape_cast %123 : vector<1x128x128xf32> to vector<128x128xf32>
    %125 = vector.shape_cast %122 : vector<128x128xf32> to vector<1x128x128xf32>
    tpu.vector_store %arg8[%c0_76, %c128_77, %c0_78], %125 {strides = array<i32>} : memref<1x256x128xf32, #tpu.memory_space<vmem>>, vector<1x128x128xf32>,
    return
  }
  func.func @transform_0(%arg0: i32) -> (i32, i32, i32) {
    %c0_i32 = arith.constant 0 : i32
    %c0_i32_0 = arith.constant 0 : i32
    %c0_i32_1 = arith.constant 0 : i32
    return %arg0, %c0_i32, %c0_i32_0 : i32, i32, i32
  }
  func.func @transform_1(%arg0: i32) -> (i32, i32) {
    %c0_i32 = arith.constant 0 : i32
    %c0_i32_0 = arith.constant 0 : i32
    %c0_i32_1 = arith.constant 0 : i32
    return %c0_i32, %c0_i32_0 : i32, i32
  }
  func.func @transform_2(%arg0: i32) -> (i32, i32) {
    %c0_i32 = arith.constant 0 : i32
    %c0_i32_0 = arith.constant 0 : i32
    %c0_i32_1 = arith.constant 0 : i32
    return %c0_i32, %c0_i32_0 : i32, i32
  }
  func.func @transform_3(%arg0: i32) -> (i32, i32, i32) {
    %c0_i32 = arith.constant 0 : i32
    %c0_i32_0 = arith.constant 0 : i32
    %c0_i32_1 = arith.constant 0 : i32
    %c0_i32_2 = arith.constant 0 : i32
    return %c0_i32, %c0_i32_0, %c0_i32_1 : i32, i32, i32
  }
  func.func @transform_4(%arg0: i32) -> (i32, i32) {
    %c0_i32 = arith.constant 0 : i32
    %c0_i32_0 = arith.constant 0 : i32
    %c0_i32_1 = arith.constant 0 : i32
    return %c0_i32, %c0_i32_0 : i32, i32
  }
  func.func @transform_5(%arg0: i32) -> (i32, i32) {
    %c0_i32 = arith.constant 0 : i32
    %c0_i32_0 = arith.constant 0 : i32
    %c0_i32_1 = arith.constant 0 : i32
    return %c0_i32, %c0_i32_0 : i32, i32
  }
  func.func @transform_6(%arg0: i32) -> (i32, i32) {
    %c0_i32 = arith.constant 0 : i32
    %c0_i32_0 = arith.constant 0 : i32
    %c0_i32_1 = arith.constant 0 : i32
    return %c0_i32, %c0_i32_0 : i32, i32
  }
  func.func @transform_7(%arg0: i32) -> (i32, i32, i32) {
    %c0_i32 = arith.constant 0 : i32
    %c0_i32_0 = arith.constant 0 : i32
    %c0_i32_1 = arith.constant 0 : i32
    return %arg0, %c0_i32, %c0_i32_0 : i32, i32, i32
  }
}

</mosaic_0001>

<bundles_post_ra>
// kernel: residual_block_forward.1
= control target key start
LH: loop header
LB: loop body
LE: loop exit
PB: predicated region body
PF: predicated region fallthrough
CT: control target
= control target key end

     0   :  { %s8762_s24 = smov 0   ;;  %s12249_s0 = inlined_call_operand.vmem [shape: bf16[2,256,128], index: 0, kind: input, shape index: {}]   ;;  %s12250_s1 = inlined_call_operand.vmem [shape: bf16[128,128], index: 1, kind: input, shape index: {}]   ;;  %s12251_s2 = inlined_call_operand.vmem [shape: f32[2,128], index: 2, kind: input, shape index: {}]   ;;  %s12252_s3 = inlined_call_operand.vmem [shape: bf16[3,384,128], index: 3, kind: input, shape index: {}]   ;;  %s12253_s4 = inlined_call_operand.vmem [shape: f32[2,128], index: 4, kind: input, shape index: {}]   ;;  %s12254_s5 = inlined_call_operand.vmem [shape: bf16[128,128], index: 5, kind: input, shape index: {}]   ;;  %s12255_s6 = inlined_call_operand.vmem [shape: f32[2,128], index: 6, kind: input, shape index: {}]   ;;  %s12256_s7 = inlined_call_operand.vmem [shape: f32[2,256,128], index: 7, kind: output, shape index: {}]  }
   0x1 LB: > { %s6985_s25 = sadd.s32 4294967295, %s8718_s24   ;;  %p6989_p0 = scmp.ge.s32.totalorder %s8718_s24, 1  ;;  %s8718_s24 = sphi %s8762_s24, %s17_s24  }
   0x2   : > { %p237_p1 = scmp.lt.s32.totalorder %s8718_s24, 3 }
   0x4   : > { %p238_p2 = pnand %p6989_p0, %p237_p1 }
   0x6   : > { %241 = sbr.rel (%p238_p2) target bundleno = 906 (0x38a), region = 48 }
   0xb   : > { %v8407_v0 = vld [vmem:[%s12250_s1 + $0x38] sm:$0xff]   ;;  %p269_p3 = scmp.lt.s32.totalorder %s6985_s25, 1  ;;  %v8408_v1 = vld [vmem:[%s12250_s1 + $0x30] sm:$0xff]   ;;  %v8409_v2 = vld [vmem:[%s12250_s1 + $0x28] sm:$0xff]   ;;  %v12257_v24 = vmov 0   ;;  %v636_v32 = vlaneseq  ;;  %vm8721_vm6 = vmmov 0  }
   0xc   : > { %8093 = vmatprep.subr.bf16.mxu0 %v8407_v0  ;;  %v8410_v3 = vld [vmem:[%s12250_s1 + $0x20] sm:$0xff]   ;;  %v8411_v5 = vld [vmem:[%s12250_s1 + $0x18] sm:$0xff]   ;;  %v8412_v6 = vld [vmem:[%s12250_s1 + $0x10] sm:$0xff]   ;;  %756 = vst [vmem:[#allocation2] sm:$0xff] %v12257_v24  ;;  %vm1518_vm12 = vsmask.f32 3328 }
   0xd   : > { %s12676_s25 = smov (!%p269_p3, %s6985_s25), 1  ;;  %8094 = vmatpush3.bf16.msra.mxu0 %v8407_v0  ;;  %v8413_v7 = vld [vmem:[%s12250_s1 + $0x8] sm:$0xff]   ;;  %v8414_v8 = vld [vmem:[%s12250_s1] sm:$0xff]   ;;  %757 = vst [vmem:[#allocation2 + $0x8] sm:$0xf] %v12257_v24  ;;  %758 = vst [vmem:[#allocation2 + $0xc] sm:$0xff] %v12257_v24 }
   0xe   : > { %8095 = vmatprep.subr.bf16.mxu0 %v8408_v1  ;;  %s7523_s9 = sshll.u32 %s12676_s25, 7  ;;  %759 = vst [vmem:[#allocation2 + $0x14] sm:$0xf] %v12257_v24  ;;  %760 = vst [vmem:[#allocation2 + $0x198] sm:$0xff] %v12257_v24  ;;  %v8431_v25 = vld [vmem:[%s12252_s3 + $0x138] sm:$0xff]   ;;  %v8434_v28 = vld [vmem:[%s12252_s3 + $0x130] sm:$0xff]  }
   0xf   : > { %s8785_s12 = scalar_lea.vmem %s12249_s0, %s7523_s9  ;;  %761 = vst [vmem:[#allocation2 + $0x1a0] sm:$0xf] %v12257_v24  ;;  %763 = vst [vmem:[#allocation2 + $0x1ac] sm:$0xf] %v12257_v24  ;;  %7581 = vmatprep.subr.bf16.mxu1 %v8431_v25  ;;  %v8432_v26 = vld [vmem:[%s12252_s3 + $0xf8] sm:$0xff]   ;;  %v8435_v29 = vld [vmem:[%s12252_s3 + $0xf0] sm:$0xff]  }
  0x10   : > { %v8415_v4 = vld [vmem:[%s8785_s12] sm:$0xff]   ;;  %v8416_v9 = vld [vmem:[%s8785_s12 + $0x8] sm:$0xff]   ;;  %v8417_v10 = vld [vmem:[%s8785_s12 + $0x10] sm:$0xff]   ;;  %7582 = vmatpush3.bf16.msra.mxu1 %v8432_v26  ;;  %v8852_v35 = vshrl.u32 %v636_v32, 7  ;;  %vm1519_vm13 = vsmask.f32 7440 }
  0x11   : > { %8096 = vmatpush3.bf16.msra.mxu0 %v8408_v1  ;;  %8109 = vmatprep.mubr.bf16.mxu0 %v8415_v4  ;;  %v8418_v11 = vld [vmem:[%s8785_s12 + $0x18] sm:$0xff]   ;;  %v8419_v12 = vld [vmem:[%s8785_s12 + $0x20] sm:$0xff]   ;;  %v8420_v13 = vld [vmem:[%s8785_s12 + $0x28] sm:$0xff]   ;;  %vm1906_vm14 = vsmask.f32 256  ;;  %s7524_s9 = sshll.u32 %s12676_s25, 8 }
  0x12   : > { %8097 = vmatprep.subr.bf16.mxu0 %v8409_v2  ;;  %v8421_v14 = vld [vmem:[%s8785_s12 + $0x30] sm:$0xff]   ;;  %v8422_v15 = vld [vmem:[%s8785_s12 + $0x38] sm:$0xff]   ;;  %v8423_v16 = vld [vmem:[%s8785_s12 + $0x40] sm:$0xff]   ;;  %7583 = vmatprep.subr.bf16.mxu1 %v8434_v28  ;;  %12322 = vst [vmem:[#allocation3_spill] sm:$0xff] %v8852_v35  ;;  %v911_v37 = vadd.s32 16, %v8852_v35  ;;  %v910_v40 = vadd.s32 8, %v8852_v35  ;;  %s11816_s11 = scalar_lea.vmem %s12256_s7, %s7524_s9 }
  0x13   : > { %v8424_v17 = vld [vmem:[%s8785_s12 + $0x48] sm:$0xff]   ;;  %v8425_v18 = vld [vmem:[%s8785_s12 + $0x50] sm:$0xff]   ;;  %v8426_v19 = vld [vmem:[%s8785_s12 + $0x58] sm:$0xff]   ;;  %v945_v43 = vand.u32 15, %v8852_v35  ;;  %v912_v52 = vadd.s32 24, %v8852_v35  ;;  %v913_v61 = vadd.s32 32, %v8852_v35 }
  0x14   : > { %v8427_v20 = vld [vmem:[%s8785_s12 + $0x60] sm:$0xff]   ;;  %v8428_v21 = vld [vmem:[%s8785_s12 + $0x68] sm:$0xff]   ;;  %v8429_v22 = vld [vmem:[%s8785_s12 + $0x70] sm:$0xff]   ;;  %7584 = vmatpush3.bf16.msra.mxu1 %v8435_v29  ;;  %v959_v41 = vand.u32 15, %v911_v37  ;;  %v952_v46 = vand.u32 15, %v910_v40  ;;  %v915_v25 = vadd.s32 48, %v8852_v35 }
  0x15   : > { %8098 = vmatpush3.bf16.msra.mxu0 %v8409_v2  ;;  %v8430_v23 = vld [vmem:[%s8785_s12 + $0x78] sm:$0xff]   ;;  %v8436_v30 = vld [vmem:[%s12252_s3 + $0x170] sm:$0xff]   ;;  %v8437_v31 = vld [vmem:[%s12252_s3 + $0x128] sm:$0xff]   ;;  %vm1358_vm1 = vcmp.eq.s32.totalorder %v945_v43, 0  ;;  %v966_v63 = vand.u32 15, %v912_v52  ;;  %v917_v37 = vadd.s32 64, %v8852_v35 }
  0x16   : > { %8099 = vmatprep.subr.bf16.mxu0 %v8410_v3  ;;  %v8433_v27 = vld [vmem:[%s12252_s3 + $0x178] sm:$0xff]   ;;  %7585 = vmatprep.subr.bf16.mxu1 %v8437_v31  ;;  %v8438_v33 = vld [vmem:[%s12252_s3 + $0xe8] sm:$0xff]   ;;  %v8440_v36 = vld [vmem:[%s12252_s3 + $0x120] sm:$0xff]   ;;  %vm1360_vm0 = vcmp.eq.s32.totalorder %v959_v41, 0  ;;  %vm8878_vm3 = vcmp.eq.s32.totalorder %v952_v46, 15  ;;  %v916_v31 = vadd.s32 56, %v8852_v35 }
  0x17   : > { %v8439_v34 = vld [vmem:[%s12252_s3 + $0x168] sm:$0xff]   ;;  %v8441_v38 = vld [vmem:[%s12252_s3 + $0xe0] sm:$0xff]   ;;  %v8443_v42 = vld [vmem:[%s12252_s3 + $0x118] sm:$0xff]   ;;  %vm8925_vm8 = vcmp.eq.s32.totalorder %v966_v63, 15  ;;  %vm1907_vm15 = vsmask.f32 4368 }
  0x18   : > { %7586 = vmatpush3.bf16.msra.mxu1 %v8438_v33  ;;  %v8442_v39 = vld [vmem:[%s12252_s3 + $0x160] sm:$0xff]   ;;  %v8444_v44 = vld [vmem:[%s12252_s3 + $0xd8] sm:$0xff]   ;;  %v8446_v47 = vld [vmem:[%s12252_s3 + $0x110] sm:$0xff]   ;;  %v1001_v46 = vand.u32 15, %v917_v37  ;;  %v920_v37 = vadd.s32 88, %v8852_v35 }
  0x19   : > { %8100 = vmatpush3.bf16.msra.mxu0 %v8410_v3  ;;  %7587 = vmatprep.subr.bf16.mxu1 %v8440_v36  ;;  %v8445_v45 = vld [vmem:[%s12252_s3 + $0x158] sm:$0xff]   ;;  %vm1456_vm2 = vmpackc.low %vm1360_vm0, %vm1360_vm0  ;;  %v8447_v50 = vld [vmem:[%s12252_s3 + $0xd0] sm:$0xff]   ;;  %v919_v36 = vadd.s32 80, %v8852_v35 }
  0x1a   : > { %8101 = vmatprep.subr.bf16.mxu0 %v8411_v5  ;;  %vm1454_vm4 = vmpackc.low %vm1358_vm1, %vm1358_vm1  ;;  %v1488_v49 = vsel %vm1456_vm2, 65537, %v12257_v24  ;;  %v8448_v53 = vld [vmem:[%s12252_s3 + $0x150] sm:$0xff]   ;;  %v8449_v56 = vld [vmem:[%s12252_s3 + $0x108] sm:$0xff]   ;;  %v1022_v63 = vand.u32 15, %v920_v37 }
  0x1b   : > { %vm2395_vm5 = vmpackc.low %vm8878_vm3, %vm8878_vm3  ;;  %v1486_v51 = vsel %vm1454_vm4, 65537, %v12257_v24  ;;  %v1541_v54 = vshll.u32 %v1488_v49, 16  ;;  %v1545_v55 = vshrl.u32 %v1488_v49, 16  ;;  %v8450_v58 = vld [vmem:[%s12252_s3 + $0xc8] sm:$0xff]   ;;  %v8452_v4 = vld [vmem:[%s12252_s3 + $0x100] sm:$0xff]   ;;  %v1015_v41 = vand.u32 15, %v919_v36 }
  0x1c   : > { %7588 = vmatpush3.bf16.msra.mxu1 %v8441_v38  ;;  %vm1455_vm7 = vmpackc.low %vm8721_vm6, %vm8721_vm6  ;;  %v8898_v57 = vsel %vm2395_vm5, 65537, %v12257_v24  ;;  %v1522_v59 = vshll.u32 %v1486_v51, 16  ;;  %v1525_v60 = vshrl.u32 %v1486_v51, 16  ;;  %v8451_v62 = vld [vmem:[%s12252_s3 + $0x148] sm:$0xff]   ;;  %v994_v38 = vand.u32 15, %v916_v31 }
  0x1d   : > { %8102 = vmatpush3.bf16.msra.mxu0 %v8411_v5  ;;  %7589 = vmatprep.subr.bf16.mxu1 %v8443_v42  ;;  %v8908_v0 = vsel %vm1455_vm7, 65537, %v12257_v24  ;;  %v8910_v1 = vrot.slane %v1541_v54, 5  ;;  %v1547_v2 = vrot.slane %v1545_v55, 4  ;;  %v2467_v3 = vshrl.u32 %v8898_v57, 16  ;;  %v8453_v5 = vld [vmem:[%s12252_s3 + $0xc0] sm:$0xff]   ;;  %vm2397_vm10 = vmpackc.low %vm8925_vm8, %vm8925_vm8 }
  0x1e   : > { %8103 = vmatprep.subr.bf16.mxu0 %v8412_v6  ;;  %v282_v42 = vld [vmem:[%s12251_s2] sm:$0x3]  ;;  %vm8976_vm3 = vmor %vm1518_vm12, %vm1519_vm13  ;;  %v2470_v49 = vshll.u32 %v8898_v57, 16  ;;  %vm8984_vm4 = vcmp.eq.s32.totalorder %v994_v38, 15  ;;  %vm8993_vm6 = vcmp.eq.s32.totalorder %v1015_v41, 0  ;;  %v926_v54 = vadd.s32 136, %v8852_v35 }
  0x1f   : > { %vm9000_vm7 = vmor %vm1906_vm14, %vm1907_vm15  ;;  %vm9018_vm8 = vcmp.eq.s32.totalorder %v1001_v46, 0  ;;  %v921_v31 = vadd.s32 96, %v8852_v35  ;;  %v922_v41 = vadd.s32 104, %v8852_v35  ;;  %v927_v36 = vadd.s32 144, %v8852_v35 }
  0x20   : > { %7590 = vmatpush3.bf16.msra.mxu1 %v8444_v44 }
  0x21   : > { %8104 = vmatpush3.bf16.msra.mxu0 %v8412_v6  ;;  %7591 = vmatprep.subr.bf16.mxu1 %v8446_v47  ;;  %v8919_v6 = vrot.slane %v1522_v59, 5  ;;  %v918_v59 = vadd.s32 72, %v8852_v35 }
  0x22   : > { %8105 = vmatprep.subr.bf16.mxu0 %v8413_v7 }
  0x24   : > { %7592 = vmatpush3.bf16.msra.mxu1 %v8447_v50 }
  0x25   : > { %8106 = vmatpush3.bf16.msra.mxu0 %v8413_v7  ;;  %7593 = vmatprep.subr.bf16.mxu1 %v8449_v56  ;;  %v1527_v7 = vrot.slane %v1525_v60, 4 }
  0x26   : > { %8107 = vmatprep.subr.bf16.mxu0 %v8414_v8 }
  0x28   : > { %7594 = vmatpush3.bf16.msra.mxu1 %v8450_v58 }
  0x29   : > { %8108 = vmatpush3.bf16.msra.mxu0 %v8414_v8  ;;  %v973_v8 = vand.u32 15, %v913_v61  ;;  %7595 = vmatprep.subr.bf16.mxu1 %v8452_v4 }
  0x2a   : > { %8141 = vmatprep.subr.bf16.mxu0 %v8433_v27 }
  0x2b   : > { %vm1362_vm9 = vcmp.eq.s32.totalorder %v973_v8, 0 }
  0x2c   : > { %8110 = vmatmul.mubr.bf16.vlgmr.msra.gmra.mxu0 %v8416_v9  ;;  %v8454_v9 = vld [vmem:[%s12252_s3 + $0x140] sm:$0xff]   ;;  %7596 = vmatpush3.bf16.msra.mxu1 %v8453_v5  ;;  %vm1458_vm11 = vmpackc.low %vm1362_vm9, %vm1362_vm9 }
  0x2d   : > { %8113 = vmatprep.mubr.bf16.mxu0 %v8417_v10  ;;  %8142 = vmatpush3.bf16.msra.mxu0 %v8433_v27  ;;  %v1535_v10 = vshrl.u32 %v8908_v0, 16  ;;  %v914_v27 = vadd.s32 40, %v8852_v35  ;;  %v1490_v28 = vsel %vm1458_vm11, 65537, %v12257_v24  ;;  %vm2401_vm9 = vmpackc.low %vm8984_vm4, %vm8984_vm4 }
  0x2e   : > { %8143 = vmatprep.subr.bf16.mxu0 %v8436_v30  ;;  %v1561_v32 = vshll.u32 %v1490_v28, 16  ;;  %vm1462_vm11 = vmpackc.low %vm9018_vm8, %vm9018_vm8 }
  0x2f   : > { %v980_v33 = vand.u32 15, %v914_v27 }
  0x30   : > { %v9004_v56 = vrot.slane %v1561_v32, 5 }
  0x31   : > { %8144 = vmatpush3.bf16.msra.mxu0 %v8436_v30  ;;  %v987_v30 = vand.u32 15, %v915_v25  ;;  %vm8970_vm2 = vcmp.eq.s32.totalorder %v980_v33, 15 }
  0x32   : > { %8145 = vmatprep.subr.bf16.mxu0 %v8439_v34  ;;  %vm2399_vm5 = vmpackc.low %vm8970_vm2, %vm8970_vm2  ;;  %vm9136_vm2 = vcmp.eq.s32.totalorder %v1022_v63, 15 }
  0x33   : > { %vm8955_vm0 = vcmp.eq.s32.totalorder %v987_v30, 0  ;;  %v2431_v4 = vsel %vm2399_vm5, 65537, %v12257_v24  ;;  %vm2405_vm8 = vmpackc.low %vm9136_vm2, %vm9136_vm2 }
  0x34   : > { %8114 = vmatmul.mubr.bf16.gmra.mxu0 %v8418_v11  ;;  %vm1460_vm1 = vmpackc.low %vm8955_vm0, %vm8955_vm0 }
  0x35   : > { %8117 = vmatprep.mubr.bf16.mxu0 %v8419_v12  ;;  %8146 = vmatpush3.bf16.msra.mxu0 %v8439_v34  ;;  %v1531_v12 = vshll.u32 %v8908_v0, 16  ;;  %v1492_v50 = vsel %vm1460_vm1, 65537, %v12257_v24 }
  0x36   : > { %8147 = vmatprep.subr.bf16.mxu0 %v8442_v39 }
  0x39   : > { %8148 = vmatpush3.bf16.msra.mxu0 %v8442_v39 }
  0x3a   : > { %8149 = vmatprep.subr.bf16.mxu0 %v8445_v45 }
  0x3c   : > { %8118 = vmatmul.mubr.bf16.gmra.mxu0 %v8420_v13  ;;  %v1548_v13 = vor.u32 %v1547_v2, %v8910_v1  ;;  %v1581_v2 = vshll.u32 %v1492_v50, 16 }
  0x3d   : > { %8121 = vmatprep.mubr.bf16.mxu0 %v8421_v14  ;;  %8150 = vmatpush3.bf16.msra.mxu0 %v8445_v45  ;;  %v8931_v14 = vrot.slane %v2467_v3, 7  ;;  %v1565_v45 = vshrl.u32 %v1490_v28, 16  ;;  %v1585_v3 = vshrl.u32 %v1492_v50, 16  ;;  %v923_v28 = vadd.s32 112, %v8852_v35 }
  0x3e   : > { %8151 = vmatprep.subr.bf16.mxu0 %v8448_v53 }
  0x3f   : > { %v9048_v8 = vor.u32 %v2470_v49, %v8931_v14  ;;  %v1587_v25 = vrot.slane %v1585_v3, 4  ;;  %v1043_v46 = vand.u32 15, %v923_v28  ;;  %v1036_v3 = vand.u32 15, %v922_v41 }
  0x41   : > { %8152 = vmatpush3.bf16.msra.mxu0 %v8448_v53  ;;  %v1029_v53 = vand.u32 15, %v921_v31  ;;  %vm9117_vm0 = vcmp.eq.s32.totalorder %v1043_v46, 0  ;;  %vm9144_vm5 = vcmp.eq.s32.totalorder %v1036_v3, 15  ;;  %v1071_v3 = vand.u32 15, %v927_v36 }
  0x42   : > { %8153 = vmatprep.subr.bf16.mxu0 %v8451_v62  ;;  %vm1468_vm4 = vmpackc.low %vm9117_vm0, %vm9117_vm0 }
  0x43   : > { %vm9129_vm1 = vcmp.eq.s32.totalorder %v1029_v53, 0 }
  0x44   : > { %8122 = vmatmul.mubr.bf16.gmra.mxu0 %v8422_v15  ;;  %v8934_v15 = vsub.s32 0, %v8852_v35 }
  0x45   : > { %8125 = vmatprep.mubr.bf16.mxu0 %v8423_v16  ;;  %8154 = vmatpush3.bf16.msra.mxu0 %v8451_v62  ;;  %v1528_v16 = vor.u32 %v1527_v7, %v8919_v6  ;;  %v1567_v62 = vrot.slane %v1565_v45, 4 }
  0x46   : > { %8155 = vmatprep.subr.bf16.mxu0 %v8454_v9  ;;  %12327 = vst [vmem:[#allocation4_spill] sm:$0xff] %v8934_v15  ;;  %v9013_v60 = vrot.slane %v282_v42, %v8934_v15 }
  0x47   : > { %v8950_v26 = vrot.slane %v1528_v16, 4 }
  0x49   : > { %8156 = vmatpush3.bf16.msra.mxu0 %v8454_v9  ;;  %v1064_v9 = vand.u32 15, %v926_v54  ;;  %v2506_v54 = vshll.u32 %v2431_v4, 16 }
  0x4b   : > { %vm9077_vm12 = vcmp.eq.s32.totalorder %v1064_v9, 15  ;;  %v925_v9 = vadd.s32 128, %v8852_v35 }
  0x4c   : > { %8126 = vmatmul.mubr.bf16.gmra.mxu0 %v8424_v17  ;;  %v8941_v17 = vsub.s32 1, %v8852_v35  ;;  %vm2411_vm14 = vmpackc.low %vm9077_vm12, %vm9077_vm12 }
  0x4d   : > { %8129 = vmatprep.mubr.bf16.mxu0 %v8425_v18  ;;  %v2461_v18 = vrot.slane %v1535_v10, 7 }
  0x4e   : > { %12328 = vst [vmem:[#allocation5_spill] sm:$0xff] %v8941_v17  ;;  %v9016_v61 = vrot.slane %v282_v42, %v8941_v17  ;;  %v8464_v42 = vld [vmem:[%s12252_s3 + $0xb8] sm:$0xff]  }
  0x4f   : > { %v8988_v52 = vor.u32 %v2461_v18, %v1531_v12  ;;  %v9006_v57 = vrot.slane %v2461_v18, 4  ;;  %v2503_v18 = vshrl.u32 %v2431_v4, 16  ;;  %8173 = vmatprep.subr.bf16.mxu0 %v8464_v42  ;;  %v924_v4 = vadd.s32 120, %v8852_v35 }
  0x51   : > { %12339 = vst [vmem:[#allocation8_spill] sm:$0xff] %v8988_v52  ;;  %12344 = vst [vmem:[#allocation9_spill] sm:$0xff] %v9006_v57  ;;  %v1050_v42 = vand.u32 15, %v924_v4 }
  0x53   : > { %vm9206_vm12 = vcmp.eq.s32.totalorder %v1050_v42, 15 }
  0x54   : > { %8130 = vmatmul.mubr.bf16.gmra.mxu0 %v8426_v19  ;;  %v8943_v19 = vrot.slane %v1531_v12, 5 }
  0x55   : > { %8133 = vmatprep.mubr.bf16.mxu0 %v8427_v20  ;;  %v8945_v20 = vrot.slane %v1548_v13, 4  ;;  %v2433_v13 = vsel %vm2401_vm9, 65537, %v12257_v24  ;;  %vm2407_vm9 = vmpackc.low %vm9144_vm5, %vm9144_vm5 }
  0x56   : > { %12329 = vst [vmem:[#allocation6_spill] sm:$0xff] %v8943_v19  ;;  %v2521_v30 = vshrl.u32 %v2433_v13, 16  ;;  %v2524_v51 = vshll.u32 %v2433_v13, 16 }
  0x58   : > { %v9105_v50 = vrot.slane %v2521_v30, 7 }
  0x5a   : > { %v2528_v36 = vrot.slane %v9105_v50, 4 }
  0x5c   : > { %8134 = vmatmul.mubr.bf16.gmra.mxu0 %v8428_v21  ;;  %v2474_v21 = vrot.slane %v8931_v14, 4  ;;  %v1008_v14 = vand.u32 15, %v918_v59 }
  0x5d   : > { %8137 = vmatprep.mubr.bf16.mxu0 %v8429_v22  ;;  %v1537_v22 = vrot.slane %v1535_v10, 4  ;;  %v8458_v10 = vld [vmem:[%s12252_s3 + $0x78] sm:$0xff]  }
  0x5e   : > { %v9041_v5 = vsel %vm9000_vm7, %v2474_v21, %v8988_v52  ;;  %v1568_v21 = vor.u32 %v1567_v62, %v9004_v56  ;;  %7661 = vmatprep.subr.bf16.mxu1 %v8458_v10  ;;  %vm9081_vm13 = vcmp.eq.s32.totalorder %v1008_v14, 15  ;;  %v2443_v10 = vsel %vm2411_vm14, 65537, %v12257_v24  ;;  %vm2409_vm14 = vmpackc.low %vm9206_vm12, %vm9206_vm12 }
  0x5f   : > { %v1538_v39 = vor.u32 %v1537_v22, %v8943_v19  ;;  %vm2403_vm15 = vmpackc.low %vm9081_vm13, %vm9081_vm13  ;;  %v2611_v31 = vshrl.u32 %v2443_v10, 16 }
  0x60   : > { %v9115_v14 = vsel %vm2403_vm15, 65537, %v12257_v24  ;;  %vm9233_vm15 = vcmp.eq.s32.totalorder %v1071_v3, 0  ;;  %v929_v3 = vadd.s32 160, %v8852_v35 }
  0x61   : > { %v8980_v48 = vrot.slane %v1538_v39, 4  ;;  %v2505_v39 = vrot.slane %v2503_v18, 7  ;;  %v2539_v32 = vshrl.u32 %v9115_v14, 16  ;;  %v2437_v18 = vsel %vm2405_vm8, 65537, %v12257_v24  ;;  %vm1472_vm0 = vmpackc.low %vm9233_vm15, %vm9233_vm15 }
  0x62   : > { %v1504_v11 = vsel %vm1472_vm0, 65537, %v12257_v24  ;;  %vm2747_vm8 = vcmp.ne.s16.totalorder %v9041_v5, 0 }
  0x63   : > { %12336 = vst [vmem:[#allocation7_spill] sm:$0xff] %v8980_v48  ;;  %v9133_v28 = vor.u32 %v2506_v54, %v2505_v39  ;;  %v1500_v54 = vsel %vm1468_vm4, 65537, %v12257_v24  ;;  %v2541_v63 = vrot.slane %v2539_v32, 7 }
  0x64   : > { %8138 = vmatmul.mubr.bf16.gmra.mxu0 %v8430_v23  ;;  %v2429_v23 = vsel %vm2397_vm10, 65537, %v12257_v24  ;;  %vm1464_vm10 = vmpackc.low %vm8993_vm6, %vm8993_vm6  ;;  %v1665_v32 = vshrl.u32 %v1500_v54, 16 }
  0x65   : > { %v2485_v29 = vshrl.u32 %v2429_v23, 16  ;;  %v2488_v43 = vshll.u32 %v2429_v23, 16  ;;  %v1496_v22 = vsel %vm1464_vm10, 65537, %v12257_v24  ;;  %v9071_v23 = vrot.slane %v1581_v2, 5  ;;  %vm1466_vm6 = vmpackc.low %vm9129_vm1, %vm9129_vm1 }
  0x66   : > { %v1621_v33 = vshll.u32 %v1496_v22, 16  ;;  %v1625_v34 = vshrl.u32 %v1496_v22, 16  ;;  %v2510_v2 = vrot.slane %v2505_v39, 4  ;;  %v1498_v30 = vsel %vm1466_vm6, 65537, %v12257_v24 }
  0x67   : > { %v8962_v40 = vrot.slane %v2485_v29, 7  ;;  %v1494_v29 = vsel %vm1462_vm11, 65537, %v12257_v24  ;;  %vm1840_vm11 = vcmp.ne.s16.totalorder %v8919_v6, 0  ;;  %v9217_v6 = vsel %vm2407_vm9, 65537, %v12257_v24 }
  0x68   : > { %v1605_v45 = vshrl.u32 %v1494_v29, 16  ;;  %v1601_v49 = vshll.u32 %v1494_v29, 16  ;;  %v9110_v59 = vrot.slane %v1621_v33, 5  ;;  %v1627_v62 = vrot.slane %v1625_v34, 4 }
  0x69   : > { %v9009_v58 = vor.u32 %v2488_v43, %v8962_v40  ;;  %v2492_v27 = vrot.slane %v8962_v40, 4  ;;  %v9090_v40 = vrot.slane %v1568_v21, 4  ;;  %v1588_v43 = vor.u32 %v1587_v25, %v9071_v23 }
  0x6a   : > { %v1607_v13 = vrot.slane %v1605_v45, 4  ;;  %v9124_v22 = vrot.slane %v1601_v49, 5  ;;  %v9127_v25 = vor.u32 %v2524_v51, %v9105_v50  ;;  %v1628_v29 = vor.u32 %v1627_v62, %v9110_v59 }
  0x6b   : > { %v9100_v44 = vsel %vm9000_vm7, %v2492_v27, %v8988_v52  ;;  %v9122_v21 = vrot.slane %v1588_v43, 4  ;;  %v1057_v34 = vand.u32 15, %v925_v9  ;;  %v9152_v37 = vsel %vm9000_vm7, %v2510_v2, %v8988_v52  ;;  %v1325_v9 = vld [vmem:[#allocation2 + $0x10] sm:$0x8] }
  0x6c   : > { %v1608_v41 = vor.u32 %v1607_v13, %v9124_v22  ;;  %v9185_v53 = vrot.slane %v1628_v29, 4  ;;  %v9196_v62 = vrot.slane %v2611_v31, 7  ;;  %v2614_v29 = vshll.u32 %v2443_v10, 16 }
  0x6d   : > { %vm9198_vm10 = vcmp.eq.s32.totalorder %v1057_v34, 0  ;;  %v1661_v31 = vshll.u32 %v1500_v54, 16  ;;  %v1645_v34 = vshrl.u32 %v1498_v30, 16  ;;  %v1873_v10 = vsel %vm1840_vm11, 0, %v1325_v9 }
  0x6e   : > { %v9203_v13 = vrot.slane %v1608_v41, 4  ;;  %vm1470_vm13 = vmpackc.low %vm9198_vm10, %vm9198_vm10  ;;  %v9227_v27 = vor.u32 %v2614_v29, %v9196_v62  ;;  %v2557_v41 = vshrl.u32 %v2437_v18, 16  ;;  %v928_v54 = vadd.s32 152, %v8852_v35 }
  0x6f   : > { %v2546_v2 = vrot.slane %v2541_v63, 4  ;;  %v1641_v29 = vshll.u32 %v1498_v30, 16  ;;  %v2575_v50 = vshrl.u32 %v9217_v6, 16  ;;  %v9243_v33 = vrot.slane %v1661_v31, 5 }
  0x70   : > { %12363 = vst [vmem:[#allocation10_spill] sm:$0xff] %v9227_v27  ;;  %v1667_v4 = vrot.slane %v1665_v32, 4  ;;  %v1502_v51 = vsel %vm1470_vm13, 65537, %v12257_v24  ;;  %v1647_v49 = vrot.slane %v1645_v34, 4  ;;  %v2441_v45 = vsel %vm2409_vm14, 65537, %v12257_v24 }
  0x71   : > { %12366 = vst [vmem:[#allocation11_spill] sm:$0xff] %v9243_v33  ;;  %v1685_v46 = vshrl.u32 %v1502_v51, 16  ;;  %v1910_v39 = vshrl.u32 %v1873_v10, 16  ;;  %v2559_v9 = vrot.slane %v2557_v41, 7  ;;  %v2560_v30 = vshll.u32 %v2437_v18, 16 }
  0x72   : > { %v2542_v43 = vshll.u32 %v9115_v14, 16  ;;  %v1078_v31 = vand.u32 15, %v928_v54  ;;  %v9255_v32 = vsel %vm9000_vm7, %v2528_v36, %v8988_v52  ;;  %v9257_v38 = vrot.slane %v1641_v29, 5 }
  0x73   : > { %v2577_v34 = vrot.slane %v2575_v50, 7  ;;  %v1681_v16 = vshll.u32 %v1502_v51, 16  ;;  %v1668_v12 = vor.u32 %v1667_v4, %v9243_v33  ;;  %v2593_v42 = vshrl.u32 %v2441_v45, 16 }
  0x74   : > { %v1085_v10 = vand.u32 15, %v929_v3  ;;  %v9264_v14 = vsel %vm9000_vm7, %v2546_v2, %v8988_v52  ;;  %v1648_v18 = vor.u32 %v1647_v49, %v9257_v38  ;;  %v1705_v41 = vshrl.u32 %v1504_v11, 16 }
  0x75   : > { %v1687_v36 = vrot.slane %v1685_v46, 4  ;;  %v9267_v54 = vor.u32 %v2560_v30, %v2559_v9  ;;  %v9269_v29 = vor.u32 %v2542_v43, %v2541_v63  ;;  %v2564_v51 = vrot.slane %v2559_v9, 4 }
  0x76   : > { %vm9271_vm1 = vcmp.eq.s32.totalorder %v1078_v31, 15  ;;  %v2582_v4 = vrot.slane %v2577_v34, 4  ;;  %v9275_v3 = vrot.slane %v1681_v16, 5  ;;  %v2578_v7 = vshll.u32 %v9217_v6, 16 }
  0x77   : > { %v1701_v2 = vshll.u32 %v1504_v11, 16  ;;  %v9278_v0 = vrot.slane %v1668_v12, 4  ;;  %v2595_v49 = vrot.slane %v2593_v42, 7  ;;  %v2596_v24 = vshll.u32 %v2441_v45, 16  ;;  %vm2413_vm4 = vmpackc.low %vm9271_vm1, %vm9271_vm1 }
  0x78   : > { %12369 = vst [vmem:[#allocation12_spill] sm:$0xff] %v9275_v3  ;;  %vm9280_vm2 = vcmp.eq.s32.totalorder %v1085_v10, 0  ;;  %v9284_v43 = vrot.slane %v1648_v18, 4  ;;  %v1707_v63 = vrot.slane %v1705_v41, 4  ;;  %v1688_v9 = vor.u32 %v1687_v36, %v9275_v3 }
  0x79   : > { %v9287_v30 = vrot.slane %v1910_v39, 11  ;;  %v9311_v6 = vsel %vm9000_vm7, %v2582_v4, %v8988_v52  ;;  %v9316_v31 = vsel %vm9000_vm7, %v2564_v51, %v8988_v52  ;;  %v9318_v42 = vor.u32 %v2578_v7, %v2577_v34  ;;  %vm1474_vm5 = vmpackc.low %vm9280_vm2, %vm9280_vm2 }
  0x7a   : > { %12372 = vst [vmem:[#allocation13_spill] sm:$0xff] %v9316_v31  ;;  %v9320_v10 = vrot.slane %v1701_v2, 5  ;;  %v9330_v36 = vor.u32 %v2596_v24, %v2595_v49  ;;  %v12376_v50 = vmov 0   ;;  %v9338_v2 = vrot.slane %v1688_v9, 4 }
  0x7b   : > { %12373 = vst [vmem:[#allocation14_spill] sm:$0xff] %v9318_v42  ;;  %v2445_v51 = vsel %vm2413_vm4, 65537, %v12376_v50  ;;  %v2600_v46 = vrot.slane %v2595_v49, 4  ;;  %v9347_v41 = vsel %vm1474_vm5, 65537, %v12376_v50  ;;  %v2618_v9 = vrot.slane %v9196_v62, 4 }
  0x7c   : > { %12374 = vst [vmem:[#allocation15_spill] sm:$0xff] %v9320_v10  ;;  %12375 = vst [vmem:[#allocation16_spill] sm:$0xff] %v9330_v36  ;;  %v1708_v34 = vor.u32 %v1707_v63, %v9320_v10  ;;  %v12378_v63 = vsel %vm8976_vm3, %v8945_v20, %v8943_v19  ;;  %v1721_v20 = vshll.u32 %v9347_v41, 16  ;;  %vm2745_vm10 = vcmp.ne.s16.totalorder %v8988_v52, 0 }
  0x7d   : > { %12377 = vst [vmem:[#allocation17_spill] sm:$0xff] %v9338_v2  ;;  %vm9369_vm6 = vcmp.ne.s16.totalorder %v12378_v63, 0  ;;  %vm2751_vm2 = vcmp.ne.s16.totalorder %v9152_v37, 0  ;;  %vm2749_vm5 = vcmp.ne.s16.totalorder %v9100_v44, 0 }
  0xec   : > { %v8111_v45 = vpop.f32.mrf.mxu0 }
  0xed   : > { %v642_v18 = vmul.f32 %v8111_v45, %v9013_v60 }
  0xee   : > { %v509_v4 = vpop.f32.mrf.mxu0 }
  0xef   : > { %v678_v45 = vadd.f32 %v9016_v61, %v642_v18  ;;  %v640_v39 = vmul.f32 %v9013_v60, %v509_v4  ;;  %v2629_v18 = vshrl.u32 %v2445_v51, 16 }
  0xf0   : > { %v8112_v16 = vpop.f32.mrf.mxu0 }
  0xf1   : > { %v710_v4 = vmax.f32 %v678_v45, 0.0  ;;  %v676_v24 = vadd.f32 %v9016_v61, %v640_v39  ;;  %v643_v50 = vmul.f32 %v8112_v16, %v9013_v60  ;;  %v9374_v39 = vrot.slane %v1708_v34, 4 }
  0xf2   : > { %v512_v62 = vpop.f32.mrf.mxu0  ;;  %v9383_v45 = vsel %vm9000_vm7, %v2600_v46, %v8988_v52  ;;  %v12383_v34 = vsel %vm8976_vm3, %v8950_v26, %v8943_v19  ;;  %v9400_v46 = vsel %vm9000_vm7, %v2618_v9, %v8988_v52  ;;  %v12387_v9 = vsel %vm8976_vm3, %v8980_v48, %v9004_v56 }
  0xf3   : > { %12381 = vst [vmem:[#allocation18_spill] sm:$0xff] %v9374_v39  ;;  %12382 = vst [vmem:[#allocation19_spill] sm:$0xff] %v9383_v45  ;;  %v7527_v63 = vpack.c.bf16 %v710_v4, %v710_v4  ;;  %v708_v7 = vmax.f32 %v676_v24, 0.0  ;;  %v679_v12 = vadd.f32 %v9016_v61, %v643_v50  ;;  %v641_v11 = vmul.f32 %v9013_v60, %v512_v62 }
  0xf4   : > { %vm9393_vm9 = vcmp.ne.s16.totalorder %v12383_v34, 0  ;;  %v8115_v17 = vpop.f32.mrf.mxu0  ;;  %12386 = vst [vmem:[#allocation20_spill] sm:$0xff] %v9400_v46  ;;  %v9402_v24 = vrot.slane %v2629_v18, 7  ;;  %v2632_v4 = vshll.u32 %v2445_v51, 16  ;;  %v931_v50 = vadd.s32 176, %v8852_v35 }
  0xf5   : > { %878 = vst [vmem:[#allocation2 + $0x34] sm:$0xf] %v7527_v63  ;;  %v7525_v62 = vpack.c.bf16 %v708_v7, %v708_v7  ;;  %v711_v15 = vmax.f32 %v679_v12, 0.0  ;;  %v677_v26 = vadd.f32 %v9016_v61, %v641_v11  ;;  %v646_v34 = vmul.f32 %v8115_v17, %v9013_v60 }
  0xf6   : > { %vm9413_vm11 = vcmp.ne.s16.totalorder %v12387_v9, 0  ;;  %v525_v51 = vpop.f32.mrf.mxu0  ;;  %v9417_v45 = vrot.slane %v1721_v20, 5  ;;  %v1725_v12 = vshrl.u32 %v9347_v41, 16  ;;  %v9421_v11 = vadd.s32 168, %v8852_v35 }
  0xf7   : > { %v1099_v17 = vand.u32 15, %v931_v50  ;;  %876 = vst [vmem:[#allocation2 + $0x1c] sm:$0xf] %v7525_v62  ;;  %v7528_v7 = vpack.c.bf16 %v711_v15, %v711_v15  ;;  %v709_v63 = vmax.f32 %v677_v26, 0.0  ;;  %v682_v2 = vadd.f32 %v9016_v61, %v646_v34 }
  0xf8   : > { %12390 = vst [vmem:[#allocation21_spill] sm:$0xff] %v9417_v45  ;;  %12391 = vst [vmem:[#allocation22_spill] sm:$0xff] %v9421_v11  ;;  %v644_v56 = vmul.f32 %v9013_v60, %v525_v51  ;;  %v8116_v9 = vpop.f32.mrf.mxu0  ;;  %v9430_v46 = vor.u32 %v2632_v4, %v9402_v24  ;;  %v12393_v15 = vsel %vm9000_vm7, %v9006_v57, %v9009_v58 }
  0xf9   : > { %vm1380_vm12 = vcmp.eq.s32.totalorder %v1099_v17, 0  ;;  %879 = vst [vmem:[#allocation2 + $0x40] sm:$0xf] %v7528_v7  ;;  %vm9441_vm13 = vcmp.ne.s16.totalorder %v12393_v15, 0  ;;  %v7526_v62 = vpack.c.bf16 %v709_v63, %v709_v63  ;;  %v12396_v4 = vsel %vm8976_vm3, %v8980_v48, %v8910_v1 }
  0xfa   : > { %12392 = vst [vmem:[#allocation23_spill] sm:$0xff] %v9430_v46  ;;  %vm9450_vm14 = vcmp.ne.s16.totalorder %v12396_v4, 0  ;;  %v12399_v34 = vsel %vm9000_vm7, %v9006_v57, %v9048_v8  ;;  %v714_v51 = vmax.f32 %v682_v2, 0.0  ;;  %v680_v17 = vadd.f32 %v9016_v61, %v644_v56  ;;  %vm1476_vm0 = vmpackc.low %vm1380_vm12, %vm1380_vm12  ;;  %v528_v1 = vpop.f32.mrf.mxu0  ;;  %v8697_v4 = vld [vmem:[#allocation2] sm:$0xff] }
  0xfb   : > { %vm9459_vm15 = vcmp.ne.s16.totalorder %v12399_v34, 0  ;;  %v647_v7 = vmul.f32 %v8116_v9, %v9013_v60  ;;  %v9470_v8 = vsel %vm1476_vm0, 65537, %v8697_v4  ;;  %v9472_v34 = vrot.slane %v1725_v12, 4  ;;  %877 = vst [vmem:[#allocation2 + $0x28] sm:$0xf] %v7526_v62 }
  0xfc   : > { %12402 = vst [vmem:[#allocation24_spill] sm:$0xff] %v9470_v8  ;;  %v7531_v2 = vpack.c.bf16 %v714_v51, %v714_v51  ;;  %v712_v41 = vmax.f32 %v680_v17, 0.0  ;;  %v645_v9 = vmul.f32 %v9013_v60, %v528_v1  ;;  %v1328_v20 = vld [vmem:[#allocation2 + $0x34] sm:$0xf]  ;;  %v9476_v39 = vpop.f32.mrf.mxu0  ;;  %v9488_v51 = vadd.s32 184, %v8852_v35 }
  0xfd   : > { %12403 = vst [vmem:[#allocation25_spill] sm:$0xff] %v9472_v34  ;;  %v683_v56 = vadd.f32 %v9016_v61, %v647_v7  ;;  %v2267_v10 = vld [vmem:[#allocation2 + $0x34] sm:$0xf]  ;;  %v9492_v17 = vsel %vm9369_vm6, 0, %v1328_v20  ;;  %v12405_v62 = vsel %vm8976_vm3, %v9122_v21, %v8943_v19  ;;  %v12409_v16 = vsel %vm8976_vm3, %v9090_v40, %v8943_v19 }
  0xfe   : > { %12404 = vst [vmem:[#allocation26_spill] sm:$0xff] %v9488_v51  ;;  %v2780_v7 = vsel %vm2747_vm8, 0, %v2267_v10  ;;  %882 = vst [vmem:[#allocation2 + $0x64] sm:$0xf] %v7531_v2  ;;  %v7529_v1 = vpack.c.bf16 %v712_v41, %v712_v41  ;;  %v1933_v63 = vshrl.u32 %v9492_v17, 16  ;;  %vm9502_vm1 = vcmp.ne.s16.totalorder %v12405_v62, 0  ;;  %v9507_v5 = vpop.f32.mrf.mxu0 }
  0xff   : > { %v715_v4 = vmax.f32 %v683_v56, 0.0  ;;  %v2831_v15 = vshll.u32 %v2780_v7, 16  ;;  %v2835_v46 = vshrl.u32 %v2780_v7, 16  ;;  %v1326_v12 = vld [vmem:[#allocation2 + $0x1c] sm:$0xf]  ;;  %v9515_v56 = vadd.f32 %v9016_v61, %v645_v9 }
 0x100   : > { %v9512_v20 = vsel %vm9393_vm9, 0, %v1326_v12  ;;  %v2265_v41 = vld [vmem:[#allocation2 + $0x1c] sm:$0xf]  ;;  %880 = vst [vmem:[#allocation2 + $0x4c] sm:$0xf] %v7529_v1  ;;  %v9518_v62 = vrot.slane %v1933_v63, 7  ;;  %v9533_v9 = vpop.f32.mrf.mxu0  ;;  %v12415_v50 = vsel %vm9000_vm7, %v9006_v57, %v9127_v25  ;;  %v650_v34 = vmul.f32 %v9476_v39, %v9013_v60 }
 0x101   : > { %v7532_v2 = vpack.c.bf16 %v715_v4, %v715_v4  ;;  %v9520_v7 = vrot.slane %v2831_v15, 5  ;;  %v2837_v51 = vrot.slane %v2835_v46, 4  ;;  %v1915_v35 = vshrl.u32 %v9512_v20, 16  ;;  %v1329_v10 = vld [vmem:[#allocation2 + $0x40] sm:$0xf] }
 0x102   : > { %vm9528_vm4 = vcmp.ne.s16.totalorder %v12409_v16, 0  ;;  %v1936_v63 = vshll.u32 %v9492_v17, 16  ;;  %v2778_v15 = vsel %vm2745_vm10, 0, %v2265_v41  ;;  %v1877_v1 = vsel %vm9413_vm11, 0, %v1329_v10  ;;  %v2268_v4 = vld [vmem:[#allocation2 + $0x40] sm:$0xf]  ;;  %v9544_v11 = vpop.f32.mrf.mxu0 }
 0x103   : > { %12408 = vst [vmem:[#allocation27_spill] sm:$0xff] %v9520_v7  ;;  %883 = vst [vmem:[#allocation2 + $0x70] sm:$0xf] %v7532_v2  ;;  %v2838_v16 = vor.u32 %v2837_v51, %v9520_v7  ;;  %v1327_v21 = vld [vmem:[#allocation2 + $0x28] sm:$0xf]  ;;  %v9548_v46 = vrot.slane %v1915_v35, 7  ;;  %v12412_v35 = vsel %vm8976_vm3, %v8980_v48, %v9124_v22 }
 0x104   : > { %v2266_v8 = vld [vmem:[#allocation2 + $0x28] sm:$0xf]  ;;  %v2812_v41 = vshrl.u32 %v2778_v15, 16  ;;  %v2815_v18 = vshll.u32 %v2778_v15, 16  ;;  %v1942_v10 = vshrl.u32 %v1877_v1, 16  ;;  %v2781_v2 = vsel %vm9441_vm13, 0, %v2268_v4  ;;  %v9576_v58 = vpop.f32.mrf.mxu0 }
 0x105   : > { %v2839_v42 = vrot.slane %v2838_v16, 4  ;;  %v9554_v51 = vsel %vm9450_vm14, 0, %v1327_v21  ;;  %v2779_v40 = vsel %vm9459_vm15, 0, %v2266_v8  ;;  %vm9563_vm6 = vcmp.ne.s16.totalorder %v12412_v35, 0  ;;  %v1332_v35 = vld [vmem:[#allocation2 + $0x64] sm:$0xf] }
 0x106   : > { %vm9572_vm8 = vcmp.ne.s16.totalorder %v12415_v50, 0  ;;  %v2814_v8 = vrot.slane %v2812_v41, 4  ;;  %v2817_v21 = vrot.slane %v2815_v18, 5  ;;  %v9578_v15 = vrot.slane %v1942_v10, 7  ;;  %v2271_v27 = vld [vmem:[#allocation2 + $0x64] sm:$0xf]  ;;  %v9594_v31 = vpop.f32.mrf.mxu0 }
 0x107   : > { %v2841_v22 = vshll.u32 %v2781_v2, 16  ;;  %v2845_v4 = vshrl.u32 %v2781_v2, 16  ;;  %v2821_v16 = vshll.u32 %v2779_v40, 16  ;;  %v12418_v25 = vrot.slane %v9402_v24, 4  ;;  %v1330_v39 = vld [vmem:[#allocation2 + $0x4c] sm:$0xf] }
 0x108   : > { %v1945_v45 = vshll.u32 %v1877_v1, 16  ;;  %v1924_v18 = vshrl.u32 %v9554_v51, 16  ;;  %v9592_v2 = vor.u32 %v1936_v63, %v9518_v62  ;;  %v2818_v7 = vor.u32 %v2817_v21, %v2814_v8  ;;  %v2269_v3 = vld [vmem:[#allocation2 + $0x4c] sm:$0xf] }
 0x109   : > { %v9587_v50 = vsel %vm9000_vm7, %v12418_v25, %v8988_v52  ;;  %v2843_v41 = vrot.slane %v2841_v22, 5  ;;  %v2847_v33 = vrot.slane %v2845_v4, 4  ;;  %v2825_v36 = vshrl.u32 %v2779_v40, 16 }
 0x10a   : > { %12419 = vst [vmem:[#allocation28_spill] sm:$0xff] %v9587_v50  ;;  %v9597_v24 = vor.u32 %v1945_v45, %v9578_v15  ;;  %v1880_v22 = vsel %vm9502_vm1, 0, %v1332_v35  ;;  %v2784_v63 = vsel %vm2751_vm2, 0, %v2271_v27  ;;  %v9606_v40 = vrot.slane %v2821_v16, 5  ;;  %v1333_v49 = vld [vmem:[#allocation2 + $0x70] sm:$0xf] }
 0x10b   : > { %v2844_v1 = vsel %vm8976_vm3, %v2839_v42, %v2843_v41  ;;  %v2848_v21 = vor.u32 %v2847_v33, %v2843_v41  ;;  %v1969_v4 = vshrl.u32 %v1880_v22, 16  ;;  %v2871_v25 = vshll.u32 %v2784_v63, 16  ;;  %v2272_v33 = vld [vmem:[#allocation2 + $0x70] sm:$0xf]  ;;  %v8124_v41 = vpop.f32.mrf.mxu0 }
 0x10c   : > { %3169 = vst [vmem:[#allocation2 + $0x38] sm:$0xf] %v2844_v1  ;;  %v2875_v10 = vshrl.u32 %v2784_v63, 16  ;;  %v1878_v45 = vsel %vm9528_vm4, 0, %v1330_v39  ;;  %v2782_v42 = vsel %vm2749_vm5, 0, %v2269_v3  ;;  %v9612_v35 = vrot.slane %v2825_v36, 4 }
 0x10d   : > { %v9614_v37 = vrot.slane %v1969_v4, 7  ;;  %v1972_v27 = vshll.u32 %v1880_v22, 16  ;;  %v1951_v8 = vshrl.u32 %v1878_v45, 16  ;;  %v9616_v16 = vrot.slane %v2871_v25, 5  ;;  %v560_v25 = vpop.f32.mrf.mxu0 }
 0x10e   : > { %v2877_v1 = vrot.slane %v2875_v10, 4  ;;  %v1954_v52 = vshll.u32 %v1878_v45, 16  ;;  %v2851_v63 = vshll.u32 %v2782_v42, 16  ;;  %v2849_v50 = vrot.slane %v2848_v21, 4 }
 0x10f   : > { %v9618_v12 = vrot.slane %v1924_v18, 7  ;;  %v9620_v39 = vrot.slane %v1951_v8, 7  ;;  %v2855_v44 = vshrl.u32 %v2782_v42, 16  ;;  %v9627_v22 = vsel %vm9563_vm6, 0, %v1333_v49 }
 0x110   : > { %v2878_v3 = vor.u32 %v2877_v1, %v9616_v16  ;;  %v9623_v36 = vrot.slane %v2851_v63, 5  ;;  %v2785_v4 = vsel %vm9572_vm8, 0, %v2272_v33  ;;  %v9631_v10 = vrot.slane %v2818_v7, 4 }
 0x111   : > { %v9636_v8 = vor.u32 %v1972_v27, %v9614_v37  ;;  %v9638_v21 = vrot.slane %v2855_v44, 4  ;;  %v9642_v17 = vor.u32 %v1954_v52, %v9620_v39  ;;  %v2881_v7 = vshll.u32 %v2785_v4, 16 }
 0x112   : > { %v2854_v26 = vsel %vm8976_vm3, %v2849_v50, %v9623_v36  ;;  %v12421_v42 = vsel %vm8976_vm3, %v8980_v48, %v9071_v23  ;;  %v12424_v52 = vsel %vm9000_vm7, %v9006_v57, %v9133_v28  ;;  %v1978_v33 = vshrl.u32 %v9627_v22, 16 }
 0x113   : > { %12420 = vst [vmem:[#allocation29_spill] sm:$0xff] %v9636_v8  ;;  %vm9652_vm9 = vcmp.ne.s16.totalorder %v12421_v42, 0  ;;  %vm9661_vm10 = vcmp.ne.s16.totalorder %v12424_v52, 0  ;;  %3170 = vst [vmem:[#allocation2 + $0x44] sm:$0xf] %v2854_v26  ;;  %v2885_v1 = vshrl.u32 %v2785_v4, 16  ;;  %v686_v42 = vadd.f32 %v9016_v61, %v650_v34 }
 0x114   : > { %v12427_v23 = vmax.f32 %v9515_v56, 0.0  ;;  %v9670_v44 = vrot.slane %v2878_v3, 4  ;;  %v648_v28 = vmul.f32 %v9013_v60, %v9507_v5  ;;  %v651_v52 = vmul.f32 %v9533_v9, %v9013_v60 }
 0x115   : > { %v2858_v26 = vor.u32 %v9638_v21, %v9623_v36  ;;  %v9680_v4 = vrot.slane %v2881_v7, 5  ;;  %v2887_v56 = vrot.slane %v2885_v1, 4  ;;  %v718_v3 = vmax.f32 %v686_v42, 0.0 }
 0x116   : > { %v7530_v63 = vpack.c.bf16 %v12427_v23, %v12427_v23  ;;  %v8127_v23 = vpop.f32.mrf.mxu0  ;;  %v684_v50 = vadd.f32 %v9016_v61, %v648_v28  ;;  %v687_v34 = vadd.f32 %v9016_v61, %v651_v52  ;;  %v649_v5 = vmul.f32 %v9013_v60, %v9544_v11 }
 0x117   : > { %v9686_v18 = vrot.slane %v1978_v33, 7  ;;  %v12429_v9 = vsel %vm8976_vm3, %v9185_v53, %v8943_v19  ;;  %vm2755_vm12 = vcmp.ne.s16.totalorder %v9264_v14, 0  ;;  %v654_v21 = vmul.f32 %v9576_v58, %v9013_v60 }
 0x118   : > { %881 = vst [vmem:[#allocation2 + $0x58] sm:$0xf] %v7530_v63  ;;  %vm9693_vm11 = vcmp.ne.s16.totalorder %v12429_v9, 0  ;;  %v652_v7 = vmul.f32 %v9013_v60, %v9594_v31  ;;  %v655_v11 = vmul.f32 %v8124_v41, %v9013_v60  ;;  %v7535_v33 = vpack.c.bf16 %v718_v3, %v718_v3 }
 0x119   : > { %12428 = vst [vmem:[#allocation30_spill] sm:$0xff] %v9686_v18  ;;  %v716_v1 = vmax.f32 %v684_v50, 0.0  ;;  %v719_v63 = vmax.f32 %v687_v34, 0.0  ;;  %v685_v42 = vadd.f32 %v9016_v61, %v649_v5  ;;  %v2888_v53 = vor.u32 %v2887_v56, %v9680_v4  ;;  %v573_v50 = vpop.f32.mrf.mxu0 }
 0x11a   : > { %v12432_v28 = vsel %vm8976_vm3, %v9203_v13, %v8943_v19  ;;  %v690_v31 = vadd.f32 %v9016_v61, %v654_v21  ;;  %v688_v58 = vadd.f32 %v9016_v61, %v652_v7  ;;  %v691_v41 = vadd.f32 %v9016_v61, %v655_v11  ;;  %886 = vst [vmem:[#allocation2 + $0x94] sm:$0xf] %v7535_v33 }
 0x11b   : > { %vm9710_vm13 = vcmp.ne.s16.totalorder %v12432_v28, 0  ;;  %v7533_v3 = vpack.c.bf16 %v716_v1, %v716_v1  ;;  %v7536_v34 = vpack.c.bf16 %v719_v63, %v719_v63  ;;  %v717_v56 = vmax.f32 %v685_v42, 0.0 }
 0x11c   : > { %v653_v5 = vmul.f32 %v9013_v60, %v560_v25  ;;  %vm2753_vm14 = vcmp.ne.s16.totalorder %v9255_v32, 0  ;;  %v12435_v13 = vsel %vm8976_vm3, %v8980_v48, %v9257_v38  ;;  %v12438_v21 = vsel %vm9000_vm7, %v9006_v57, %v9267_v54 }
 0x11d   : > { %vm9724_vm15 = vcmp.ne.s16.totalorder %v12435_v13, 0  ;;  %vm9733_vm0 = vcmp.ne.s16.totalorder %v12438_v21, 0  ;;  %v722_v25 = vmax.f32 %v690_v31, 0.0  ;;  %v720_v11 = vmax.f32 %v688_v58, 0.0  ;;  %884 = vst [vmem:[#allocation2 + $0x7c] sm:$0xf] %v7533_v3 }
 0x11e   : > { %v723_v33 = vmax.f32 %v691_v41, 0.0  ;;  %v658_v1 = vmul.f32 %v8127_v23, %v9013_v60  ;;  %887 = vst [vmem:[#allocation2 + $0xa0] sm:$0xf] %v7536_v34  ;;  %v7534_v42 = vpack.c.bf16 %v717_v56, %v717_v56  ;;  %v689_v28 = vadd.f32 %v9016_v61, %v653_v5 }
 0x11f   : > { %v1331_v63 = vld [vmem:[#allocation2 + $0x58] sm:$0xf]  ;;  %v656_v13 = vmul.f32 %v9013_v60, %v573_v50  ;;  %v12441_v54 = vshll.u32 %v9512_v20, 16  ;;  %v7539_v23 = vpack.c.bf16 %v722_v25, %v722_v25  ;;  %v7537_v41 = vpack.c.bf16 %v720_v11, %v720_v11 }
 0x120   : > { %v2270_v38 = vld [vmem:[#allocation2 + $0x58] sm:$0xf]  ;;  %v1879_v31 = vsel %vm9652_vm9, 0, %v1331_v63  ;;  %v9747_v45 = vrot.slane %v2858_v26, 4  ;;  %885 = vst [vmem:[#allocation2 + $0x88] sm:$0xf] %v7534_v42  ;;  %v7540_v50 = vpack.c.bf16 %v723_v33, %v723_v33  ;;  %v694_v20 = vadd.f32 %v9016_v61, %v658_v1 }
 0x121   : > { %v1920_v21 = vor.u32 %v12441_v54, %v9548_v46  ;;  %v2783_v58 = vsel %vm9661_vm10, 0, %v2270_v38  ;;  %v1960_v3 = vshrl.u32 %v1879_v31, 16  ;;  %890 = vst [vmem:[#allocation2 + $0xc4] sm:$0xf] %v7539_v23  ;;  %888 = vst [vmem:[#allocation2 + $0xac] sm:$0xf] %v7537_v41  ;;  %v692_v49 = vadd.f32 %v9016_v61, %v656_v13 }
 0x122   : > { %v2861_v34 = vshll.u32 %v2783_v58, 16  ;;  %v2865_v56 = vshrl.u32 %v2783_v58, 16  ;;  %v721_v5 = vmax.f32 %v689_v28, 0.0  ;;  %v9752_v27 = vrot.slane %v2888_v53, 4  ;;  %v1336_v28 = vld [vmem:[#allocation2 + $0x94] sm:$0xf] }
 0x123   : > { %v1963_v25 = vshll.u32 %v1879_v31, 16  ;;  %v12442_v26 = vsel %vm8976_vm3, %v8980_v48, %v9110_v59  ;;  %v12445_v33 = vsel %vm9000_vm7, %v9006_v57, %v9269_v29  ;;  %v12448_v53 = vsel %vm8976_vm3, %v9278_v0, %v8943_v19  ;;  %v2275_v13 = vld [vmem:[#allocation2 + $0x94] sm:$0xf]  ;;  %891 = vst [vmem:[#allocation2 + $0xd0] sm:$0xf] %v7540_v50 }
 0x124   : > { %vm9759_vm1 = vcmp.ne.s16.totalorder %v12442_v26, 0  ;;  %vm9768_vm2 = vcmp.ne.s16.totalorder %v12445_v33, 0  ;;  %vm9777_vm4 = vcmp.ne.s16.totalorder %v12448_v53, 0  ;;  %v1921_v38 = vsel %vm9000_vm7, %v9287_v30, %v1920_v21  ;;  %v1334_v50 = vld [vmem:[#allocation2 + $0x7c] sm:$0xf] }
 0x125   : > { %v12451_v29 = vshll.u32 %v9627_v22, 16  ;;  %v7538_v54 = vpack.c.bf16 %v721_v5, %v721_v5  ;;  %v726_v31 = vmax.f32 %v694_v20, 0.0  ;;  %v724_v58 = vmax.f32 %v692_v49, 0.0  ;;  %2233 = vst [vmem:[#allocation2 + $0x18] sm:$0xf] %v1921_v38 }
 0x126   : > { %v9789_v0 = vrot.slane %v1960_v3, 7  ;;  %v9791_v23 = vrot.slane %v2861_v34, 5  ;;  %v1884_v41 = vsel %vm9693_vm11, 0, %v1336_v28  ;;  %v2788_v30 = vsel %vm2755_vm12, 0, %v2275_v13  ;;  %v2273_v3 = vld [vmem:[#allocation2 + $0x7c] sm:$0xf] }
 0x127   : > { %v9787_v42 = vor.u32 %v12451_v29, %v9686_v18  ;;  %v9797_v22 = vrot.slane %v2865_v56, 4  ;;  %v2005_v21 = vshrl.u32 %v1884_v41, 16  ;;  %v2911_v26 = vshll.u32 %v2788_v30, 16  ;;  %889 = vst [vmem:[#allocation2 + $0xb8] sm:$0xf] %v7538_v54 }
 0x128   : > { %v2915_v33 = vshrl.u32 %v2788_v30, 16  ;;  %v1882_v5 = vsel %vm9710_vm13, 0, %v1334_v50  ;;  %v1337_v20 = vld [vmem:[#allocation2 + $0xa0] sm:$0xf]  ;;  %vm2759_vm5 = vcmp.ne.s16.totalorder %v9311_v6, 0  ;;  %v7543_v34 = vpack.c.bf16 %v726_v31, %v726_v31 }
 0x129   : > { %v7541_v36 = vpack.c.bf16 %v724_v58, %v724_v58  ;;  %v12452_v14 = vshll.u32 %v9554_v51, 16  ;;  %v2008_v56 = vshll.u32 %v1884_v41, 16  ;;  %v9807_v53 = vrot.slane %v2911_v26, 5  ;;  %v2276_v28 = vld [vmem:[#allocation2 + $0xa0] sm:$0xf] }
 0x12a   : > { %v2917_v38 = vrot.slane %v2915_v33, 4  ;;  %v1987_v29 = vshrl.u32 %v1882_v5, 16  ;;  %v2786_v52 = vsel %vm2753_vm14, 0, %v2273_v3  ;;  %v1885_v13 = vsel %vm9724_vm15, 0, %v1337_v20  ;;  %v12457_v58 = vld [vmem:[#allocation13_spill] sm:$0xff] }
 0x12b   : > { %v9805_v49 = vor.u32 %v12452_v14, %v9618_v12  ;;  %12453 = vst [vmem:[#allocation31_spill] sm:$0xff] %v9807_v53  ;;  %v2789_v54 = vsel %vm9733_vm0, 0, %v2276_v28  ;;  %v12454_v51 = vsel %vm8976_vm3, %v9284_v43, %v8943_v19  ;;  %vm2757_vm8 = vcmp.ne.s16.totalorder %v12457_v58, 0  ;;  %894 = vst [vmem:[#allocation2 + $0xf4] sm:$0xf] %v7543_v34  ;;  %v12488_v6 = vld [vmem:[#allocation17_spill] sm:$0xff] }
 0x12c   : > { %vm9820_vm6 = vcmp.ne.s16.totalorder %v12454_v51, 0  ;;  %892 = vst [vmem:[#allocation2 + $0xdc] sm:$0xf] %v7541_v36  ;;  %v9827_v9 = vor.u32 %v1963_v25, %v9789_v0  ;;  %v9831_v41 = vrot.slane %v2005_v21, 7  ;;  %v1990_v30 = vshll.u32 %v1882_v5, 16  ;;  %v12461_v21 = vld [vmem:[#allocation12_spill] sm:$0xff] }
 0x12d   : > { %v1335_v43 = vld [vmem:[#allocation2 + $0x88] sm:$0xf]  ;;  %v2918_v33 = vor.u32 %v2917_v38, %v9807_v53  ;;  %v2891_v50 = vshll.u32 %v2786_v52, 16  ;;  %v2895_v3 = vshrl.u32 %v2786_v52, 16  ;;  %v2014_v20 = vshrl.u32 %v1885_v13, 16  ;;  %v12465_v38 = vld [vmem:[#allocation16_spill] sm:$0xff] }
 0x12e   : > { %12458 = vst [vmem:[#allocation13_spill] sm:$0xff] %v9831_v41  ;;  %v2274_v26 = vld [vmem:[#allocation2 + $0x88] sm:$0xf]  ;;  %v1340_v34 = vld [vmem:[#allocation2 + $0xc4] sm:$0xf]  ;;  %v9835_v36 = vor.u32 %v2008_v56, %v9831_v41  ;;  %v9837_v14 = vrot.slane %v1987_v29, 7  ;;  %v12462_v5 = vsel %vm8976_vm3, %v8980_v48, %v12461_v21  ;;  %v12466_v52 = vsel %vm9000_vm7, %v9006_v57, %v12465_v38 }
 0x12f   : > { %v2017_v25 = vshll.u32 %v1885_v13, 16  ;;  %v2921_v28 = vshll.u32 %v2789_v54, 16  ;;  %vm9844_vm9 = vcmp.ne.s16.totalorder %v12462_v5, 0  ;;  %vm9853_vm10 = vcmp.ne.s16.totalorder %v12466_v52, 0  ;;  %v12469_v29 = vld [vmem:[#allocation11_spill] sm:$0xff] }
 0x130   : > { %12459 = vst [vmem:[#allocation32_spill] sm:$0xff] %v9835_v36  ;;  %12460 = vst [vmem:[#allocation33_spill] sm:$0xff] %v9837_v14  ;;  %v12470_v13 = vsel %vm8976_vm3, %v8980_v48, %v12469_v29  ;;  %v9866_v5 = vrot.slane %v2891_v50, 5  ;;  %v2897_v63 = vrot.slane %v2895_v3, 4  ;;  %v9868_v7 = vrot.slane %v2014_v20, 7 }
 0x131   : > { %vm9862_vm11 = vcmp.ne.s16.totalorder %v12470_v13, 0  ;;  %v2925_v32 = vshrl.u32 %v2789_v54, 16  ;;  %v9870_v38 = vrot.slane %v2921_v28, 5  ;;  %v1883_v52 = vsel %vm9759_vm1, 0, %v1335_v43  ;;  %v2279_v54 = vld [vmem:[#allocation2 + $0xc4] sm:$0xf] }
 0x132   : > { %12473 = vst [vmem:[#allocation12_spill] sm:$0xff] %v9868_v7  ;;  %v2787_v36 = vsel %vm9768_vm2, 0, %v2274_v26  ;;  %v9878_v29 = vsel %vm9777_vm4, 0, %v1340_v34  ;;  %v9881_v50 = vrot.slane %v2918_v33, 4  ;;  %v2898_v3 = vor.u32 %v2897_v63, %v9866_v5  ;;  %v1338_v34 = vld [vmem:[#allocation2 + $0xac] sm:$0xf] }
 0x133   : > { %12474 = vst [vmem:[#allocation16_spill] sm:$0xff] %v9878_v29  ;;  %v2927_v20 = vrot.slane %v2925_v32, 4  ;;  %v9885_v28 = vor.u32 %v1990_v30, %v9837_v14  ;;  %v1996_v11 = vshrl.u32 %v1883_v52, 16  ;;  %v2901_v43 = vshll.u32 %v2787_v36, 16  ;;  %v2277_v13 = vld [vmem:[#allocation2 + $0xac] sm:$0xf] }
 0x134   : > { %12475 = vst [vmem:[#allocation11_spill] sm:$0xff] %v9881_v50  ;;  %v2905_v53 = vshrl.u32 %v2787_v36, 16  ;;  %v9889_v59 = vor.u32 %v2017_v25, %v9868_v7  ;;  %v2041_v33 = vshrl.u32 %v9878_v29, 16  ;;  %v12478_v63 = vld [vmem:[#allocation14_spill] sm:$0xff]  ;;  %v9902_v36 = vrot.slane %v2898_v3, 4 }
 0x135   : > { %12476 = vst [vmem:[#allocation34_spill] sm:$0xff] %v9885_v28  ;;  %v2928_v26 = vor.u32 %v2927_v20, %v9870_v38  ;;  %v12479_v32 = vsel %vm9000_vm7, %v9006_v57, %v12478_v63  ;;  %v1999_v1 = vshll.u32 %v1883_v52, 16  ;;  %v2792_v20 = vsel %vm2759_vm5, 0, %v2279_v54  ;;  %v1341_v41 = vld [vmem:[#allocation2 + $0xd0] sm:$0xf]  ;;  %v12487_v52 = vld [vmem:[#allocation20_spill] sm:$0xff] }
 0x136   : > { %12477 = vst [vmem:[#allocation35_spill] sm:$0xff] %v9889_v59  ;;  %vm9898_vm12 = vcmp.ne.s16.totalorder %v12479_v32, 0  ;;  %v9907_v59 = vrot.slane %v1996_v11, 7  ;;  %v2951_v8 = vshll.u32 %v2792_v20, 16  ;;  %v2955_v48 = vshrl.u32 %v2792_v20, 16  ;;  %v12483_v32 = vld [vmem:[#allocation18_spill] sm:$0xff] }
 0x137   : > { %v2280_v63 = vld [vmem:[#allocation2 + $0xd0] sm:$0xf]  ;;  %v12484_v3 = vsel %vm8976_vm3, %v12483_v32, %v8943_v19  ;;  %vm2763_vm14 = vcmp.ne.s16.totalorder %v12487_v52, 0  ;;  %v12489_v54 = vsel %vm8976_vm3, %v12488_v6, %v8943_v19  ;;  %v9930_v14 = vrot.slane %v2901_v43, 5  ;;  %v1339_v29 = vld [vmem:[#allocation2 + $0xb8] sm:$0xf] }
 0x138   : > { %12482 = vst [vmem:[#allocation14_spill] sm:$0xff] %v9907_v59  ;;  %vm9915_vm13 = vcmp.ne.s16.totalorder %v12484_v3, 0  ;;  %vm9925_vm15 = vcmp.ne.s16.totalorder %v12489_v54, 0  ;;  %v12492_v20 = vld [vmem:[#allocation19_spill] sm:$0xff]  ;;  %v9932_v32 = vrot.slane %v2905_v53, 4  ;;  %v1886_v3 = vsel %vm9820_vm6, 0, %v1338_v34  ;;  %v9944_v53 = vpop.f32.mrf.mxu0 }
 0x139   : > { %vm2761_vm0 = vcmp.ne.s16.totalorder %v12492_v20, 0  ;;  %v2790_v25 = vsel %vm2757_vm8, 0, %v2277_v13  ;;  %v9938_v7 = vrot.slane %v2928_v26, 4  ;;  %v9940_v6 = vrot.slane %v2041_v33, 7  ;;  %v1344_v56 = vld [vmem:[#allocation2 + $0xf4] sm:$0xf] }
 0x13a   : > { %12493 = vst [vmem:[#allocation18_spill] sm:$0xff] %v9932_v32  ;;  %v9942_v54 = vrot.slane %v2951_v8, 5  ;;  %v2957_v19 = vrot.slane %v2955_v48, 4  ;;  %v2023_v18 = vshrl.u32 %v1886_v3, 16  ;;  %v2026_v28 = vshll.u32 %v1886_v3, 16 }
 0x13b   : > { %12494 = vst [vmem:[#allocation20_spill] sm:$0xff] %v9938_v7  ;;  %12495 = vst [vmem:[#allocation17_spill] sm:$0xff] %v9940_v6  ;;  %v2931_v43 = vshll.u32 %v2790_v25, 16  ;;  %v2935_v50 = vshrl.u32 %v2790_v25, 16  ;;  %v1889_v58 = vsel %vm9844_vm9, 0, %v1341_v41  ;;  %v2793_v13 = vsel %vm9853_vm10, 0, %v2280_v63 }
 0x13c   : > { %12496 = vst [vmem:[#allocation19_spill] sm:$0xff] %v9942_v54  ;;  %v2958_v31 = vor.u32 %v2957_v19, %v9942_v54  ;;  %v1887_v26 = vsel %vm9862_vm11, 0, %v1339_v29  ;;  %v9953_v8 = vrot.slane %v2023_v18, 7  ;;  %v2050_v34 = vshrl.u32 %v1889_v58, 16  ;;  %v2278_v25 = vld [vmem:[#allocation2 + $0xb8] sm:$0xf]  ;;  %v576_v54 = vpop.f32.mrf.mxu0 }
 0x13d   : > { %v9955_v48 = vrot.slane %v2931_v43, 5  ;;  %v2937_v33 = vrot.slane %v2935_v50, 4  ;;  %v9958_v3 = vor.u32 %v1999_v1, %v9907_v59  ;;  %v2961_v41 = vshll.u32 %v2793_v13, 16  ;;  %v2283_v63 = vld [vmem:[#allocation2 + $0xf4] sm:$0xf] }
 0x13e   : > { %v2965_v51 = vshrl.u32 %v2793_v13, 16  ;;  %v9963_v29 = vrot.slane %v2958_v31, 4  ;;  %v2053_v43 = vshll.u32 %v1889_v58, 16  ;;  %v1342_v50 = vld [vmem:[#allocation2 + $0xdc] sm:$0xf]  ;;  %v9966_v7 = vrot.slane %v2050_v34, 7 }
 0x13f   : > { %12497 = vst [vmem:[#allocation36_spill] sm:$0xff] %v9958_v3  ;;  %v2938_v18 = vor.u32 %v2937_v33, %v9955_v48  ;;  %v9968_v1 = vrot.slane %v2961_v41, 5  ;;  %v2032_v3 = vshrl.u32 %v1887_v26, 16  ;;  %v2281_v19 = vld [vmem:[#allocation2 + $0xdc] sm:$0xf]  ;;  %v9971_v13 = vor.u32 %v2026_v28, %v9953_v8  ;;  %v9976_v33 = vpop.f32.mrf.mxu0 }
 0x140   : > { %12498 = vst [vmem:[#allocation37_spill] sm:$0xff] %v9966_v7  ;;  %v2967_v59 = vrot.slane %v2965_v51, 4  ;;  %v2035_v21 = vshll.u32 %v1887_v26, 16  ;;  %v2791_v31 = vsel %vm9898_vm12, 0, %v2278_v25  ;;  %v9983_v51 = vsel %vm9915_vm13, 0, %v1344_v56 }
 0x141   : > { %v9979_v34 = vrot.slane %v2032_v3, 7  ;;  %v2941_v41 = vshll.u32 %v2791_v31, 16  ;;  %v2945_v6 = vshrl.u32 %v2791_v31, 16  ;;  %v2796_v28 = vsel %vm2763_vm14, 0, %v2283_v63 }
 0x142   : > { %v2968_v58 = vor.u32 %v2967_v59, %v9968_v1  ;;  %v9989_v26 = vsel %vm9925_vm15, 0, %v1342_v50  ;;  %v2794_v30 = vsel %vm2761_vm0, 0, %v2281_v19  ;;  %v9993_v25 = vrot.slane %v2938_v18, 4  ;;  %v10004_v50 = vpop.f32.mrf.mxu0 }
 0x143   : > { %12499 = vst [vmem:[#allocation38_spill] sm:$0xff] %v9979_v34  ;;  %v9996_v59 = vor.u32 %v2053_v43, %v9966_v7  ;;  %v9999_v57 = vrot.slane %v2941_v41, 5  ;;  %v10001_v56 = vrot.slane %v2945_v6, 4  ;;  %v2077_v52 = vshrl.u32 %v9983_v51, 16 }
 0x144   : > { %v2991_v63 = vshll.u32 %v2796_v28, 16  ;;  %v2995_v11 = vshrl.u32 %v2796_v28, 16  ;;  %v10006_v31 = vrot.slane %v2968_v58, 4  ;;  %v10009_v20 = vor.u32 %v2035_v21, %v9979_v34 }
 0x145   : > { %v2059_v19 = vshrl.u32 %v9989_v26, 16  ;;  %v2971_v18 = vshll.u32 %v2794_v30, 16  ;;  %v10012_v43 = vrot.slane %v2077_v52, 7  ;;  %v2975_v3 = vshrl.u32 %v2794_v30, 16 }
 0x146   : > { %v10014_v41 = vrot.slane %v2991_v63, 5  ;;  %v2997_v6 = vrot.slane %v2995_v11, 4  ;;  %v12501_v58 = vrot.slane %v9548_v46, 4  ;;  %v1931_v28 = vrot.slane %v9618_v12, 4  ;;  %v12502_v11 = vld [vmem:[#allocation22_spill] sm:$0xff]  ;;  %v10038_v46 = vpop.f32.mrf.mxu0 }
 0x147   : > { %v10017_v7 = vrot.slane %v2059_v19, 7  ;;  %v2948_v52 = vor.u32 %v10001_v56, %v9999_v57  ;;  %v10028_v34 = vrot.slane %v2971_v18, 5  ;;  %v10030_v30 = vrot.slane %v2975_v3, 4 }
 0x148   : > { %12500 = vst [vmem:[#allocation39_spill] sm:$0xff] %v10014_v41  ;;  %v1930_v21 = vsel %vm9000_vm7, %v12501_v58, %v9805_v49  ;;  %v2998_v63 = vor.u32 %v2997_v6, %v10014_v41  ;;  %v12503_v19 = vand.u32 15, %v12502_v11  ;;  %v2084_v12 = vrot.slane %v10012_v43, 4 }
 0x149   : > { %2234 = vst [vmem:[#allocation2 + $0x24] sm:$0xf] %v1930_v21  ;;  %v2062_v49 = vshll.u32 %v9989_v26, 16  ;;  %v1939_v18 = vsel %vm9000_vm7, %v1931_v28, %v9592_v2  ;;  %v12506_v3 = vrot.slane %v9518_v62, 4  ;;  %v2066_v58 = vrot.slane %v10017_v7, 4 }
 0x14a   : > { %vm10034_vm1 = vcmp.eq.s32.totalorder %v12503_v19, 15  ;;  %v2978_v21 = vor.u32 %v10030_v30, %v10028_v34  ;;  %2235 = vst [vmem:[#allocation2 + $0x30] sm:$0xf] %v1939_v18  ;;  %v2824_v11 = vsel %vm8976_vm3, %v9631_v10, %v9606_v40  ;;  %v12507_v2 = vor.u32 %v9612_v35, %v9606_v40  ;;  %v12510_v35 = vld [vmem:[#allocation27_spill] sm:$0xff] }
 0x14b   : > { %v1948_v6 = vsel %vm9000_vm7, %v12506_v3, %v9597_v24  ;;  %3167 = vst [vmem:[#allocation2 + $0x20] sm:$0xf] %v2824_v11  ;;  %v659_v62 = vmul.f32 %v9944_v53, %v9013_v60  ;;  %v657_v24 = vmul.f32 %v9013_v60, %v576_v54  ;;  %v12508_v19 = vrot.slane %v9578_v15, 4  ;;  %v10085_v54 = vpop.f32.mrf.mxu0  ;;  %vm2415_vm8 = vmpackc.low %vm10034_vm1, %vm10034_vm1 }
 0x14c   : > { %2236 = vst [vmem:[#allocation2 + $0x3c] sm:$0xf] %v1948_v6  ;;  %v2829_v28 = vrot.slane %v12507_v2, 4  ;;  %v12509_v3 = vrot.slane %v9620_v39, 4  ;;  %v10073_v40 = vrot.slane %v2998_v63, 4  ;;  %v2864_v15 = vsel %vm8976_vm3, %v9747_v45, %v9791_v23 }
 0x14d   : > { %v1957_v18 = vsel %vm9000_vm7, %v12508_v19, %v9642_v17  ;;  %v12511_v17 = vor.u32 %v9797_v22, %v9791_v23  ;;  %v693_v63 = vadd.f32 %v9016_v61, %v657_v24  ;;  %3171 = vst [vmem:[#allocation2 + $0x50] sm:$0xf] %v2864_v15  ;;  %v2884_v6 = vsel %vm8976_vm3, %v9670_v44, %v9680_v4  ;;  %v8459_v23 = vld [vmem:[%s12252_s3 + $0x38] sm:$0xff]   ;;  %v12515_v24 = vld [vmem:[#allocation34_spill] sm:$0xff]  ;;  %v12524_v15 = vld [vmem:[#allocation23_spill] sm:$0xff] }
 0x14e   : > { %v1966_v10 = vsel %vm9000_vm7, %v12509_v3, %v9827_v9  ;;  %v2834_v53 = vsel %vm8976_vm3, %v2829_v28, %v12510_v35  ;;  %2237 = vst [vmem:[#allocation2 + $0x48] sm:$0xf] %v1957_v18  ;;  %v695_v9 = vadd.f32 %v9016_v61, %v659_v62  ;;  %v2894_v45 = vsel %vm8976_vm3, %v9752_v27, %v9866_v5  ;;  %v10113_v5 = vpop.f32.mrf.mxu0  ;;  %v8457_v28 = vld [vmem:[#allocation2 + $0x1c] ss:$12 sps:$4 sm:$0xff]   ;;  %v12518_v3 = vld [vmem:[#allocation7_spill] sm:$0xff] }
 0x14f   : > { %2238 = vst [vmem:[#allocation2 + $0x54] sm:$0xf] %v1966_v10  ;;  %v2869_v39 = vrot.slane %v12511_v17, 4  ;;  %3168 = vst [vmem:[#allocation2 + $0x2c] sm:$0xf] %v2834_v53  ;;  %v1967_v11 = vrot.slane %v9789_v0, 4  ;;  %v2904_v27 = vsel %vm8976_vm3, %v9902_v36, %v9930_v14  ;;  %3637 = vmatprep.mubr.bf16.mxu1 %v8457_v28 }
 0x150   : > { %3173 = vst [vmem:[#allocation2 + $0x68] sm:$0xf] %v2884_v6  ;;  %3174 = vst [vmem:[#allocation2 + $0x74] sm:$0xf] %v2894_v45  ;;  %v12512_v44 = vrot.slane %v9614_v37, 4  ;;  %v12513_v0 = vld [vmem:[#allocation11_spill] sm:$0xff] }
 0x151   : > { %v2874_v22 = vsel %vm8976_vm3, %v2869_v39, %v9616_v16  ;;  %v8455_v2 = vld [vmem:[#allocation2 + $0x18] ss:$12 sps:$4 sm:$0xff]   ;;  %v727_v16 = vmax.f32 %v695_v9, 0.0  ;;  %3175 = vst [vmem:[#allocation2 + $0x80] sm:$0xf] %v2904_v27  ;;  %v2924_v37 = vsel %vm8976_vm3, %v12513_v0, %v9870_v38  ;;  %v12516_v36 = vld [vmem:[#allocation30_spill] sm:$0xff] }
 0x152   : > { %v1984_v4 = vsel %vm9000_vm7, %v12512_v44, %v9787_v42  ;;  %3172 = vst [vmem:[#allocation2 + $0x5c] sm:$0xf] %v2874_v22  ;;  %v12514_v42 = vld [vmem:[#allocation20_spill] sm:$0xff]  ;;  %v12517_v19 = vrot.slane %v12516_v36, 4  ;;  %v12519_v10 = vld [vmem:[#allocation21_spill] sm:$0xff]  ;;  %v725_v39 = vmax.f32 %v693_v63, 0.0  ;;  %3638 = vmatmul.mubr.bf16.vlgmr.msra.gmra.mxu1 %v8455_v2  ;;  %v2974_v2 = vsel %vm8976_vm3, %v10006_v31, %v10028_v34 }
 0x153   : > { %2240 = vst [vmem:[#allocation2 + $0x6c] sm:$0xf] %v1984_v4  ;;  %v2934_v62 = vsel %vm8976_vm3, %v12514_v42, %v9955_v48  ;;  %v12520_v35 = vsel %vm8976_vm3, %v12518_v3, %v12519_v10  ;;  %v12523_v38 = vld [vmem:[#allocation9_spill] sm:$0xff]  ;;  %v8466_v9 = vld [vmem:[%s12252_s3 + $0x70] sm:$0xff]   ;;  %v12529_v22 = vld [vmem:[#allocation18_spill] sm:$0xff]  ;;  %v7544_v36 = vpack.c.bf16 %v727_v16, %v727_v16  ;;  %7662 = vmatpush3.bf16.msra.mxu1 %v8459_v23  ;;  %v12553_v26 = vrot.slane %v9953_v8, 4 }
 0x154   : > { %v1993_v18 = vsel %vm9000_vm7, %v12517_v19, %v12515_v24  ;;  %vm10133_vm2 = vcmp.ne.s16.totalorder %v12520_v35, 0  ;;  %v12525_v48 = vsel %vm9000_vm7, %v12523_v38, %v12524_v15  ;;  %v12528_v6 = vld [vmem:[#allocation29_spill] sm:$0xff]  ;;  %v12530_v44 = vor.u32 %v12529_v22, %v9930_v14  ;;  %3177 = vst [vmem:[#allocation2 + $0x98] sm:$0xf] %v2924_v37  ;;  %3178 = vst [vmem:[#allocation2 + $0xa4] sm:$0xf] %v2934_v62  ;;  %v10202_v15 = vpop.f32.mrf.mxu0 }
 0x155   : > { %vm10142_vm4 = vcmp.ne.s16.totalorder %v12525_v48, 0  ;;  %v1975_v45 = vsel %vm9000_vm7, %v1967_v11, %v12528_v6  ;;  %v12531_v27 = vld [vmem:[#allocation36_spill] sm:$0xff]  ;;  %v12532_v0 = vld [vmem:[#allocation33_spill] sm:$0xff]  ;;  %2241 = vst [vmem:[#allocation2 + $0x78] sm:$0xf] %v1993_v18  ;;  %v2944_v14 = vsel %vm8976_vm3, %v9993_v25, %v9999_v57  ;;  %v2949_v11 = vrot.slane %v2948_v52, 4  ;;  %7663 = vmatprep.subr.bf16.mxu1 %v8466_v9 }
 0x156   : > { %v2909_v4 = vrot.slane %v12530_v44, 4  ;;  %v12533_v42 = vrot.slane %v12532_v0, 4  ;;  %v10160_v24 = vld [vmem:[#allocation2 + $0x34] ss:$12 sps:$4 sm:$0xff]   ;;  %2239 = vst [vmem:[#allocation2 + $0x60] sm:$0xf] %v1975_v45  ;;  %v2964_v37 = vsel %vm8976_vm3, %v9963_v29, %v9968_v1  ;;  %v7542_v28 = vpack.c.bf16 %v725_v39, %v725_v39 }
 0x157   : > { %v12534_v16 = vld [vmem:[#allocation15_spill] sm:$0xff]  ;;  %v12538_v25 = vld [vmem:[#allocation10_spill] sm:$0xff]  ;;  %3179 = vst [vmem:[#allocation2 + $0xb0] sm:$0xf] %v2944_v14  ;;  %3181 = vst [vmem:[#allocation2 + $0xc8] sm:$0xf] %v2964_v37  ;;  %3645 = vmatprep.mubr.bf16.mxu1 %v10160_v24  ;;  %v662_v0 = vmul.f32 %v9976_v33, %v9013_v60  ;;  %v2064_v14 = vor.u32 %v2062_v49, %v10017_v7  ;;  %v2038_v49 = vsel %vm9000_vm7, %v12553_v26, %v10009_v20 }
 0x158   : > { %v2002_v63 = vsel %vm9000_vm7, %v12533_v42, %v12531_v27  ;;  %v12535_v62 = vsel %vm8976_vm3, %v12518_v3, %v12534_v16  ;;  %v12539_v57 = vsel %vm9000_vm7, %v12523_v38, %v12538_v25  ;;  %v8468_v29 = vld [vmem:[%s12252_s3 + $0x30] sm:$0xff]   ;;  %v12543_v18 = vld [vmem:[#allocation14_spill] sm:$0xff]  ;;  %v10205_v48 = vld [vmem:[#allocation2 + $0x38] ss:$12 sps:$4 sm:$0xff]   ;;  %895 = vst [vmem:[#allocation2 + $0x100] sm:$0xf] %v7544_v36  ;;  %v661_v8 = vmul.f32 %v9013_v60, %v10085_v54 }
 0x159   : > { %2242 = vst [vmem:[#allocation2 + $0x84] sm:$0xf] %v2002_v63  ;;  %vm10178_vm5 = vcmp.ne.s16.totalorder %v12535_v62, 0  ;;  %vm10187_vm6 = vcmp.ne.s16.totalorder %v12539_v57, 0  ;;  %v12542_v1 = vld [vmem:[#allocation31_spill] sm:$0xff]  ;;  %v2003_v35 = vrot.slane %v12543_v18, 4  ;;  %v698_v57 = vadd.f32 %v9016_v61, %v662_v0  ;;  %7664 = vmatpush3.bf16.msra.mxu1 %v8468_v29 }
 0x15a   : > { %v2914_v52 = vsel %vm8976_vm3, %v2909_v4, %v12542_v1  ;;  %v10210_v39 = vld [vmem:[%s12252_s3 + $0xb0] sm:$0xff]   ;;  %v8475_v31 = vld [vmem:[%s12252_s3 + $0x68] sm:$0xff]   ;;  %3182 = vst [vmem:[#allocation2 + $0xd4] sm:$0xf] %v2974_v2  ;;  %v12546_v44 = vld [vmem:[#allocation13_spill] sm:$0xff]  ;;  %v660_v1 = vmul.f32 %v9013_v60, %v10004_v50  ;;  %v664_v32 = vmul.f32 %v9013_v60, %v10202_v15 }
 0x15b   : > { %v3214_v6 = vld [vmem:[#allocation2 + $0x54] sm:$0xff]  ;;  %3176 = vst [vmem:[#allocation2 + $0x8c] sm:$0xf] %v2914_v52  ;;  %v12547_v4 = vrot.slane %v12546_v44, 4  ;;  %893 = vst [vmem:[#allocation2 + $0xe8] sm:$0xf] %v7542_v28  ;;  %v8136_v44 = vpop.f32.mrf.mxu0  ;;  %7665 = vmatprep.subr.bf16.mxu1 %v8475_v31 }
 0x15c   : > { %v12544_v45 = vld [vmem:[#allocation19_spill] sm:$0xff]  ;;  %v12548_v42 = vld [vmem:[#allocation24_spill] sm:$0xff]  ;;  %v3212_v28 = vld [vmem:[#allocation2 + $0x48] sm:$0xff]  ;;  %2246 = vst [vmem:[#allocation2 + $0xb4] sm:$0xf] %v2038_v49  ;;  %v696_v0 = vadd.f32 %v9016_v61, %v660_v1 }
 0x15d   : > { %v2954_v23 = vsel %vm8976_vm3, %v2949_v11, %v12544_v45  ;;  %v12545_v22 = vld [vmem:[#allocation35_spill] sm:$0xff]  ;;  %v12549_v63 = vshll.u32 %v12548_v42, 16  ;;  %v10235_v11 = vld [vmem:[#allocation2 + $0x20] ss:$12 sps:$4 sm:$0xff]   ;;  %v12550_v37 = vld [vmem:[#allocation32_spill] sm:$0xff] }
 0x15e   : > { %v2020_v27 = vsel %vm9000_vm7, %v12547_v4, %v12545_v22  ;;  %3180 = vst [vmem:[#allocation2 + $0xbc] sm:$0xf] %v2954_v23  ;;  %v2011_v33 = vsel %vm9000_vm7, %v2003_v35, %v12550_v37  ;;  %v12551_v16 = vld [vmem:[#allocation12_spill] sm:$0xff]  ;;  %v8476_v9 = vld [vmem:[%s12252_s3 + $0x28] sm:$0xff]   ;;  %v12554_v20 = vld [vmem:[#allocation17_spill] sm:$0xff]  ;;  %v12557_v35 = vshll.u32 %v9983_v51, 16  ;;  %8157 = vmatprep.mubr.bf16.mxu0 %v10235_v11 }
 0x15f   : > { %v10227_v36 = vrot.slane %v12549_v63, 5  ;;  %2244 = vst [vmem:[#allocation2 + $0x9c] sm:$0xf] %v2020_v27  ;;  %v12552_v62 = vrot.slane %v12551_v16, 4  ;;  %2243 = vst [vmem:[#allocation2 + $0x90] sm:$0xf] %v2011_v33  ;;  %8158 = vmatmul.mubr.bf16.vlgmr.msra.gmra.mxu0 %v10205_v48  ;;  %v10291_v27 = vcombine.low %v3212_v28, %v3214_v6  ;;  %7666 = vmatpush3.bf16.msra.mxu1 %v8476_v9 }
 0x160   : > { %v12555_v52 = vld [vmem:[#allocation16_spill] sm:$0xff]  ;;  %v10268_v45 = vor.u32 %v12557_v35, %v10012_v43  ;;  %v8483_v50 = vld [vmem:[%s12252_s3 + $0x60] sm:$0xff]   ;;  %v12559_v22 = vrot.slane %v12554_v20, 4  ;;  %v10289_v4 = vld [vmem:[%s12252_s3 + $0xa8] sm:$0xff]   ;;  %v730_v6 = vmax.f32 %v698_v57, 0.0  ;;  %v666_v35 = vmul.f32 %v10113_v5, %v9013_v60 }
 0x161   : > { %v2029_v25 = vsel %vm9000_vm7, %v12552_v62, %v9971_v13  ;;  %v663_v13 = vmul.f32 %v10038_v46, %v9013_v60  ;;  %v12556_v2 = vshll.u32 %v12555_v52, 16  ;;  %v10271_v23 = vld [vmem:[#allocation2 + $0x50] ss:$12 sps:$4 sm:$0xff]   ;;  %v12558_v46 = vshrl.u32 %v12548_v42, 16  ;;  %v10303_v63 = vld [vmem:[#allocation2 + $0x4c] ss:$12 sps:$4 sm:$0xff]   ;;  %7667 = vmatprep.subr.bf16.mxu1 %v8483_v50 }
 0x162   : > { %2245 = vst [vmem:[#allocation2 + $0xa8] sm:$0xf] %v2029_v25  ;;  %v2056_v51 = vsel %vm9000_vm7, %v12559_v22, %v9996_v59  ;;  %v8698_v59 = vld [vmem:[%s12252_s3 + $0xb8] sm:$0xff]   ;;  %8161 = vmatprep.mubr.bf16.mxu0 %v10271_v23  ;;  %v10309_v33 = vld [vmem:[#allocation2] sm:$0xff]  ;;  %v10318_v49 = vld [vmem:[#allocation2 + $0x68] ss:$12 sps:$4 sm:$0xff]   ;;  %v7547_v52 = vpack.c.bf16 %v730_v6, %v730_v6 }
 0x163   : > { %v10263_v18 = vor.u32 %v12556_v2, %v12554_v20  ;;  %v10278_v54 = vrot.slane %v12558_v46, 4  ;;  %2248 = vst [vmem:[#allocation2 + $0xcc] sm:$0xf] %v2056_v51  ;;  %8174 = vmatpush3.bf16.msra.mxu0 %v8698_v59  ;;  %v10301_v29 = vld [vmem:[#allocation2 + $0x30] ss:$12 sps:$4 sm:$0xff]   ;;  %v10307_v37 = vadd.f32 %v9016_v61, %v663_v13  ;;  %v12560_v62 = vld [vmem:[#allocation37_spill] sm:$0xff]  ;;  %v10334_v13 = vadd.f32 %v9016_v61, %v661_v8  ;;  %v608_v46 = vpop.f32.mrf.mxu0 }
 0x164   : > { %v12561_v25 = vrot.slane %v12560_v62, 4  ;;  %8175 = vmatprep.subr.bf16.mxu0 %v10210_v39  ;;  %v8485_v28 = vld [vmem:[%s12252_s3 + $0x20] sm:$0xff]   ;;  %v10331_v1 = vsel %vm2415_vm8, 65537, %v10309_v33  ;;  %3646 = vmatmul.mubr.bf16.gmra.mxu1 %v10301_v29  ;;  %v1343_v22 = vld [vmem:[#allocation2 + $0xe8] sm:$0xf]  ;;  %v667_v59 = vmul.f32 %v8136_v44, %v9013_v60  ;;  %v665_v50 = vmul.f32 %v9013_v60, %v608_v46  ;;  %v8501_v46 = vld [vmem:[%s12252_s3 + $0x50] sm:$0xff]  }
 0x165   : > { %v1748_v57 = vor.u32 %v10278_v54, %v10227_v36  ;;  %v1345_v31 = vld [vmem:[#allocation2 + $0x100] sm:$0xf]  ;;  %v2282_v51 = vld [vmem:[#allocation2 + $0xe8] sm:$0xf]  ;;  %3653 = vmatprep.mubr.bf16.mxu1 %v10303_v63  ;;  %898 = vst [vmem:[#allocation2 + $0x124] sm:$0xf] %v7547_v52  ;;  %v8139_v53 = vpop.f32.mrf.mxu0  ;;  %7668 = vmatpush3.bf16.msra.mxu1 %v8485_v28 }
 0x166   : > { %v2065_v26 = vsel %vm9000_vm7, %v12561_v25, %v2064_v14  ;;  %v728_v14 = vmax.f32 %v696_v0, 0.0  ;;  %v2284_v20 = vld [vmem:[#allocation2 + $0x100] sm:$0xf]  ;;  %v1893_v8 = vsel %vm10133_vm2, 0, %v1345_v31  ;;  %v1891_v17 = vsel %vm10178_vm5, 0, %v1343_v22  ;;  %v8481_v34 = vld [vmem:[%s12252_s3 + $0x98] sm:$0xff]  }
 0x167   : > { %2249 = vst [vmem:[#allocation2 + $0xd8] sm:$0xf] %v2065_v26  ;;  %v2797_v54 = vsel %vm10142_vm4, 0, %v2284_v20  ;;  %v2086_v6 = vshrl.u32 %v1893_v8, 16  ;;  %v2089_v5 = vshll.u32 %v1893_v8, 16  ;;  %8176 = vmatpush3.bf16.msra.mxu0 %v10210_v39  ;;  %v2795_v9 = vsel %vm10187_vm6, 0, %v2282_v51 }
 0x168   : > { %v7545_v0 = vpack.c.bf16 %v728_v14, %v728_v14  ;;  %v3001_v62 = vshll.u32 %v2797_v54, 16  ;;  %v3005_v25 = vshrl.u32 %v2797_v54, 16  ;;  %v10350_v15 = vld [vmem:[#allocation2 + $0x80] ss:$12 sps:$4 sm:$0xff]   ;;  %8177 = vmatprep.subr.bf16.mxu0 %v10289_v4  ;;  %v8492_v39 = vld [vmem:[%s12252_s3 + $0x58] sm:$0xff]   ;;  %v670_v26 = vmul.f32 %v8139_v53, %v9013_v60  ;;  %8162 = vmatmul.mubr.bf16.gmra.mxu0 %v10318_v49 }
 0x169   : > { %v8474_v44 = vld [vmem:[%s12252_s3 + $0xa0] sm:$0xff]   ;;  %v10365_v19 = vrot.slane %v2086_v6, 7  ;;  %v2068_v31 = vshrl.u32 %v1891_v17, 16  ;;  %v2071_v20 = vshll.u32 %v1891_v17, 16  ;;  %v2981_v52 = vshll.u32 %v2795_v9, 16  ;;  %v8494_v54 = vld [vmem:[%s12252_s3 + $0x18] sm:$0xff]   ;;  %8165 = vmatprep.mubr.bf16.mxu0 %v10350_v15  ;;  %7669 = vmatprep.subr.bf16.mxu1 %v8492_v39 }
 0x16a   : > { %896 = vst [vmem:[#allocation2 + $0x10c] sm:$0xf] %v7545_v0  ;;  %v3003_v14 = vrot.slane %v3001_v62, 5  ;;  %v3007_v56 = vrot.slane %v3005_v25, 4  ;;  %v2985_v8 = vshrl.u32 %v2795_v9, 16  ;;  %v10375_v22 = vadd.f32 %v9016_v61, %v666_v35  ;;  %v8504_v25 = vld [vmem:[%s12252_s3 + $0x10] sm:$0xff]   ;;  %7670 = vmatpush3.bf16.msra.mxu1 %v8494_v54 }
 0x16b   : > { %v10380_v51 = vrot.slane %v2978_v21, 4  ;;  %v2091_v0 = vor.u32 %v2089_v5, %v10365_v19  ;;  %8178 = vmatpush3.bf16.msra.mxu0 %v10289_v4  ;;  %v10388_v62 = vrot.slane %v2068_v31, 7  ;;  %v10390_v35 = vld [vmem:[#allocation2 + $0x64] ss:$12 sps:$4 sm:$0xff]   ;;  %v1749_v30 = vrot.slane %v1748_v57, 4  ;;  %7671 = vmatprep.subr.bf16.mxu1 %v8501_v46  ;;  %v8513_v7 = vld [vmem:[%s12252_s3 + $0x8] sm:$0xff]  }
 0x16c   : > { %v3004_v28 = vsel %vm8976_vm3, %v10073_v40, %v3003_v14  ;;  %v3008_v6 = vor.u32 %v3007_v56, %v3003_v14  ;;  %8179 = vmatprep.subr.bf16.mxu0 %v8474_v44  ;;  %12563 = vst [vmem:[#allocation27_spill] sm:$0xff] %v10390_v35  ;;  %v10396_v21 = vadd.f32 %v9016_v61, %v664_v32  ;;  %v10401_v4 = vrot.slane %v2981_v52, 5  ;;  %v621_v32 = vpop.f32.mrf.mxu0  ;;  %v10416_v17 = vld [vmem:[#allocation2 + $0x98] ss:$12 sps:$4 sm:$0xff]   ;;  %v10418_v9 = vld [vmem:[#allocation2 + $0xb0] ss:$12 sps:$4 sm:$0xff]  }
 0x16d   : > { %12562 = vst [vmem:[#allocation22_spill] sm:$0xff] %v10380_v51  ;;  %3185 = vst [vmem:[#allocation2 + $0xf8] sm:$0xf] %v3004_v28  ;;  %v10399_v40 = vadd.f32 %v9016_v61, %v667_v59  ;;  %v10403_v5 = vrot.slane %v2985_v8, 4  ;;  %3654 = vmatmul.mubr.bf16.gmra.mxu1 %v10291_v27  ;;  %v2647_v53 = vshrl.u32 %v10331_v1, 16  ;;  %v2092_v57 = vsel %vm9000_vm7, %v2084_v12, %v2091_v0  ;;  %v12566_v14 = vld [vmem:[#allocation6_spill] sm:$0xff] }
 0x16e   : > { %12564 = vst [vmem:[#allocation11_spill] sm:$0xff] %v10401_v4  ;;  %v2073_v59 = vor.u32 %v2071_v20, %v10388_v62  ;;  %3661 = vmatprep.mubr.bf16.mxu1 %v10390_v35  ;;  %v1348_v39 = vld [vmem:[#allocation2 + $0x124] sm:$0xf]  ;;  %v1754_v56 = vsel %vm8976_vm3, %v1749_v30, %v12566_v14  ;;  %v10424_v43 = vadd.f32 %v9016_v61, %v665_v50  ;;  %2252 = vst [vmem:[#allocation2 + $0xfc] sm:$0xf] %v2092_v57  ;;  %v8482_v52 = vld [vmem:[%s12252_s3 + $0x90] sm:$0xff]  }
 0x16f   : > { %12565 = vst [vmem:[#allocation20_spill] sm:$0xff] %v10403_v5  ;;  %v10427_v31 = vrot.slane %v3008_v6, 4  ;;  %8180 = vmatpush3.bf16.msra.mxu0 %v8474_v44  ;;  %vm1863_vm9 = vcmp.ne.s16.totalorder %v1754_v56, 0  ;;  %v10429_v20 = vrot.slane %v2647_v53, 7  ;;  %v12567_v54 = vld [vmem:[#allocation25_spill] sm:$0xff]  ;;  %v8510_v44 = vld [vmem:[%s12252_s3 + $0x48] sm:$0xff]   ;;  %v10447_v6 = vadd.f32 %v9016_v61, %v670_v26  ;;  %7672 = vmatpush3.bf16.msra.mxu1 %v8504_v25 }
 0x170   : > { %8181 = vmatprep.subr.bf16.mxu0 %v8481_v34  ;;  %v10434_v8 = vsel %vm1863_vm9, 0, %v1348_v39  ;;  %v12568_v50 = vor.u32 %v12567_v54, %v12519_v10  ;;  %v2074_v46 = vsel %vm9000_vm7, %v2066_v58, %v2073_v59  ;;  %v10451_v53 = vld [vmem:[#allocation2 + $0x60] ss:$12 sps:$4 sm:$0xff]   ;;  %v12570_v56 = vld [vmem:[#allocation28_spill] sm:$0xff]  ;;  %v8140_v58 = vpop.f32.mrf.mxu0  ;;  %8166 = vmatmul.mubr.bf16.gmra.mxu0 %v10416_v17  ;;  %v2287_v59 = vld [vmem:[#allocation2 + $0x124] sm:$0xf] }
 0x171   : > { %v2285_v28 = vld [vmem:[#allocation2 + $0x10c] sm:$0xf]  ;;  %12569 = vst [vmem:[#allocation34_spill] sm:$0xff] %v10451_v53  ;;  %v2113_v10 = vshrl.u32 %v10434_v8, 16  ;;  %v2654_v57 = vrot.slane %v10429_v20, 4  ;;  %vm2765_vm10 = vcmp.ne.s16.totalorder %v12570_v56, 0  ;;  %v10467_v56 = vmul.f32 %v9013_v60, %v621_v32  ;;  %8169 = vmatprep.mubr.bf16.mxu0 %v10418_v9  ;;  %7673 = vmatprep.subr.bf16.mxu1 %v8510_v44 }
 0x172   : > { %v1729_v0 = vrot.slane %v12568_v50, 4  ;;  %v1346_v39 = vld [vmem:[#allocation2 + $0x10c] sm:$0xf]  ;;  %2250 = vst [vmem:[#allocation2 + $0xe4] sm:$0xf] %v2074_v46  ;;  %v2798_v50 = vsel %vm2765_vm10, 0, %v2285_v28  ;;  %v624_v35 = vpop.f32.mrf.mxu0 }
 0x173   : > { %v10460_v26 = vld [vmem:[#allocation2 + $0x7c] ss:$12 sps:$4 sm:$0xff]   ;;  %v731_v30 = vmax.f32 %v10307_v37, 0.0  ;;  %8182 = vmatpush3.bf16.msra.mxu0 %v8481_v34  ;;  %v3011_v25 = vshll.u32 %v2798_v50, 16  ;;  %v12573_v12 = vld [vmem:[#allocation3_spill] sm:$0xff]  ;;  %v3015_v28 = vshrl.u32 %v2798_v50, 16  ;;  %7674 = vmatpush3.bf16.msra.mxu1 %v8513_v7 }
 0x174   : > { %12571 = vst [vmem:[#allocation30_spill] sm:$0xff] %v10460_v26  ;;  %v1734_v54 = vsel %vm8976_vm3, %v1729_v0, %v12566_v14  ;;  %v12572_v46 = vld [vmem:[#allocation8_spill] sm:$0xff]  ;;  %v933_v2 = vadd.s32 192, %v12573_v12  ;;  %v8519_v0 = vld [vmem:[%s12252_s3 + $0x40] sm:$0xff]   ;;  %8183 = vmatprep.subr.bf16.mxu0 %v8482_v52  ;;  %v8489_v37 = vld [vmem:[#allocation2 + $0xc8] ss:$12 sps:$4 sm:$0xff]  }
 0x175   : > { %v2662_v16 = vsel %vm9000_vm7, %v2654_v57, %v12572_v46  ;;  %vm1861_vm11 = vcmp.ne.s16.totalorder %v1734_v54, 0  ;;  %v8490_v34 = vld [vmem:[%s12252_s3 + $0x88] sm:$0xff]   ;;  %v7548_v42 = vpack.c.bf16 %v731_v30, %v731_v30  ;;  %3662 = vmatmul.mubr.bf16.gmra.mxu1 %v10451_v53  ;;  %v10481_v54 = vrot.slane %v2113_v10, 7  ;;  %v8522_v4 = vld [vmem:[%s12252_s3] sm:$0xff]   ;;  %7675 = vmatprep.subr.bf16.mxu1 %v8519_v0  ;;  %v8556_v47 = vld [vmem:[#allocation2 + $0x50] ss:$12 sps:$4 sm:$0xff]  }
 0x176   : > { %vm2767_vm12 = vcmp.ne.s16.totalorder %v2662_v16, 0  ;;  %v1894_v32 = vsel %vm1861_vm11, 0, %v1346_v39  ;;  %v8497_v57 = vld [vmem:[#allocation2 + $0x8] ss:$12 sps:$4 sm:$0xff]   ;;  %v2116_v41 = vshll.u32 %v10434_v8, 16  ;;  %3669 = vmatprep.mubr.bf16.mxu1 %v10460_v26  ;;  %v10488_v44 = vrot.slane %v3011_v25, 5 }
 0x177   : > { %v2800_v5 = vsel %vm2767_vm12, 0, %v2287_v59  ;;  %v2095_v51 = vshrl.u32 %v1894_v32, 16  ;;  %v2098_v30 = vshll.u32 %v1894_v32, 16  ;;  %899 = vst [vmem:[#allocation2 + $0x130] sm:$0xf] %v7548_v42  ;;  %8184 = vmatpush3.bf16.msra.mxu0 %v8482_v52  ;;  %v10492_v8 = vrot.slane %v3015_v28, 4  ;;  %7676 = vmatpush3.bf16.msra.mxu1 %v8522_v4 }
 0x178   : > { %v3031_v16 = vshll.u32 %v2800_v5, 16  ;;  %v3035_v39 = vshrl.u32 %v2800_v5, 16  ;;  %v12574_v59 = vld [vmem:[#allocation26_spill] sm:$0xff]  ;;  %v1113_v53 = vand.u32 15, %v933_v2  ;;  %8185 = vmatprep.subr.bf16.mxu0 %v8490_v34  ;;  %v8491_v26 = vld [vmem:[%s12252_s3 + $0x80] sm:$0xff]   ;;  %v3014_v42 = vsel %vm8976_vm3, %v10427_v31, %v10488_v44  ;;  %8170 = vmatmul.mubr.bf16.gmra.mxu0 %v8489_v37 }
 0x179   : > { %v10490_v10 = vrot.slane %v2095_v51, 7  ;;  %v1106_v50 = vand.u32 15, %v12574_v59  ;;  %v729_v5 = vmax.f32 %v10334_v13, 0.0  ;;  %v10506_v51 = vld [vmem:[%s12252_s3 + $0x238] sm:$0xff]   ;;  %v10509_v2 = vmul.f32 %v8140_v58, %v9013_v60  ;;  %3186 = vst [vmem:[#allocation2 + $0x104] sm:$0xf] %v3014_v42  ;;  %8189 = vmatprep.mubr.bf16.mxu0 %v8497_v57 }
 0x17a   : > { %v10512_v52 = vmul.f32 %v9013_v60, %v624_v35  ;;  %v10514_v7 = vld [vmem:[#allocation2 + $0x78] ss:$12 sps:$4 sm:$0xff]   ;;  %v10517_v0 = vrot.slane %v3031_v16, 5  ;;  %v3018_v13 = vor.u32 %v10492_v8, %v10488_v44  ;;  %vm1382_vm13 = vcmp.eq.s32.totalorder %v1113_v53, 0  ;;  %v10530_v32 = vld [vmem:[#allocation2 + $0x94] ss:$12 sps:$4 sm:$0xff]   ;;  %8205 = vmatprep.subr.bf16.mxu1 %v10506_v51 }
 0x17b   : > { %v10522_v31 = vor.u32 %v2116_v41, %v10481_v54  ;;  %v10524_v58 = vrot.slane %v3035_v39, 4  ;;  %vm1478_vm14 = vmpackc.low %vm1382_vm13, %vm1382_vm13  ;;  %vm10526_vm15 = vcmp.eq.s32.totalorder %v1106_v50, 15  ;;  %v7546_v35 = vpack.c.bf16 %v729_v5, %v729_v5  ;;  %8186 = vmatpush3.bf16.msra.mxu0 %v8490_v34  ;;  %v8498_v53 = vld [vmem:[%s12252_s3 + $0x1f8] sm:$0xff]   ;;  %v12578_v4 = vld [vmem:[#allocation38_spill] sm:$0xff] }
 0x17c   : > { %12575 = vst [vmem:[#allocation7_spill] sm:$0xff] %v10517_v0  ;;  %v10536_v41 = vor.u32 %v2098_v30, %v10490_v10  ;;  %v1510_v37 = vsel %vm1478_vm14, 65537, %v10309_v33  ;;  %vm2417_vm0 = vmpackc.low %vm10526_vm15, %vm10526_vm15  ;;  %v2650_v28 = vshll.u32 %v10331_v1, 16  ;;  %v2039_v34 = vrot.slane %v12578_v4, 4  ;;  %8187 = vmatprep.subr.bf16.mxu0 %v8491_v26  ;;  %v8500_v4 = vld [vmem:[%s12252_s3 + $0x1f0] sm:$0xff]   ;;  %v8516_v57 = vld [vmem:[%s12252_s3 + $0x1d8] sm:$0xff]  }
 0x17d   : > { %v1761_v16 = vshll.u32 %v1510_v37, 16  ;;  %v1765_v39 = vshrl.u32 %v1510_v37, 16  ;;  %v2449_v44 = vsel %vm2417_vm0, 65537, %v10309_v33  ;;  %897 = vst [vmem:[#allocation2 + $0x118] sm:$0xf] %v7546_v35  ;;  %3670 = vmatmul.mubr.bf16.gmra.mxu1 %v10514_v7  ;;  %v734_v42 = vmax.f32 %v10375_v22, 0.0 }
 0x17e   : > { %v2665_v30 = vshrl.u32 %v2449_v44, 16  ;;  %v2668_v8 = vshll.u32 %v2449_v44, 16  ;;  %v2652_v59 = vor.u32 %v2650_v28, %v10429_v20  ;;  %v2047_v1 = vsel %vm9000_vm7, %v2039_v34, %v10263_v18  ;;  %3677 = vmatprep.mubr.bf16.mxu1 %v10530_v32  ;;  %v8499_v20 = vld [vmem:[%s12252_s3 + $0x1b8] sm:$0xff]   ;;  %v1349_v35 = vld [vmem:[#allocation2 + $0x130] sm:$0xf] }
 0x17f   : > { %v10553_v50 = vrot.slane %v1761_v16, 5  ;;  %2247 = vst [vmem:[#allocation2 + $0xc0] sm:$0xf] %v2047_v1  ;;  %v934_v5 = vadd.s32 200, %v12573_v12  ;;  %v935_v60 = vadd.s32 208, %v12573_v12  ;;  %8188 = vmatpush3.bf16.msra.mxu0 %v8491_v26  ;;  %v12579_v18 = vsel %vm8976_vm3, %v12518_v3, %v10227_v36 }
 0x180   : > { %v10561_v37 = vrot.slane %v2665_v30, 7  ;;  %vm10568_vm1 = vcmp.ne.s16.totalorder %v12579_v18, 0  ;;  %v2653_v22 = vsel %vm9000_vm7, %v12523_v38, %v2652_v59  ;;  %v732_v26 = vmax.f32 %v10396_v21, 0.0  ;;  %7741 = vmatprep.subr.bf16.mxu0 %v8498_v53  ;;  %v8502_v21 = vld [vmem:[%s12252_s3 + $0x1b0] sm:$0xff]  }
 0x181   : > { %v1764_v36 = vsel %vm8976_vm3, %v12518_v3, %v10553_v50  ;;  %vm10583_vm2 = vcmp.ne.s16.totalorder %v2653_v22, 0  ;;  %v7551_v16 = vpack.c.bf16 %v734_v42, %v734_v42  ;;  %v1120_v44 = vand.u32 15, %v934_v5  ;;  %v10590_v53 = vld [vmem:[#allocation2 + $0x90] ss:$12 sps:$4 sm:$0xff]   ;;  %v10594_v22 = vld [vmem:[#allocation2 + $0xac] ss:$12 sps:$4 sm:$0xff]  }
 0x182   : > { %12584 = vst [vmem:[#allocation21_spill] sm:$0xff] %v10590_v53  ;;  %vm1864_vm4 = vcmp.ne.s16.totalorder %v1764_v36, 0  ;;  %v2288_v30 = vld [vmem:[#allocation2 + $0x130] sm:$0xf]  ;;  %v2670_v59 = vor.u32 %v2668_v8, %v10561_v37  ;;  %v1127_v1 = vand.u32 15, %v935_v60  ;;  %v7549_v18 = vpack.c.bf16 %v732_v26, %v732_v26  ;;  %8190 = vmatmul.mubr.bf16.vlgmr.msra.gmra.mxu0 %v10235_v11  ;;  %12585 = vst [vmem:[#allocation9_spill] sm:$0xff] %v10594_v22 }
 0x183   : > { %v8507_v42 = vld [vmem:[%s12252_s3 + $0x1e8] sm:$0xff]   ;;  %v10599_v5 = vrot.slane %v3018_v13, 4  ;;  %v1897_v25 = vsel %vm1864_vm4, 0, %v1349_v35  ;;  %902 = vst [vmem:[#allocation2 + $0x154] sm:$0xf] %v7551_v16  ;;  %vm10601_vm5 = vcmp.eq.s32.totalorder %v1120_v44, 15  ;;  %8193 = vmatprep.mubr.bf16.mxu0 %v10205_v48  ;;  %7742 = vmatpush3.bf16.msra.mxu0 %v8499_v20  ;;  %v3038_v11 = vor.u32 %v10524_v58, %v10517_v0 }
 0x184   : > { %v1767_v36 = vrot.slane %v1765_v39, 4  ;;  %v2122_v8 = vshrl.u32 %v1897_v25, 16  ;;  %v2125_v60 = vshll.u32 %v1897_v25, 16  ;;  %v2671_v13 = vsel %vm9000_vm7, %v12523_v38, %v2670_v59  ;;  %v1347_v26 = vld [vmem:[#allocation2 + $0x118] sm:$0xf]  ;;  %7743 = vmatprep.subr.bf16.mxu0 %v8500_v4  ;;  %vm2419_vm10 = vmpackc.low %vm10601_vm5, %vm10601_vm5 }
 0x185   : > { %v2286_v35 = vld [vmem:[#allocation2 + $0x118] sm:$0xf]  ;;  %900 = vst [vmem:[#allocation2 + $0x13c] sm:$0xf] %v7549_v18  ;;  %vm2768_vm6 = vcmp.ne.s16.totalorder %v2671_v13, 0  ;;  %v10613_v39 = vsel %vm10568_vm1, 0, %v1347_v26  ;;  %3678 = vmatmul.mubr.bf16.gmra.mxu1 %v10590_v53 }
 0x186   : > { %v2799_v48 = vsel %vm10583_vm2, 0, %v2286_v35  ;;  %vm10617_vm8 = vcmp.eq.s32.totalorder %v1127_v1, 0  ;;  %v10622_v25 = vrot.slane %v2122_v8, 7  ;;  %v2801_v20 = vsel %vm2768_vm6, 0, %v2288_v30  ;;  %3685 = vmatprep.mubr.bf16.mxu1 %v10594_v22  ;;  %v8508_v30 = vld [vmem:[%s12252_s3 + $0x1a8] sm:$0xff]  }
 0x187   : > { %v2104_v16 = vshrl.u32 %v10613_v39, 16  ;;  %vm1480_vm9 = vmpackc.low %vm10617_vm8, %vm10617_vm8  ;;  %v2672_v28 = vrot.slane %v10561_v37, 4  ;;  %v3041_v4 = vshll.u32 %v2801_v20, 16  ;;  %v3045_v34 = vshrl.u32 %v2801_v20, 16  ;;  %7744 = vmatpush3.bf16.msra.mxu0 %v8502_v21  ;;  %v10659_v35 = vld [vmem:[#allocation2 + $0xa8] ss:$12 sps:$4 sm:$0xff]  }
 0x188   : > { %v3021_v44 = vshll.u32 %v2799_v48, 16  ;;  %v1768_v59 = vor.u32 %v1767_v36, %v10553_v50  ;;  %v10631_v1 = vrot.slane %v3038_v11, 4  ;;  %v1512_v8 = vsel %vm1480_vm9, 65537, %v10309_v33  ;;  %7745 = vmatprep.subr.bf16.mxu0 %v8507_v42  ;;  %v8509_v36 = vld [vmem:[%s12252_s3 + $0x1e0] sm:$0xff]   ;;  %12590 = vst [vmem:[#allocation23_spill] sm:$0xff] %v10659_v35 }
 0x189   : > { %v10643_v37 = vadd.f32 %v9016_v61, %v10467_v56  ;;  %v10646_v50 = vor.u32 %v2125_v60, %v10622_v25  ;;  %v10652_v11 = vrot.slane %v2104_v16, 7  ;;  %v3025_v13 = vshrl.u32 %v2799_v48, 16  ;;  %v8511_v56 = vld [vmem:[%s12252_s3 + $0x1a0] sm:$0xff]  }
 0x18a   : > { %v10654_v26 = vrot.slane %v3041_v4, 5  ;;  %v1781_v42 = vshll.u32 %v1512_v8, 16  ;;  %v1785_v60 = vshrl.u32 %v1512_v8, 16  ;;  %v2680_v58 = vsel %vm9000_vm7, %v2672_v28, %v12572_v46  ;;  %8194 = vmatmul.mubr.bf16.gmra.mxu0 %v10271_v23  ;;  %v10683_v18 = vld [vmem:[#allocation2 + $0xc4] ss:$12 sps:$4 sm:$0xff]  }
 0x18b   : > { %v10665_v20 = vrot.slane %v3045_v34, 4  ;;  %v10667_v16 = vrot.slane %v3021_v44, 5  ;;  %v10675_v48 = vsel %vm2419_vm10, 65537, %v10309_v33  ;;  %v1769_v4 = vrot.slane %v1768_v59, 4  ;;  %8197 = vmatprep.mubr.bf16.mxu0 %v10318_v49  ;;  %7746 = vmatpush3.bf16.msra.mxu0 %v8508_v30  ;;  %12591 = vst [vmem:[#allocation29_spill] sm:$0xff] %v10683_v18 }
 0x18c   : > { %v2289_v8 = vld [vmem:[#allocation2 + $0x13c] sm:$0xf]  ;;  %v10678_v28 = vrot.slane %v1781_v42, 5  ;;  %v1787_v23 = vrot.slane %v1785_v60, 4  ;;  %v2683_v34 = vshrl.u32 %v10675_v48, 16  ;;  %vm2769_vm11 = vcmp.ne.s16.totalorder %v2680_v58, 0  ;;  %7747 = vmatprep.subr.bf16.mxu0 %v8509_v36 }
 0x18d   : > { %v1350_v44 = vld [vmem:[#allocation2 + $0x13c] sm:$0xf]  ;;  %v10681_v21 = vrot.slane %v3025_v13, 4  ;;  %v1774_v49 = vsel %vm8976_vm3, %v1769_v4, %v12566_v14  ;;  %v2802_v59 = vsel %vm2769_vm11, 0, %v2289_v8  ;;  %v735_v30 = vmax.f32 %v10399_v40, 0.0  ;;  %3686 = vmatmul.mubr.bf16.gmra.mxu1 %v10659_v35 }
 0x18e   : > { %v1788_v42 = vor.u32 %v1787_v23, %v10678_v28  ;;  %v10694_v36 = vrot.slane %v2683_v34, 7  ;;  %vm1865_vm12 = vcmp.ne.s16.totalorder %v1774_v49, 0  ;;  %v3051_v13 = vshll.u32 %v2802_v59, 16  ;;  %3693 = vmatprep.mubr.bf16.mxu1 %v10683_v18  ;;  %v1352_v60 = vld [vmem:[#allocation2 + $0x154] sm:$0xf]  ;;  %v8517_v40 = vld [vmem:[%s12252_s3 + $0x198] sm:$0xff]  }
 0x18f   : > { %v1898_v58 = vsel %vm1865_vm12, 0, %v1350_v44  ;;  %v3055_v22 = vshrl.u32 %v2802_v59, 16  ;;  %v7552_v53 = vpack.c.bf16 %v735_v30, %v735_v30  ;;  %v936_v0 = vadd.s32 216, %v12573_v12  ;;  %7748 = vmatpush3.bf16.msra.mxu0 %v8511_v56  ;;  %v2291_v23 = vld [vmem:[#allocation2 + $0x154] sm:$0xf] }
 0x190   : > { %v3048_v4 = vor.u32 %v10665_v20, %v10654_v26  ;;  %v1789_v8 = vrot.slane %v1788_v42, 4  ;;  %v2690_v34 = vrot.slane %v10694_v36, 4  ;;  %v2131_v49 = vshrl.u32 %v1898_v58, 16  ;;  %7749 = vmatprep.subr.bf16.mxu0 %v8516_v57  ;;  %v8518_v44 = vld [vmem:[%s12252_s3 + $0x1d0] sm:$0xff]  }
 0x191   : > { %v2134_v59 = vshll.u32 %v1898_v58, 16  ;;  %v10707_v30 = vrot.slane %v3051_v13, 5  ;;  %v3057_v18 = vrot.slane %v3055_v22, 4  ;;  %903 = vst [vmem:[#allocation2 + $0x160] sm:$0xf] %v7552_v53  ;;  %v937_v56 = vadd.s32 224, %v12573_v12 }
 0x192   : > { %v1794_v20 = vsel %vm8976_vm3, %v1789_v8, %v12566_v14  ;;  %v2698_v42 = vsel %vm9000_vm7, %v2690_v34, %v12572_v46  ;;  %v1134_v57 = vand.u32 15, %v936_v0  ;;  %v733_v35 = vmax.f32 %v10424_v43, 0.0  ;;  %8198 = vmatmul.mubr.bf16.gmra.mxu0 %v10350_v15  ;;  %v8520_v43 = vld [vmem:[%s12252_s3 + $0x190] sm:$0xff]   ;;  %v10729_v15 = vld [vmem:[#allocation2 + $0xc0] ss:$12 sps:$4 sm:$0xff]  }
 0x193   : > { %vm1867_vm13 = vcmp.ne.s16.totalorder %v1794_v20, 0  ;;  %vm2771_vm14 = vcmp.ne.s16.totalorder %v2698_v42, 0  ;;  %v10718_v13 = vrot.slane %v2131_v49, 7  ;;  %v1141_v53 = vand.u32 15, %v937_v56  ;;  %8201 = vmatprep.mubr.bf16.mxu0 %v10416_v17  ;;  %7750 = vmatpush3.bf16.msra.mxu0 %v8517_v40  ;;  %12593 = vst [vmem:[#allocation18_spill] sm:$0xff] %v10729_v15 }
 0x194   : > { %v12592_v22 = vshll.u32 %v10613_v39, 16  ;;  %v10731_v0 = vsel %vm1867_vm13, 0, %v1352_v60  ;;  %v2804_v34 = vsel %vm2771_vm14, 0, %v2291_v23  ;;  %7751 = vmatprep.subr.bf16.mxu0 %v8518_v44  ;;  %v8523_v39 = vld [vmem:[%s12252_s3 + $0x1c8] sm:$0xff]   ;;  %v3058_v17 = vor.u32 %v3057_v18, %v10707_v30 }
 0x195   : > { %v2149_v49 = vshrl.u32 %v10731_v0, 16  ;;  %v3071_v56 = vshll.u32 %v2804_v34, 16  ;;  %v3075_v20 = vshrl.u32 %v2804_v34, 16  ;;  %v10738_v40 = vrot.slane %v3048_v4, 4  ;;  %3694 = vmatmul.mubr.bf16.gmra.mxu1 %v10729_v15 }
 0x196   : > { %v2109_v58 = vor.u32 %v12592_v22, %v10652_v11  ;;  %vm1386_vm15 = vcmp.eq.s32.totalorder %v1141_v53, 0  ;;  %vm10741_vm0 = vcmp.eq.s32.totalorder %v1134_v57, 15  ;;  %v7550_v23 = vpack.c.bf16 %v733_v35, %v733_v35  ;;  %v8524_v35 = vld [vmem:[%s12252_s3 + $0x188] sm:$0xff]   ;;  %v12612_v57 = vld [vmem:[#allocation20_spill] sm:$0xff] }
 0x197   : > { %v12596_v44 = vcombine.high %v10309_v33, %v10309_v33  ;;  %v10748_v42 = vrot.slane %v3071_v56, 5  ;;  %v10750_v22 = vrot.slane %v3075_v20, 4  ;;  %v10753_v18 = vor.u32 %v2134_v59, %v10718_v13  ;;  %vm1482_vm1 = vmpackc.low %vm1386_vm15, %vm1386_vm15  ;;  %7752 = vmatpush3.bf16.msra.mxu0 %v8520_v43  ;;  %v8525_v56 = vld [vmem:[%s12252_s3 + $0x1c0] sm:$0xff]  }
 0x198   : > { %v1784_v4 = vsel %vm8976_vm3, %v12518_v3, %v10678_v28  ;;  %v10764_v53 = vsel %vm1482_vm1, 65537, %v10309_v33  ;;  %vm2421_vm2 = vmpackc.low %vm10741_vm0, %vm10741_vm0  ;;  %901 = vst [vmem:[#allocation2 + $0x148] sm:$0xf] %v7550_v23  ;;  %v12597_v59 = vrot.slane %v10365_v19, 4  ;;  %v12598_v43 = vrot.slane %v10490_v10, 4  ;;  %7753 = vmatprep.subr.bf16.mxu0 %v8523_v39 }
 0x199   : > { %3991 = vmatprep.mubr.bf16.mxu1 %v12596_v44  ;;  %v10781_v20 = vrot.slane %v2149_v49, 7  ;;  %v2152_v60 = vshll.u32 %v10731_v0, 16  ;;  %v10784_v23 = vrot.slane %v3058_v17, 4  ;;  %v1801_v19 = vshll.u32 %v10764_v53, 16  ;;  %v8526_v0 = vld [vmem:[%s12252_s3 + $0x180] sm:$0xff]   ;;  %v8528_v49 = vld [vmem:[%s12252_s3 + $0x230] sm:$0xff]  }
 0x19a   : > { %v2101_v28 = vsel %vm9000_vm7, %v12597_v59, %v10536_v41  ;;  %v2110_v34 = vsel %vm9000_vm7, %v12598_v43, %v2109_v58  ;;  %v2453_v10 = vsel %vm2421_vm2, 65537, %v10309_v33  ;;  %vm10788_vm4 = vcmp.ne.s16.totalorder %v1784_v4, 0  ;;  %8202 = vmatmul.mubr.bf16.gmra.mxu0 %v10418_v9 }
 0x19b   : > { %2253 = vst [vmem:[#allocation2 + $0x108] sm:$0xf] %v2101_v28  ;;  %2254 = vst [vmem:[#allocation2 + $0x114] sm:$0xf] %v2110_v34  ;;  %v2686_v58 = vshll.u32 %v10675_v48, 16  ;;  %v2075_v39 = vrot.slane %v10388_v62, 4  ;;  %v3078_v17 = vor.u32 %v10750_v22, %v10748_v42  ;;  %7754 = vmatpush3.bf16.msra.mxu0 %v8524_v35  ;;  %4538 = vmatprep.mubr.bf16.mxu0 %v10160_v24 }
 0x19c   : > { %v10803_v44 = vrot.slane %v1801_v19, 5  ;;  %v2701_v4 = vshrl.u32 %v2453_v10, 16  ;;  %v2704_v59 = vshll.u32 %v2453_v10, 16  ;;  %v1353_v62 = vld [vmem:[#allocation2 + $0x160] sm:$0xf]  ;;  %v738_v28 = vmax.f32 %v10447_v6, 0.0  ;;  %7755 = vmatprep.subr.bf16.mxu0 %v8525_v56 }
 0x19d   : > { %v2688_v9 = vor.u32 %v2686_v58, %v10694_v36  ;;  %v2083_v48 = vsel %vm9000_vm7, %v2075_v39, %v10268_v45  ;;  %v938_v43 = vadd.s32 232, %v12573_v12  ;;  %v8532_v22 = vld [vmem:[%s12252_s3 + $0x138] sm:$0xff]   ;;  %v939_v36 = vadd.s32 240, %v12573_v12  ;;  %v2292_v34 = vld [vmem:[#allocation2 + $0x160] sm:$0xf] }
 0x19e   : > { %v1804_v24 = vsel %vm8976_vm3, %v12518_v3, %v10803_v44  ;;  %v10819_v35 = vrot.slane %v2701_v4, 7  ;;  %2251 = vst [vmem:[#allocation2 + $0xf0] sm:$0xf] %v2083_v48  ;;  %v736_v45 = vmax.f32 %v10643_v37, 0.0  ;;  %v12601_v6 = vcombine.low %v10309_v33, %v10309_v33  ;;  %v8700_v58 = vld [vmem:[#allocation2 + $0x1c] ss:$12 sps:$4 sm:$0xff]  }
 0x19f   : > { %vm1868_vm5 = vcmp.ne.s16.totalorder %v1804_v24, 0  ;;  %v2689_v56 = vsel %vm9000_vm7, %v12523_v38, %v2688_v9  ;;  %v7555_v19 = vpack.c.bf16 %v738_v28, %v738_v28  ;;  %v1148_v10 = vand.u32 15, %v938_v43  ;;  %v1351_v37 = vld [vmem:[#allocation2 + $0x148] sm:$0xf]  ;;  %7756 = vmatpush3.bf16.msra.mxu0 %v8526_v0  ;;  %v8533_v0 = vld [vmem:[%s12252_s3 + $0xf8] sm:$0xff]  }
 0x1a0   : > { %3992 = vmatmul.mubr.bf16.vlgmr.msra.gmra.mxu1 %v12601_v6  ;;  %v1901_v39 = vsel %vm1868_vm5, 0, %v1353_v62  ;;  %v2706_v4 = vor.u32 %v2704_v59, %v10819_v35  ;;  %v2290_v48 = vld [vmem:[#allocation2 + $0x148] sm:$0xf]  ;;  %vm2770_vm6 = vcmp.ne.s16.totalorder %v2689_v56, 0  ;;  %v7553_v8 = vpack.c.bf16 %v736_v45, %v736_v45  ;;  %7837 = vmatprep.subr.bf16.mxu0 %v8532_v22  ;;  %v8534_v45 = vld [vmem:[%s12252_s3 + $0x130] sm:$0xff]  }
 0x1a1   : > { %8206 = vmatpush3.bf16.msra.mxu1 %v10506_v51  ;;  %3999 = vmatprep.mubr.bf16.mxu1 %v8700_v58  ;;  %v8529_v24 = vld [vmem:[%s12252_s3 + $0x228] sm:$0xff]   ;;  %v10835_v9 = vor.u32 %v2152_v60, %v10781_v20  ;;  %v2158_v28 = vshrl.u32 %v1901_v39, 16  ;;  %v10839_v51 = vsel %vm10788_vm4, 0, %v1351_v37  ;;  %v10841_v62 = vsel %vm2770_vm6, 0, %v2290_v48  ;;  %906 = vst [vmem:[#allocation2 + $0x184] sm:$0xf] %v7555_v19 }
 0x1a2   : > { %8207 = vmatprep.subr.bf16.mxu1 %v8528_v49  ;;  %v1805_v59 = vshrl.u32 %v10764_v53, 16  ;;  %v2707_v60 = vsel %vm9000_vm7, %v12523_v38, %v2706_v4  ;;  %v2140_v43 = vshrl.u32 %v10839_v51, 16  ;;  %v3061_v41 = vshll.u32 %v10841_v62, 16  ;;  %904 = vst [vmem:[#allocation2 + $0x16c] sm:$0xf] %v7553_v8  ;;  %4539 = vmatmul.mubr.bf16.vlgmr.msra.gmra.mxu0 %v10301_v29  ;;  %v8530_v8 = vld [vmem:[%s12252_s3 + $0x220] sm:$0xff]  }
 0x1a3   : > { %v10855_v22 = vrot.slane %v2158_v28, 7  ;;  %v2161_v6 = vshll.u32 %v1901_v39, 16  ;;  %vm2772_vm8 = vcmp.ne.s16.totalorder %v2707_v60, 0  ;;  %v1155_v56 = vand.u32 15, %v939_v36  ;;  %4546 = vmatprep.mubr.bf16.mxu0 %v10303_v63  ;;  %7838 = vmatpush3.bf16.msra.mxu0 %v8533_v0  ;;  %v8701_v37 = vld [vmem:[#allocation2 + $0x18] ss:$12 sps:$4 sm:$0xff]  }
 0x1a4   : > { %v10859_v19 = vrot.slane %v3078_v17, 4  ;;  %v2805_v58 = vsel %vm2772_vm8, 0, %v2292_v34  ;;  %vm2327_vm9 = vcmp.eq.s32.totalorder %v1148_v10, 15  ;;  %v2143_v36 = vshll.u32 %v10839_v51, 16  ;;  %7839 = vmatprep.subr.bf16.mxu0 %v8534_v45  ;;  %v8537_v48 = vld [vmem:[%s12252_s3 + $0x128] sm:$0xff]  }
 0x1a5   : > { %8208 = vmatpush3.bf16.msra.mxu1 %v8528_v49  ;;  %v3081_v4 = vshll.u32 %v2805_v58, 16  ;;  %v3085_v39 = vshrl.u32 %v2805_v58, 16  ;;  %v3065_v29 = vshrl.u32 %v10841_v62, 16  ;;  %vm2423_vm10 = vmpackc.low %vm2327_vm9, %vm2327_vm9  ;;  %v8536_v49 = vld [vmem:[%s12252_s3 + $0xf0] sm:$0xff]   ;;  %v10870_v17 = vrot.slane %v2140_v43, 7  ;;  %v8531_v58 = vld [vmem:[%s12252_s3 + $0x218] sm:$0xff]  }
 0x1a6   : > { %8209 = vmatprep.subr.bf16.mxu1 %v8529_v24  ;;  %v10872_v63 = vrot.slane %v3061_v41, 5  ;;  %vm10874_vm11 = vcmp.eq.s32.totalorder %v1155_v56, 0  ;;  %v10879_v10 = vsel %vm2423_vm10, 65537, %v10309_v33  ;;  %v10885_v28 = vor.u32 %v2161_v6, %v10855_v22  ;;  %v8702_v43 = vld [vmem:[#allocation2 + $0x34] ss:$12 sps:$4 sm:$0xff]  }
 0x1a7   : > { %vm1484_vm12 = vmpackc.low %vm10874_vm11, %vm10874_vm11  ;;  %v2719_v0 = vshrl.u32 %v10879_v10, 16  ;;  %v1807_v60 = vrot.slane %v1805_v59, 4  ;;  %v10892_v41 = vrot.slane %v3081_v4, 5  ;;  %v2708_v56 = vrot.slane %v10819_v35, 4  ;;  %7840 = vmatpush3.bf16.msra.mxu0 %v8536_v49  ;;  %v8706_v51 = vld [vmem:[#allocation2 + $0x64] ss:$12 sps:$4 sm:$0xff]  }
 0x1a8   : > { %4000 = vmatmul.mubr.bf16.gmra.mxu1 %v8701_v37  ;;  %v1516_v45 = vsel %vm1484_vm12, 65537, %v10309_v33  ;;  %v707_v6 = vadd.f32 %v9016_v61, %v10509_v2  ;;  %v10901_v34 = vrot.slane %v3085_v39, 4  ;;  %v8538_v33 = vld [vmem:[%s12252_s3 + $0xe8] sm:$0xff]   ;;  %v940_v39 = vadd.s32 248, %v12573_v12  ;;  %7841 = vmatprep.subr.bf16.mxu0 %v8537_v48  ;;  %v12604_v48 = vld [vmem:[#allocation27_spill] sm:$0xff] }
 0x1a9   : > { %4007 = vmatprep.mubr.bf16.mxu1 %v8702_v43  ;;  %8210 = vmatpush3.bf16.msra.mxu1 %v8529_v24  ;;  %v1821_v59 = vshll.u32 %v1516_v45, 16  ;;  %v1825_v37 = vshrl.u32 %v1516_v45, 16  ;;  %v10903_v43 = vrot.slane %v2719_v0, 7  ;;  %v1808_v35 = vor.u32 %v1807_v60, %v10803_v44  ;;  %v2293_v24 = vld [vmem:[#allocation2 + $0x16c] sm:$0xf]  ;;  %v8539_v0 = vld [vmem:[%s12252_s3 + $0x120] sm:$0xff]  }
 0x1aa   : > { %8211 = vmatprep.subr.bf16.mxu1 %v8530_v8  ;;  %v2716_v2 = vsel %vm9000_vm7, %v2708_v56, %v12572_v46  ;;  %v739_v4 = vmax.f32 %v707_v6, 0.0  ;;  %v10916_v49 = vrot.slane %v3065_v29, 4  ;;  %4547 = vmatmul.mubr.bf16.gmra.mxu0 %v10291_v27  ;;  %v2295_v60 = vld [vmem:[#allocation2 + $0x184] sm:$0xf]  ;;  %v1162_v12 = vand.u32 15, %v940_v39  ;;  %v8535_v29 = vld [vmem:[%s12252_s3 + $0x210] sm:$0xff]  }
 0x1ab   : > { %v10918_v45 = vrot.slane %v1821_v59, 5  ;;  %v1827_v62 = vrot.slane %v1825_v37, 4  ;;  %v2726_v44 = vrot.slane %v10903_v43, 4  ;;  %v1809_v56 = vrot.slane %v1808_v35, 4  ;;  %4554 = vmatprep.mubr.bf16.mxu0 %v12604_v48  ;;  %v1354_v35 = vld [vmem:[#allocation2 + $0x16c] sm:$0xf]  ;;  %7842 = vmatpush3.bf16.msra.mxu0 %v8538_v33 }
 0x1ac   : > { %vm2773_vm13 = vcmp.ne.s16.totalorder %v2716_v2, 0  ;;  %v7556_v6 = vpack.c.bf16 %v739_v4, %v739_v4  ;;  %v3088_v59 = vor.u32 %v10901_v34, %v10892_v41  ;;  %v8541_v4 = vld [vmem:[%s12252_s3 + $0xe0] sm:$0xff]   ;;  %7843 = vmatprep.subr.bf16.mxu0 %v8539_v0  ;;  %vm10941_vm0 = vcmp.eq.s32.totalorder %v1162_v12, 15  ;;  %v8540_v0 = vld [vmem:[%s12252_s3 + $0x208] sm:$0xff]  }
 0x1ad   : > { %8212 = vmatpush3.bf16.msra.mxu1 %v8530_v8  ;;  %v1828_v37 = vor.u32 %v1827_v62, %v10918_v45  ;;  %v2734_v8 = vsel %vm9000_vm7, %v2726_v44, %v12572_v46  ;;  %v2806_v2 = vsel %vm2773_vm13, 0, %v2293_v24  ;;  %v1814_v39 = vsel %vm8976_vm3, %v1809_v56, %v12566_v14  ;;  %v8703_v62 = vld [vmem:[#allocation2 + $0x30] ss:$12 sps:$4 sm:$0xff]   ;;  %v1356_v56 = vld [vmem:[#allocation2 + $0x184] sm:$0xf]  ;;  %vm2425_vm2 = vmpackc.low %vm10941_vm0, %vm10941_vm0 }
 0x1ae   : > { %8213 = vmatprep.subr.bf16.mxu1 %v8531_v58  ;;  %vm2775_vm14 = vcmp.ne.s16.totalorder %v2734_v8, 0  ;;  %v3091_v48 = vshll.u32 %v2806_v2, 16  ;;  %v3095_v34 = vshrl.u32 %v2806_v2, 16  ;;  %907 = vst [vmem:[#allocation2 + $0x190] sm:$0xf] %v7556_v6  ;;  %v8542_v46 = vld [vmem:[%s12252_s3 + $0x118] sm:$0xff]  }
 0x1af   : > { %v1829_v33 = vrot.slane %v1828_v37, 4  ;;  %v2808_v24 = vsel %vm2775_vm14, 0, %v2295_v60  ;;  %vm1869_vm15 = vcmp.ne.s16.totalorder %v1814_v39, 0  ;;  %v8704_v8 = vld [vmem:[#allocation2 + $0x4c] ss:$12 sps:$4 sm:$0xff]   ;;  %vm1872_vm1 = vcmp.ne.s16.totalorder %v12518_v3, 0  ;;  %7844 = vmatpush3.bf16.msra.mxu0 %v8541_v4 }
 0x1b0   : > { %4008 = vmatmul.mubr.bf16.gmra.mxu1 %v8703_v62  ;;  %v3111_v2 = vshll.u32 %v2808_v24, 16  ;;  %v3115_v6 = vshrl.u32 %v2808_v24, 16  ;;  %v1902_v53 = vsel %vm1869_vm15, 0, %v1354_v35  ;;  %v10955_v12 = vrot.slane %v3091_v48, 5  ;;  %v8545_v35 = vld [vmem:[%s12252_s3 + $0xd8] sm:$0xff]   ;;  %v8705_v24 = vld [vmem:[#allocation2] sm:$0xff]  ;;  %7845 = vmatprep.subr.bf16.mxu0 %v8542_v46 }
 0x1b1   : > { %4015 = vmatprep.mubr.bf16.mxu1 %v8704_v8  ;;  %8214 = vmatpush3.bf16.msra.mxu1 %v8531_v58  ;;  %v1834_v60 = vsel %vm8976_vm3, %v1829_v33, %v12566_v14  ;;  %v2167_v58 = vshrl.u32 %v1902_v53, 16  ;;  %v10957_v37 = vrot.slane %v3095_v34, 4  ;;  %v2457_v44 = vsel %vm2425_vm2, 65537, %v8705_v24  ;;  %v8546_v14 = vld [vmem:[%s12252_s3 + $0x110] sm:$0xff]   ;;  %v12608_v8 = vld [vmem:[#allocation34_spill] sm:$0xff] }
 0x1b2   : > { %8215 = vmatprep.subr.bf16.mxu1 %v8535_v29  ;;  %vm1871_vm4 = vcmp.ne.s16.totalorder %v1834_v60, 0  ;;  %v10962_v39 = vrot.slane %v3111_v2, 5  ;;  %v3117_v62 = vrot.slane %v3115_v6, 4  ;;  %v2170_v4 = vshll.u32 %v1902_v53, 16  ;;  %4555 = vmatmul.mubr.bf16.gmra.mxu0 %v12608_v8  ;;  %v12609_v24 = vld [vmem:[#allocation30_spill] sm:$0xff]  ;;  %v8547_v53 = vld [vmem:[%s12252_s3 + $0x200] sm:$0xff]  }
 0x1b3   : > { %v10967_v48 = vsel %vm1871_vm4, 0, %v1356_v56  ;;  %v10969_v34 = vrot.slane %v2167_v58, 7  ;;  %v2737_v33 = vshrl.u32 %v2457_v44, 16  ;;  %v2145_v2 = vor.u32 %v2143_v36, %v10870_v17  ;;  %4562 = vmatprep.mubr.bf16.mxu0 %v12609_v24  ;;  %7846 = vmatpush3.bf16.msra.mxu0 %v8545_v35 }
 0x1b4   : > { %12607 = vst [vmem:[#allocation36_spill] sm:$0xff] %v10962_v39  ;;  %v2185_v6 = vshrl.u32 %v10967_v48, 16  ;;  %v3118_v46 = vor.u32 %v3117_v62, %v10962_v39  ;;  %v2740_v60 = vshll.u32 %v2457_v44, 16  ;;  %v10981_v56 = vrot.slane %v3088_v59, 4  ;;  %v8548_v62 = vld [vmem:[%s12252_s3 + $0xd0] sm:$0xff]   ;;  %7847 = vmatprep.subr.bf16.mxu0 %v8546_v14  ;;  %v11015_v14 = vld [vmem:[%s12254_s5 + $0x38] sm:$0xff]  }
 0x1b5   : > { %8216 = vmatpush3.bf16.msra.mxu1 %v8535_v29  ;;  %v1357_v36 = vld [vmem:[#allocation2 + $0x190] sm:$0xf]  ;;  %v705_v58 = vadd.f32 %v9016_v61, %v10512_v52  ;;  %v10997_v24 = vrot.slane %v2737_v33, 7  ;;  %v8551_v61 = vld [vmem:[%s12252_s3 + $0x108] sm:$0xff]   ;;  %v2172_v52 = vor.u32 %v2170_v4, %v10969_v34  ;;  %v12614_v15 = vrot.slane %v10481_v54, 4 }
 0x1b6   : > { %8217 = vmatprep.subr.bf16.mxu1 %v8540_v0  ;;  %v10992_v44 = vrot.slane %v2185_v6, 7  ;;  %v1905_v8 = vsel %vm1872_vm1, 0, %v1357_v36  ;;  %v11005_v36 = vrot.slane %v3118_v46, 4  ;;  %v12610_v46 = vld [vmem:[#allocation11_spill] sm:$0xff] }
 0x1b7   : > { %v2194_v35 = vshrl.u32 %v1905_v8, 16  ;;  %v2197_v29 = vshll.u32 %v1905_v8, 16  ;;  %v737_v6 = vmax.f32 %v705_v58, 0.0  ;;  %v2742_v33 = vor.u32 %v2740_v60, %v10997_v24  ;;  %v12611_v8 = vld [vmem:[#allocation22_spill] sm:$0xff]  ;;  %7848 = vmatpush3.bf16.msra.mxu0 %v8548_v62 }
 0x1b8   : > { %4016 = vmatmul.mubr.bf16.gmra.mxu1 %v10291_v27  ;;  %v2192_v59 = vrot.slane %v10992_v44, 4  ;;  %v1824_v27 = vsel %vm8976_vm3, %v12518_v3, %v10918_v45  ;;  %v2722_v58 = vshll.u32 %v10879_v10, 16  ;;  %v2984_v60 = vsel %vm8976_vm3, %v12611_v8, %v12610_v46  ;;  %v8552_v3 = vld [vmem:[%s12252_s3 + $0xc8] sm:$0xff]   ;;  %7849 = vmatprep.subr.bf16.mxu0 %v8551_v61  ;;  %v8553_v8 = vld [vmem:[%s12252_s3 + $0x100] sm:$0xff]  }
 0x1b9   : > { %4023 = vmatprep.mubr.bf16.mxu1 %v8706_v51  ;;  %8218 = vmatpush3.bf16.msra.mxu1 %v8540_v0  ;;  %v2196_v4 = vrot.slane %v2194_v35, 7  ;;  %v2296_v51 = vld [vmem:[#allocation2 + $0x190] sm:$0xf]  ;;  %v7554_v0 = vpack.c.bf16 %v737_v6, %v737_v6  ;;  %v2743_v45 = vsel %vm9000_vm7, %v12523_v38, %v2742_v33  ;;  %v12613_v35 = vor.u32 %v12612_v57, %v12610_v46 }
 0x1ba   : > { %8219 = vmatprep.subr.bf16.mxu1 %v8547_v53  ;;  %3183 = vst [vmem:[#allocation2 + $0xe0] sm:$0xf] %v2984_v60  ;;  %v2111_v10 = vrot.slane %v10652_v11, 4  ;;  %v2128_v62 = vsel %vm9000_vm7, %v12614_v15, %v10646_v50  ;;  %vm2776_vm5 = vcmp.ne.s16.totalorder %v2743_v45, 0  ;;  %v2724_v57 = vor.u32 %v2722_v58, %v10903_v43  ;;  %4563 = vmatmul.mubr.bf16.gmra.mxu0 %v10514_v7  ;;  %v12616_v15 = vld [vmem:[#allocation39_spill] sm:$0xff] }
 0x1bb   : > { %v2989_v6 = vrot.slane %v12613_v35, 4  ;;  %v2199_v39 = vor.u32 %v2197_v29, %v2196_v4  ;;  %905 = vst [vmem:[#allocation2 + $0x178] sm:$0xf] %v7554_v0  ;;  %2256 = vst [vmem:[#allocation2 + $0x12c] sm:$0xf] %v2128_v62  ;;  %v12615_v11 = vrot.slane %v10622_v25, 4  ;;  %4570 = vmatprep.mubr.bf16.mxu0 %v10530_v32  ;;  %7850 = vmatpush3.bf16.msra.mxu0 %v8552_v3 }
 0x1bc   : > { %v2809_v50 = vsel %vm2776_vm5, 0, %v2296_v51  ;;  %v2119_v29 = vsel %vm9000_vm7, %v2111_v10, %v10522_v31  ;;  %v12617_v43 = vrot.slane %v10718_v13, 4  ;;  %vm11059_vm6 = vcmp.ne.s16.totalorder %v1824_v27, 0  ;;  %v8555_v32 = vld [vmem:[%s12252_s3 + $0xc0] sm:$0xff]   ;;  %7851 = vmatprep.subr.bf16.mxu0 %v8553_v8  ;;  %v8589_v8 = vld [vmem:[%s12252_s3 + $0x168] sm:$0xff]  }
 0x1bd   : > { %v2137_v54 = vsel %vm9000_vm7, %v12615_v11, %v10753_v18  ;;  %8220 = vmatpush3.bf16.msra.mxu1 %v8547_v53  ;;  %v2994_v61 = vsel %vm8976_vm3, %v2989_v6, %v12616_v15  ;;  %v3121_v7 = vshll.u32 %v2809_v50, 16  ;;  %v2725_v53 = vsel %vm9000_vm7, %v12523_v38, %v2724_v57  ;;  %2255 = vst [vmem:[#allocation2 + $0x120] sm:$0xf] %v2119_v29  ;;  %v8707_v4 = vld [vmem:[#allocation2 + $0x60] ss:$12 sps:$4 sm:$0xff]  }
 0x1be   : > { %v2146_v25 = vsel %vm9000_vm7, %v12617_v43, %v2145_v2  ;;  %2257 = vst [vmem:[#allocation2 + $0x138] sm:$0xf] %v2137_v54  ;;  %8237 = vmatprep.subr.bf16.mxu1 %v11015_v14  ;;  %3184 = vst [vmem:[#allocation2 + $0xec] sm:$0xf] %v2994_v61  ;;  %v2147_v31 = vrot.slane %v10870_v17, 4  ;;  %v3125_v13 = vshrl.u32 %v2809_v50, 16  ;;  %v2200_v17 = vsel %vm9000_vm7, %v2192_v59, %v2199_v39 }
 0x1bf   : > { %2258 = vst [vmem:[#allocation2 + $0x144] sm:$0xf] %v2146_v25  ;;  %v12620_v2 = vrot.slane %v10781_v20, 4  ;;  %v12621_v27 = vrot.slane %v10855_v22, 4  ;;  %v11081_v51 = vrot.slane %v3121_v7, 5  ;;  %vm11083_vm8 = vcmp.ne.s16.totalorder %v2725_v53, 0  ;;  %7852 = vmatpush3.bf16.msra.mxu0 %v8555_v32 }
 0x1c0   : > { %4024 = vmatmul.mubr.bf16.gmra.mxu1 %v8707_v4  ;;  %v11090_v20 = vld [vmem:[%s12252_s3 + $0xb8] sm:$0xff]   ;;  %v2155_v22 = vsel %vm9000_vm7, %v2147_v31, %v10835_v9  ;;  %2264 = vst [vmem:[#allocation2 + $0x18c] sm:$0xf] %v2200_v17  ;;  %v12624_v59 = vor.u32 %v10681_v21, %v10667_v16  ;;  %v3044_v9 = vsel %vm8976_vm3, %v10631_v1, %v10654_v26  ;;  %v12628_v3 = vld [vmem:[#allocation21_spill] sm:$0xff]  ;;  %v2174_v62 = vrot.slane %v10969_v34, 4  ;;  %v12633_v31 = vld [vmem:[#allocation23_spill] sm:$0xff] }
 0x1c1   : > { %v2164_v33 = vsel %vm9000_vm7, %v12620_v2, %v10885_v28  ;;  %v2173_v38 = vsel %vm9000_vm7, %v12621_v27, %v2172_v52  ;;  %v3024_v28 = vsel %vm8976_vm3, %v10599_v5, %v10667_v16  ;;  %v8708_v39 = vld [vmem:[#allocation2 + $0x7c] ss:$12 sps:$4 sm:$0xff]   ;;  %2259 = vst [vmem:[#allocation2 + $0x150] sm:$0xf] %v2155_v22  ;;  %v3054_v58 = vsel %vm8976_vm3, %v10738_v40, %v10707_v30  ;;  %v12629_v10 = vld [vmem:[#allocation9_spill] sm:$0xff]  ;;  %v8558_v22 = vld [vmem:[%s12254_s5 + $0x30] sm:$0xff]  }
 0x1c2   : > { %2260 = vst [vmem:[#allocation2 + $0x15c] sm:$0xf] %v2164_v33  ;;  %2261 = vst [vmem:[#allocation2 + $0x168] sm:$0xf] %v2173_v38  ;;  %4031 = vmatprep.mubr.bf16.mxu1 %v8708_v39  ;;  %v3029_v52 = vrot.slane %v12624_v59, 4  ;;  %v3064_v5 = vsel %vm8976_vm3, %v10784_v23, %v10872_v63  ;;  %v12625_v21 = vor.u32 %v10957_v37, %v10955_v12  ;;  %v12627_v37 = vld [vmem:[#allocation7_spill] sm:$0xff]  ;;  %8301 = vmatprep.subr.bf16.mxu0 %v11090_v20 }
 0x1c3   : > { %3187 = vst [vmem:[#allocation2 + $0x110] sm:$0xf] %v3024_v28  ;;  %3189 = vst [vmem:[#allocation2 + $0x128] sm:$0xf] %v3044_v9  ;;  %v12626_v46 = vor.u32 %v10916_v49, %v10872_v63  ;;  %v3084_v26 = vsel %vm8976_vm3, %v10859_v19, %v10892_v41  ;;  %v3094_v30 = vsel %vm8976_vm3, %v10981_v56, %v10955_v12  ;;  %v1355_v40 = vld [vmem:[#allocation2 + $0x178] sm:$0xf]  ;;  %4571 = vmatmul.mubr.bf16.gmra.mxu0 %v12628_v3 }
 0x1c4   : > { %v3099_v16 = vrot.slane %v12625_v21, 4  ;;  %3190 = vst [vmem:[#allocation2 + $0x134] sm:$0xf] %v3054_v58  ;;  %3191 = vst [vmem:[#allocation2 + $0x140] sm:$0xf] %v3064_v5  ;;  %v3034_v60 = vsel %vm8976_vm3, %v3029_v52, %v12627_v37  ;;  %v2744_v63 = vrot.slane %v10997_v24, 4  ;;  %v3124_v19 = vsel %vm8976_vm3, %v11005_v36, %v11081_v51  ;;  %4578 = vmatprep.mubr.bf16.mxu0 %v12629_v10 }
 0x1c5   : > { %v3069_v1 = vrot.slane %v12626_v46, 4  ;;  %v2294_v23 = vld [vmem:[#allocation2 + $0x178] sm:$0xf]  ;;  %3193 = vst [vmem:[#allocation2 + $0x158] sm:$0xf] %v3084_v26  ;;  %v3127_v41 = vrot.slane %v3125_v13, 4 }
 0x1c6   : > { %3194 = vst [vmem:[#allocation2 + $0x164] sm:$0xf] %v3094_v30  ;;  %v1903_v49 = vsel %vm11059_vm6, 0, %v1355_v40  ;;  %v2807_v12 = vsel %vm11083_vm8, 0, %v2294_v23  ;;  %3188 = vst [vmem:[#allocation2 + $0x11c] sm:$0xf] %v3034_v60 }
 0x1c7   : > { %v3074_v56 = vsel %vm8976_vm3, %v3069_v1, %v10748_v42  ;;  %v2297_v24 = vld [vmem:[#allocation2 + $0x19c] sm:$0x1]  ;;  %3197 = vst [vmem:[#allocation2 + $0x188] sm:$0xf] %v3124_v19  ;;  %v2176_v45 = vshrl.u32 %v1903_v49, 16  ;;  %v2179_v36 = vshll.u32 %v1903_v49, 16  ;;  %v3128_v34 = vor.u32 %v3127_v41, %v11081_v51 }
 0x1c8   : > { %v3101_v35 = vshll.u32 %v2807_v12, 16  ;;  %v3105_v6 = vshrl.u32 %v2807_v12, 16  ;;  %3192 = vst [vmem:[#allocation2 + $0x14c] sm:$0xf] %v3074_v56  ;;  %vm11147_vm9 = vcmp.ne.s16.totalorder %v2744_v63, 0  ;;  %v12632_v42 = vshll.u32 %v10967_v48, 16 }
 0x1c9   : > { %v2178_v11 = vrot.slane %v2176_v45, 7  ;;  %v8709_v15 = vld [vmem:[#allocation2 + $0x78] ss:$12 sps:$4 sm:$0xff]   ;;  %v2810_v61 = vsel %vm11147_vm9, 0, %v2297_v24  ;;  %v8710_v29 = vld [vmem:[#allocation2 + $0x94] ss:$12 sps:$4 sm:$0xff]  }
 0x1ca   : > { %v2190_v57 = vor.u32 %v12632_v42, %v10992_v44  ;;  %v3103_v54 = vrot.slane %v3101_v35, 5  ;;  %v3107_v50 = vrot.slane %v3105_v6, 4  ;;  %4032 = vmatmul.mubr.bf16.gmra.mxu1 %v8709_v15  ;;  %v3131_v53 = vshll.u32 %v2810_v61, 16  ;;  %v12634_v13 = vld [vmem:[#allocation29_spill] sm:$0xff]  ;;  %v12635_v27 = vld [vmem:[#allocation36_spill] sm:$0xff]  ;;  %v12636_v4 = vld [vmem:[#allocation18_spill] sm:$0xff] }
 0x1cb   : > { %4039 = vmatprep.mubr.bf16.mxu1 %v8710_v29  ;;  %v2181_v43 = vor.u32 %v2179_v36, %v2178_v11  ;;  %v2183_v25 = vrot.slane %v2178_v11, 4  ;;  %4579 = vmatmul.mubr.bf16.gmra.mxu0 %v12633_v31  ;;  %v3129_v32 = vrot.slane %v3128_v34, 4  ;;  %v11172_v17 = vld [vmem:[#allocation2 + $0xdc] ss:$12 sps:$4 sm:$0xff]   ;;  %v8549_v51 = vld [vmem:[#allocation2 + $0x38] ss:$12 sps:$4 sm:$0xff]  }
 0x1cc   : > { %v3104_v7 = vsel %vm8976_vm3, %v3099_v16, %v3103_v54  ;;  %v3108_v48 = vor.u32 %v3107_v50, %v3103_v54  ;;  %4586 = vmatprep.mubr.bf16.mxu0 %v12634_v13  ;;  %v3133_v33 = vrot.slane %v3131_v53, 5  ;;  %v11177_v0 = vld [vmem:[#allocation2 + $0xd8] ss:$12 sps:$4 sm:$0xff]   ;;  %v8557_v28 = vld [vmem:[#allocation2 + $0x68] ss:$12 sps:$4 sm:$0xff]  }
 0x1cd   : > { %3195 = vst [vmem:[#allocation2 + $0x170] sm:$0xf] %v3104_v7  ;;  %v2182_v44 = vsel %vm9000_vm7, %v2174_v62, %v2181_v43  ;;  %v2191_v18 = vsel %vm9000_vm7, %v2183_v25, %v2190_v57  ;;  %v8561_v39 = vld [vmem:[%s12254_s5 + $0x28] sm:$0xff]   ;;  %v11188_v59 = vld [vmem:[#allocation2 + $0xf4] ss:$12 sps:$4 sm:$0xff]   ;;  %v8568_v21 = vld [vmem:[%s12254_s5 + $0x18] sm:$0xff]  }
 0x1ce   : > { %2262 = vst [vmem:[#allocation2 + $0x174] sm:$0xf] %v2182_v44  ;;  %2263 = vst [vmem:[#allocation2 + $0x180] sm:$0xf] %v2191_v18  ;;  %v3109_v2 = vrot.slane %v3108_v48, 4  ;;  %v3134_v55 = vsel %vm8976_vm3, %v3129_v32, %v3133_v33  ;;  %v8587_v52 = vld [vmem:[%s12252_s3 + $0xb0] sm:$0xff]  }
 0x1cf   : > { %3198 = vst [vmem:[#allocation2 + $0x194] sm:$0xf] %v3134_v55  ;;  %v8562_v9 = vld [vmem:[#allocation2 + $0x80] ss:$12 sps:$4 sm:$0xff]   ;;  %v8563_v58 = vld [vmem:[#allocation2 + $0x98] ss:$12 sps:$4 sm:$0xff]  }
 0x1d0   : > { %v3114_v38 = vsel %vm8976_vm3, %v3109_v2, %v12635_v27  ;;  %v8594_v5 = vld [vmem:[%s12252_s3 + $0xa8] sm:$0xff]   ;;  %v11205_v16 = vld [vmem:[#allocation2 + $0xf0] ss:$12 sps:$4 sm:$0xff]   ;;  %v8579_v19 = vld [vmem:[%s8785_s12] sm:$0xff]  }
 0x1d1   : > { %3196 = vst [vmem:[#allocation2 + $0x17c] sm:$0xf] %v3114_v38  ;;  %v11207_v46 = vld [vmem:[#allocation2 + $0x10c] ss:$12 sps:$4 sm:$0xff]   ;;  %v8569_v1 = vld [vmem:[#allocation2 + $0xb0] ss:$12 sps:$4 sm:$0xff]  }
 0x1d2   : > { %4040 = vmatmul.mubr.bf16.gmra.mxu1 %v12628_v3  ;;  %v8572_v26 = vld [vmem:[%s12254_s5 + $0x10] sm:$0xff]   ;;  %v8603_v40 = vld [vmem:[%s12252_s3 + $0x98] sm:$0xff]   ;;  %v8573_v23 = vld [vmem:[%s12254_s5 + $0x8] sm:$0xff]  }
 0x1d3   : > { %4047 = vmatprep.mubr.bf16.mxu1 %v12629_v10  ;;  %4587 = vmatmul.mubr.bf16.gmra.mxu0 %v12636_v4  ;;  %v8570_v30 = vld [vmem:[#allocation2 + $0xc8] ss:$12 sps:$4 sm:$0xff]   ;;  %v11223_v37 = vld [vmem:[#allocation2 + $0x124] ss:$12 sps:$4 sm:$0xff]   ;;  %v8574_v41 = vld [vmem:[#allocation2 + $0xe0] ss:$12 sps:$4 sm:$0xff]  }
 0x1d4   : > { %4594 = vmatprep.mubr.bf16.mxu0 %v11172_v17  ;;  %v11225_v60 = vld [vmem:[#allocation2 + $0x108] ss:$12 sps:$4 sm:$0xff]   ;;  %v8578_v49 = vld [vmem:[%s12254_s5] sm:$0xff]   ;;  %v8580_v24 = vld [vmem:[%s12252_s3 + $0x178] sm:$0xff]  }
 0x1d5   : > { %v8605_v63 = vld [vmem:[%s12252_s3 + $0x90] sm:$0xff]   ;;  %v8613_v12 = vld [vmem:[%s12252_s3 + $0x88] sm:$0xff]   ;;  %v8616_v36 = vld [vmem:[%s12252_s3 + $0x80] sm:$0xff]  }
 0x1d6   : > { %v11239_v56 = vld [vmem:[#allocation2 + $0x120] ss:$12 sps:$4 sm:$0xff]   ;;  %v11244_v3 = vld [vmem:[#allocation2 + $0x13c] ss:$12 sps:$4 sm:$0xff]   ;;  %v8588_v35 = vld [vmem:[%s8785_s12 + $0x10] sm:$0xff]  }
 0x1d7   : > { %v8581_v45 = vld [vmem:[%s8785_s12 + $0x8] sm:$0xff]   ;;  %v8586_v6 = vld [vmem:[%s12252_s3 + $0x170] sm:$0xff]   ;;  %v8621_v10 = vld [vmem:[%s12252_s3 + $0x1f8] sm:$0xff]  }
 0x1d8   : > { %v11259_v62 = vld [vmem:[#allocation2 + $0x138] ss:$12 sps:$4 sm:$0xff]   ;;  %v11264_v42 = vld [vmem:[#allocation2 + $0x154] ss:$12 sps:$4 sm:$0xff]   ;;  %v11273_v50 = vld [vmem:[#allocation2 + $0x150] ss:$12 sps:$4 sm:$0xff]  }
 0x1d9   : > { %v8590_v57 = vld [vmem:[%s8785_s12 + $0x18] sm:$0xff]   ;;  %v8597_v11 = vld [vmem:[%s8785_s12 + $0x20] sm:$0xff]   ;;  %v8599_v29 = vld [vmem:[%s8785_s12 + $0x28] sm:$0xff]  }
 0x1da   : > { %4048 = vmatmul.mubr.bf16.gmra.mxu1 %v12633_v31  ;;  %v8595_v54 = vld [vmem:[%s12252_s3 + $0x160] sm:$0xff]   ;;  %v8598_v15 = vld [vmem:[%s12252_s3 + $0x158] sm:$0xff]   ;;  %v8606_v34 = vld [vmem:[%s8785_s12 + $0x30] sm:$0xff]  }
 0x1db   : > { %8221 = vmatprep.mubr.bf16.mxu1 %v8549_v51  ;;  %4595 = vmatmul.mubr.bf16.gmra.mxu0 %v11177_v0  ;;  %v11278_v61 = vld [vmem:[#allocation2 + $0x16c] ss:$12 sps:$4 sm:$0xff]   ;;  %v8604_v43 = vld [vmem:[%s12252_s3 + $0x150] sm:$0xff]   ;;  %v8614_v18 = vld [vmem:[%s12252_s3 + $0x140] sm:$0xff]  }
 0x1dc   : > { %5506 = vmatprep.mubr.bf16.mxu0 %v11172_v17  ;;  %v11287_v25 = vld [vmem:[#allocation2 + $0x168] ss:$12 sps:$4 sm:$0xff]   ;;  %v11292_v48 = vld [vmem:[#allocation2 + $0x184] ss:$12 sps:$4 sm:$0xff]   ;;  %v8608_v44 = vld [vmem:[%s8785_s12 + $0x38] sm:$0xff]  }
 0x1dd   : > { %v8607_v7 = vld [vmem:[%s12252_s3 + $0x148] sm:$0xff]   ;;  %v8617_v32 = vld [vmem:[%s12252_s3 + $0x78] sm:$0xff]   ;;  %v8622_v27 = vld [vmem:[%s12252_s3 + $0x70] sm:$0xff]  }
 0x1de   : > { %v8612_v53 = vld [vmem:[#allocation2 + $0xe0] ss:$12 sps:$4 sm:$0xff]   ;;  %v8615_v13 = vld [vmem:[#allocation2 + $0xc8] ss:$12 sps:$4 sm:$0xff]   ;;  %v8619_v2 = vld [vmem:[%s12252_s3 + $0x38] sm:$0xff]  }
 0x1df   : > { %v11300_v31 = vld [vmem:[#allocation2 + $0x180] ss:$12 sps:$4 sm:$0xff]   ;;  %v8618_v33 = vld [vmem:[#allocation2 + $0xf8] ss:$12 sps:$4 sm:$0xff]   ;;  %v8620_v38 = vld [vmem:[#allocation2 + $0x110] ss:$12 sps:$4 sm:$0xff]  }
 0x1e0   : > { %v8624_v4 = vld [vmem:[%s12252_s3 + $0x30] sm:$0xff]  }
 0x1e2   : > { %8222 = vmatmul.mubr.bf16.vlgmr.msra.gmra.mxu1 %v8556_v47  ;;  %v8623_v47 = vld [vmem:[%s12252_s3 + $0x1b8] sm:$0xff]  }
 0x1e3   : > { %8238 = vmatpush3.bf16.msra.mxu1 %v11015_v14  ;;  %8225 = vmatprep.mubr.bf16.mxu1 %v8557_v28  ;;  %v8565_v14 = vld [vmem:[%s12254_s5 + $0x20] sm:$0xff]   ;;  %v8625_v28 = vld [vmem:[%s12252_s3 + $0x1f0] sm:$0xff]  }
 0x1e4   : > { %8239 = vmatprep.subr.bf16.mxu1 %v8558_v22  ;;  %5507 = vmatmul.mubr.bf16.vlgmr.msra.gmra.mxu0 %v11177_v0 }
 0x1e5   : > { %5514 = vmatprep.mubr.bf16.mxu0 %v11188_v59  ;;  %8302 = vmatpush3.bf16.msra.mxu0 %v11090_v20  ;;  %v8596_v20 = vld [vmem:[%s12252_s3 + $0xa0] sm:$0xff]  }
 0x1e6   : > { %8303 = vmatprep.subr.bf16.mxu0 %v8587_v52 }
 0x1e7   : > { %8240 = vmatpush3.bf16.msra.mxu1 %v8558_v22 }
 0x1e8   : > { %8241 = vmatprep.subr.bf16.mxu1 %v8561_v39 }
 0x1e9   : > { %8304 = vmatpush3.bf16.msra.mxu0 %v8587_v52 }
 0x1ea   : > { %8226 = vmatmul.mubr.bf16.gmra.mxu1 %v8562_v9  ;;  %8305 = vmatprep.subr.bf16.mxu0 %v8594_v5 }
 0x1eb   : > { %8242 = vmatpush3.bf16.msra.mxu1 %v8561_v39  ;;  %8229 = vmatprep.mubr.bf16.mxu1 %v8563_v58  ;;  %v8626_v39 = vld [vmem:[%s12252_s3 + $0x68] sm:$0xff]  }
 0x1ec   : > { %8243 = vmatprep.subr.bf16.mxu1 %v8565_v14  ;;  %5515 = vmatmul.mubr.bf16.gmra.mxu0 %v11205_v16 }
 0x1ed   : > { %5522 = vmatprep.mubr.bf16.mxu0 %v11207_v46  ;;  %8306 = vmatpush3.bf16.msra.mxu0 %v8594_v5  ;;  %v8627_v5 = vld [vmem:[%s12252_s3 + $0x1b0] sm:$0xff]  }
 0x1ee   : > { %8307 = vmatprep.subr.bf16.mxu0 %v8596_v20 }
 0x1ef   : > { %8244 = vmatpush3.bf16.msra.mxu1 %v8565_v14  ;;  %v8629_v14 = vld [vmem:[%s12252_s3 + $0x28] sm:$0xff]  }
 0x1f0   : > { %8245 = vmatprep.subr.bf16.mxu1 %v8568_v21 }
 0x1f1   : > { %8308 = vmatpush3.bf16.msra.mxu0 %v8596_v20  ;;  %v8632_v20 = vld [vmem:[%s12252_s3 + $0x60] sm:$0xff]  }
 0x1f2   : > { %8230 = vmatmul.mubr.bf16.gmra.mxu1 %v8569_v1  ;;  %8309 = vmatprep.subr.bf16.mxu0 %v8603_v40 }
 0x1f3   : > { %8246 = vmatpush3.bf16.msra.mxu1 %v8568_v21  ;;  %8233 = vmatprep.mubr.bf16.mxu1 %v8570_v30  ;;  %v8628_v21 = vld [vmem:[#allocation2 + $0x128] ss:$12 sps:$4 sm:$0xff]   ;;  %v8630_v30 = vld [vmem:[#allocation2 + $0x140] ss:$12 sps:$4 sm:$0xff]  }
 0x1f4   : > { %8247 = vmatprep.subr.bf16.mxu1 %v8572_v26  ;;  %5523 = vmatmul.mubr.bf16.gmra.mxu0 %v11225_v60 }
 0x1f5   : > { %5530 = vmatprep.mubr.bf16.mxu0 %v11223_v37  ;;  %8310 = vmatpush3.bf16.msra.mxu0 %v8603_v40  ;;  %v8631_v40 = vld [vmem:[%s12252_s3 + $0x1e8] sm:$0xff]  }
 0x1f6   : > { %8311 = vmatprep.subr.bf16.mxu0 %v8605_v63 }
 0x1f7   : > { %8248 = vmatpush3.bf16.msra.mxu1 %v8572_v26 }
 0x1f8   : > { %8249 = vmatprep.subr.bf16.mxu1 %v8573_v23 }
 0x1f9   : > { %8312 = vmatpush3.bf16.msra.mxu0 %v8605_v63 }
 0x1fa   : > { %8234 = vmatmul.mubr.bf16.gmra.mxu1 %v8574_v41  ;;  %8313 = vmatprep.subr.bf16.mxu0 %v8613_v12  ;;  %v8634_v41 = vld [vmem:[%s12252_s3 + $0x20] sm:$0xff]  }
 0x1fb   : > { %8250 = vmatpush3.bf16.msra.mxu1 %v8573_v23  ;;  %8253 = vmatprep.mubr.bf16.mxu1 %v8579_v19 }
 0x1fc   : > { %8251 = vmatprep.subr.bf16.mxu1 %v8578_v49  ;;  %5531 = vmatmul.mubr.bf16.gmra.mxu0 %v11239_v56 }
 0x1fd   : > { %5538 = vmatprep.mubr.bf16.mxu0 %v11244_v3  ;;  %8314 = vmatpush3.bf16.msra.mxu0 %v8613_v12  ;;  %v8633_v12 = vld [vmem:[%s12252_s3 + $0x1a8] sm:$0xff]  }
 0x1fe   : > { %8315 = vmatprep.subr.bf16.mxu0 %v8616_v36 }
 0x1ff   : > { %8252 = vmatpush3.bf16.msra.mxu1 %v8578_v49 }
 0x200   : > { %8269 = vmatprep.subr.bf16.mxu1 %v8580_v24 }
 0x201   : > { %8316 = vmatpush3.bf16.msra.mxu0 %v8616_v36  ;;  %v8635_v36 = vld [vmem:[%s12252_s3 + $0x1e0] sm:$0xff]  }
 0x202   : > { %8254 = vmatmul.mubr.bf16.vlgmr.msra.gmra.mxu1 %v8581_v45  ;;  %7997 = vmatprep.subr.bf16.mxu0 %v8621_v10 }
 0x203   : > { %8270 = vmatpush3.bf16.msra.mxu1 %v8580_v24  ;;  %8257 = vmatprep.mubr.bf16.mxu1 %v8588_v35  ;;  %v8636_v35 = vld [vmem:[%s12252_s3 + $0x58] sm:$0xff]  }
 0x204   : > { %8271 = vmatprep.subr.bf16.mxu1 %v8586_v6  ;;  %5539 = vmatmul.mubr.bf16.gmra.mxu0 %v11259_v62 }
 0x205   : > { %5546 = vmatprep.mubr.bf16.mxu0 %v11264_v42 }
 0x207   : > { %8272 = vmatpush3.bf16.msra.mxu1 %v8586_v6 }
 0x208   : > { %8273 = vmatprep.subr.bf16.mxu1 %v8589_v8 }
 0x20a   : > { %8258 = vmatmul.mubr.bf16.gmra.mxu1 %v8590_v57 }
 0x20b   : > { %8274 = vmatpush3.bf16.msra.mxu1 %v8589_v8  ;;  %8261 = vmatprep.mubr.bf16.mxu1 %v8597_v11  ;;  %v8639_v11 = vld [vmem:[%s12252_s3 + $0x18] sm:$0xff]  }
 0x20c   : > { %8275 = vmatprep.subr.bf16.mxu1 %v8595_v54  ;;  %5547 = vmatmul.mubr.bf16.gmra.mxu0 %v11273_v50 }
 0x20d   : > { %5554 = vmatprep.mubr.bf16.mxu0 %v11278_v61 }
 0x20f   : > { %8276 = vmatpush3.bf16.msra.mxu1 %v8595_v54 }
 0x210   : > { %8277 = vmatprep.subr.bf16.mxu1 %v8598_v15 }
 0x212   : > { %8262 = vmatmul.mubr.bf16.gmra.mxu1 %v8599_v29  ;;  %v7597_v55 = vpop.f32.mrf.mxu1  ;;  %v8638_v29 = vld [vmem:[#allocation2 + $0x158] ss:$12 sps:$4 sm:$0xff]  }
 0x213   : > { %8278 = vmatpush3.bf16.msra.mxu1 %v8598_v15  ;;  %8265 = vmatprep.mubr.bf16.mxu1 %v8606_v34  ;;  %v8637_v15 = vld [vmem:[%s12252_s3 + $0x1a0] sm:$0xff]   ;;  %v8642_v34 = vld [vmem:[%s12252_s3 + $0x50] sm:$0xff]  }
 0x214   : > { %8279 = vmatprep.subr.bf16.mxu1 %v8604_v43  ;;  %5555 = vmatmul.mubr.bf16.gmra.mxu0 %v11287_v25  ;;  %v7598_v51 = vpop.f32.mrf.mxu1 }
 0x215   : > { %5562 = vmatprep.mubr.bf16.mxu0 %v11292_v48  ;;  %v7599_v22 = vadd.f32 %v7598_v51, %v7597_v55  ;;  %v8646_v51 = vld [vmem:[%s12252_s3 + $0x48] sm:$0xff]  }
 0x216   : > { %v7600_v52 = vpop.f32.mrf.mxu1 }
 0x217   : > { %8280 = vmatpush3.bf16.msra.mxu1 %v8604_v43 }
 0x218   : > { %8281 = vmatprep.subr.bf16.mxu1 %v8607_v7  ;;  %v7601_v58 = vpop.f32.mrf.mxu1 }
 0x219   : > { %v7602_v26 = vadd.f32 %v7601_v58, %v7600_v52  ;;  %v8654_v58 = vld [vmem:[%s12252_s3 + $0x40] sm:$0xff]  }
 0x21a   : > { %8266 = vmatmul.mubr.bf16.gmra.mxu1 %v8608_v44  ;;  %v8640_v44 = vld [vmem:[#allocation2 + $0x170] ss:$12 sps:$4 sm:$0xff]  }
 0x21b   : > { %8282 = vmatpush3.bf16.msra.mxu1 %v8607_v7  ;;  %8285 = vmatprep.mubr.bf16.mxu1 %v8612_v53 }
 0x21c   : > { %8283 = vmatprep.subr.bf16.mxu1 %v8614_v18  ;;  %5563 = vmatmul.mubr.bf16.gmra.mxu0 %v11300_v31 }
 0x21d   : > { %8317 = vmatprep.mubr.bf16.mxu0 %v8615_v13 }
 0x21f   : > { %8284 = vmatpush3.bf16.msra.mxu1 %v8614_v18  ;;  %v8159_v9 = vpop.f32.mrf.mxu0  ;;  %v8641_v18 = vld [vmem:[%s12252_s3 + $0x1d8] sm:$0xff]  }
 0x220   : > { %7917 = vmatprep.subr.bf16.mxu1 %v8617_v32 }
 0x221   : > { %v3736_v1 = vpop.f32.mrf.mxu0 }
 0x222   : > { %8286 = vmatmul.mubr.bf16.vlgmr.msra.gmra.mxu1 %v8618_v33  ;;  %v11336_v23 = vadd.f32 %v7599_v22, %v3736_v1  ;;  %v8653_v1 = vld [vmem:[%s12252_s3 + $0x1c8] sm:$0xff]  }
 0x223   : > { %7918 = vmatpush3.bf16.msra.mxu1 %v8619_v2  ;;  %8289 = vmatprep.mubr.bf16.mxu1 %v8620_v38  ;;  %v8160_v19 = vpop.f32.mrf.mxu0  ;;  %v8644_v2 = vld [vmem:[%s12252_s3 + $0x10] sm:$0xff]  }
 0x224   : > { %7919 = vmatprep.subr.bf16.mxu1 %v8622_v27  ;;  %8318 = vmatmul.mubr.bf16.vlgmr.msra.gmra.mxu0 %v8612_v53  ;;  %v7603_v63 = vpop.f32.mrf.mxu1  ;;  %v8643_v27 = vld [vmem:[%s12252_s3 + $0x198] sm:$0xff]  }
 0x225   : > { %8321 = vmatprep.mubr.bf16.mxu0 %v8618_v33  ;;  %7998 = vmatpush3.bf16.msra.mxu0 %v8623_v47  ;;  %v3739_v24 = vpop.f32.mrf.mxu0 }
 0x226   : > { %7999 = vmatprep.subr.bf16.mxu0 %v8625_v28  ;;  %v7604_v49 = vpop.f32.mrf.mxu1  ;;  %v11350_v6 = vadd.f32 %v7602_v26, %v3739_v24  ;;  %v8660_v24 = vld [vmem:[%s12252_s3 + $0x1c0] sm:$0xff]  }
 0x227   : > { %7920 = vmatpush3.bf16.msra.mxu1 %v8624_v4  ;;  %v7605_v45 = vadd.f32 %v7604_v49, %v7603_v63  ;;  %v8645_v4 = vld [vmem:[%s12252_s3 + $0x1d0] sm:$0xff]   ;;  %v8659_v63 = vld [vmem:[%s12252_s3] sm:$0xff]  }
 0x228   : > { %7921 = vmatprep.subr.bf16.mxu1 %v8626_v39  ;;  %v7606_v10 = vpop.f32.mrf.mxu1  ;;  %v11354_v57 = vpop.f32.mrf.mxu0  ;;  %v8649_v39 = vld [vmem:[%s12252_s3 + $0x8] sm:$0xff]  }
 0x229   : > { %8000 = vmatpush3.bf16.msra.mxu0 %v8627_v5  ;;  %v11352_v8 = vadd.f32 %v8159_v9, %v7605_v45  ;;  %v8647_v9 = vld [vmem:[%s12252_s3 + $0x190] sm:$0xff]   ;;  %v8662_v45 = vld [vmem:[%s12252_s3 + $0x238] sm:$0xff]  }
 0x22a   : > { %8290 = vmatmul.mubr.bf16.gmra.mxu1 %v8628_v21  ;;  %8001 = vmatprep.subr.bf16.mxu0 %v8631_v40  ;;  %v7607_v54 = vpop.f32.mrf.mxu1  ;;  %v3752_v43 = vpop.f32.mrf.mxu0 }
 0x22b   : > { %7922 = vmatpush3.bf16.msra.mxu1 %v8629_v14  ;;  %8293 = vmatprep.mubr.bf16.mxu1 %v8630_v30  ;;  %v7608_v7 = vadd.f32 %v7607_v54, %v7606_v10  ;;  %v8648_v14 = vld [vmem:[#allocation2 + $0x188] ss:$12 sps:$4 sm:$0xff]   ;;  %v8650_v54 = vld [vmem:[#allocation2 + $0xc0] ss:$12 sps:$4 sm:$0xff]  }
 0x22c   : > { %7923 = vmatprep.subr.bf16.mxu1 %v8632_v20  ;;  %8322 = vmatmul.mubr.bf16.gmra.mxu0 %v8620_v38  ;;  %v11370_v13 = vpop.f32.mrf.mxu0  ;;  %v8652_v20 = vld [vmem:[#allocation2 + $0xc4] ss:$12 sps:$4 sm:$0xff]  }
 0x22d   : > { %8325 = vmatprep.mubr.bf16.mxu0 %v8628_v21  ;;  %8002 = vmatpush3.bf16.msra.mxu0 %v8633_v12  ;;  %v7609_v53 = vpop.f32.mrf.mxu1  ;;  %v11368_v32 = vadd.f32 %v8160_v19, %v7608_v7 }
 0x22e   : > { %8003 = vmatprep.subr.bf16.mxu0 %v8635_v36  ;;  %v3755_v38 = vpop.f32.mrf.mxu0  ;;  %v8658_v36 = vld [vmem:[#allocation2 + $0xf4] ss:$12 sps:$4 sm:$0xff]  }
 0x22f   : > { %7924 = vmatpush3.bf16.msra.mxu1 %v8634_v41  ;;  %v7610_v33 = vpop.f32.mrf.mxu1  ;;  %v8655_v41 = vld [vmem:[%s12252_s3 + $0x188] sm:$0xff]  }
 0x230   : > { %7925 = vmatprep.subr.bf16.mxu1 %v8636_v35  ;;  %v7611_v55 = vadd.f32 %v7610_v33, %v7609_v53  ;;  %v11386_v28 = vpop.f32.mrf.mxu0  ;;  %v8656_v33 = vld [vmem:[#allocation2 + $0xf0] ss:$12 sps:$4 sm:$0xff]  }
 0x231   : > { %8004 = vmatpush3.bf16.msra.mxu0 %v8637_v15  ;;  %v7612_v47 = vpop.f32.mrf.mxu1 }
 0x232   : > { %8294 = vmatmul.mubr.bf16.gmra.mxu1 %v8638_v29  ;;  %8005 = vmatprep.subr.bf16.mxu0 %v8641_v18  ;;  %v11384_v22 = vadd.f32 %v7611_v55, %v3752_v43  ;;  %v3768_v5 = vpop.f32.mrf.mxu0  ;;  %v8665_v55 = vld [vmem:[#allocation2 + $0x10c] ss:$12 sps:$4 sm:$0xff]  }
 0x233   : > { %7926 = vmatpush3.bf16.msra.mxu1 %v8639_v11  ;;  %8297 = vmatprep.mubr.bf16.mxu1 %v8640_v44  ;;  %v7613_v52 = vpop.f32.mrf.mxu1 }
 0x234   : > { %7927 = vmatprep.subr.bf16.mxu1 %v8642_v34  ;;  %8326 = vmatmul.mubr.bf16.gmra.mxu0 %v8630_v30  ;;  %v7614_v21 = vadd.f32 %v7613_v52, %v7612_v47  ;;  %v11402_v40 = vpop.f32.mrf.mxu0  ;;  %v8666_v34 = vld [vmem:[%s12252_s3 + $0x230] sm:$0xff]   ;;  %v8668_v47 = vld [vmem:[%s12252_s3 + $0x220] sm:$0xff]  }
 0x235   : > { %8329 = vmatprep.mubr.bf16.mxu0 %v8638_v29  ;;  %8006 = vmatpush3.bf16.msra.mxu0 %v8643_v27  ;;  %v7615_v26 = vpop.f32.mrf.mxu1  ;;  %v8661_v29 = vld [vmem:[%s12252_s3 + $0x180] sm:$0xff]  }
 0x236   : > { %8007 = vmatprep.subr.bf16.mxu0 %v8645_v4  ;;  %v11400_v30 = vadd.f32 %v7614_v21, %v3755_v38  ;;  %v3771_v49 = vpop.f32.mrf.mxu0  ;;  %v8669_v21 = vld [vmem:[%s12252_s3 + $0x218] sm:$0xff]  }
 0x237   : > { %7928 = vmatpush3.bf16.msra.mxu1 %v8644_v2  ;;  %v7616_v19 = vpop.f32.mrf.mxu1  ;;  %v8667_v2 = vld [vmem:[%s12252_s3 + $0x228] sm:$0xff]  }
 0x238   : > { %7929 = vmatprep.subr.bf16.mxu1 %v8646_v51  ;;  %v7617_v12 = vadd.f32 %v7616_v19, %v7615_v26  ;;  %v11419_v11 = vpop.f32.mrf.mxu0 }
 0x239   : > { %8008 = vmatpush3.bf16.msra.mxu0 %v8647_v9  ;;  %v7618_v35 = vpop.f32.mrf.mxu1 }
 0x23a   : > { %8298 = vmatmul.mubr.bf16.gmra.mxu1 %v8648_v14  ;;  %8009 = vmatprep.subr.bf16.mxu0 %v8653_v1  ;;  %v11417_v10 = vadd.f32 %v11354_v57, %v7617_v12  ;;  %v11427_v43 = vpop.f32.mrf.mxu0 }
 0x23b   : > { %7930 = vmatpush3.bf16.msra.mxu1 %v8649_v39  ;;  %5860 = vmatprep.mubr.bf16.mxu1 %v8652_v20  ;;  %v7619_v15 = vpop.f32.mrf.mxu1  ;;  %v8663_v20 = vld [vmem:[#allocation2 + $0x108] ss:$12 sps:$4 sm:$0xff]  }
 0x23c   : > { %7931 = vmatprep.subr.bf16.mxu1 %v8654_v58  ;;  %8330 = vmatmul.mubr.bf16.gmra.mxu0 %v8640_v44  ;;  %v7620_v57 = vadd.f32 %v7619_v15, %v7618_v35  ;;  %v11432_v18 = vpop.f32.mrf.mxu0  ;;  %v8671_v35 = vld [vmem:[%s12252_s3 + $0x208] sm:$0xff]  }
 0x23d   : > { %8010 = vmatpush3.bf16.msra.mxu0 %v8655_v41  ;;  %6406 = vmatprep.mubr.bf16.mxu0 %v8658_v36  ;;  %v7621_v7 = vpop.f32.mrf.mxu1  ;;  %v8670_v41 = vld [vmem:[%s12252_s3 + $0x210] sm:$0xff]  }
 0x23e   : > { %8011 = vmatprep.subr.bf16.mxu0 %v8660_v24  ;;  %v11430_v44 = vadd.f32 %v11370_v13, %v7620_v57  ;;  %v3787_v27 = vpop.f32.mrf.mxu0 }
 0x23f   : > { %7932 = vmatpush3.bf16.msra.mxu1 %v8659_v63  ;;  %v7622_v53 = vpop.f32.mrf.mxu1 }
 0x240   : > { %8333 = vmatprep.subr.bf16.mxu1 %v8662_v45  ;;  %v7623_v38 = vadd.f32 %v7622_v53, %v7621_v7 }
 0x241   : > { %8012 = vmatpush3.bf16.msra.mxu0 %v8661_v29  ;;  %v7624_v4 = vpop.f32.mrf.mxu1 }
 0x242   : > { %5861 = vmatmul.mubr.bf16.vlgmr.msra.gmra.mxu1 %v8650_v54  ;;  %v11438_v51 = vadd.f32 %v7623_v38, %v3768_v5  ;;  %v11440_v13 = vpop.f32.mrf.mxu0  ;;  %v11502_v38 = vld [vmem:[%s12254_s5 + $0x38] sm:$0xff]  }
 0x243   : > { %8334 = vmatpush3.bf16.msra.mxu1 %v8662_v45  ;;  %5868 = vmatprep.mubr.bf16.mxu1 %v11172_v17  ;;  %v7625_v17 = vpop.f32.mrf.mxu1 }
 0x244   : > { %8335 = vmatprep.subr.bf16.mxu1 %v8666_v34  ;;  %6407 = vmatmul.mubr.bf16.vlgmr.msra.gmra.mxu0 %v8656_v33  ;;  %v11445_v39 = vpop.f32.mrf.mxu0  ;;  %v7626_v52 = vadd.f32 %v7625_v17, %v7624_v4 }
 0x245   : > { %6414 = vmatprep.mubr.bf16.mxu0 %v8665_v55  ;;  %v7627_v9 = vpop.f32.mrf.mxu1 }
 0x246   : > { %v11448_v14 = vadd.f32 %v7626_v52, %v3771_v49  ;;  %v11450_v58 = vpop.f32.mrf.mxu0 }
 0x247   : > { %8336 = vmatpush3.bf16.msra.mxu1 %v8666_v34  ;;  %v7628_v5 = vpop.f32.mrf.mxu1  ;;  %v8672_v34 = vld [vmem:[%s12252_s3 + $0x200] sm:$0xff]  }
 0x248   : > { %8337 = vmatprep.subr.bf16.mxu1 %v8667_v2  ;;  %v11456_v1 = vpop.f32.mrf.mxu0  ;;  %v7629_v26 = vadd.f32 %v7628_v5, %v7627_v9 }
 0x249   : > { %v7630_v63 = vpop.f32.mrf.mxu1 }
 0x24a   : > { %5869 = vmatmul.mubr.bf16.gmra.mxu1 %v11177_v0  ;;  %v11459_v0 = vadd.f32 %v11386_v28, %v7629_v26  ;;  %v11461_v19 = vpop.f32.mrf.mxu0 }
 0x24b   : > { %5876 = vmatprep.mubr.bf16.mxu1 %v11188_v59  ;;  %8338 = vmatpush3.bf16.msra.mxu1 %v8667_v2  ;;  %v7631_v59 = vpop.f32.mrf.mxu1 }
 0x24c   : > { %8339 = vmatprep.subr.bf16.mxu1 %v8668_v47  ;;  %6415 = vmatmul.mubr.bf16.gmra.mxu0 %v8663_v20  ;;  %v11467_v49 = vpop.f32.mrf.mxu0  ;;  %v7632_v12 = vadd.f32 %v7631_v59, %v7630_v63 }
 0x24d   : > { %6422 = vmatprep.mubr.bf16.mxu0 %v11223_v37  ;;  %v7633_v24 = vpop.f32.mrf.mxu1 }
 0x24e   : > { %v11471_v28 = vadd.f32 %v11402_v40, %v7632_v12  ;;  %v11473_v45 = vpop.f32.mrf.mxu0 }
 0x24f   : > { %8340 = vmatpush3.bf16.msra.mxu1 %v8668_v47  ;;  %v7634_v36 = vpop.f32.mrf.mxu1 }
 0x250   : > { %8341 = vmatprep.subr.bf16.mxu1 %v8669_v21  ;;  %v11479_v54 = vpop.f32.mrf.mxu0  ;;  %v7635_v15 = vadd.f32 %v7634_v36, %v7633_v24 }
 0x251   : > { %v7636_v29 = vpop.f32.mrf.mxu1 }
 0x252   : > { %5877 = vmatmul.mubr.bf16.gmra.mxu1 %v11205_v16  ;;  %v11482_v16 = vadd.f32 %v7635_v15, %v11427_v43  ;;  %v11484_v40 = vpop.f32.mrf.mxu0 }
 0x253   : > { %5884 = vmatprep.mubr.bf16.mxu1 %v11207_v46  ;;  %8342 = vmatpush3.bf16.msra.mxu1 %v8669_v21  ;;  %v7637_v46 = vpop.f32.mrf.mxu1 }
 0x254   : > { %8343 = vmatprep.subr.bf16.mxu1 %v8670_v41  ;;  %6423 = vmatmul.mubr.bf16.gmra.mxu0 %v11239_v56  ;;  %v11491_v57 = vpop.f32.mrf.mxu0  ;;  %v7638_v7 = vadd.f32 %v7637_v46, %v7636_v29 }
 0x255   : > { %6430 = vmatprep.mubr.bf16.mxu0 %v11244_v3  ;;  %v7639_v53 = vpop.f32.mrf.mxu1 }
 0x256   : > { %v11494_v43 = vadd.f32 %v7638_v7, %v3787_v27  ;;  %v11496_v2 = vpop.f32.mrf.mxu0 }
 0x257   : > { %8344 = vmatpush3.bf16.msra.mxu1 %v8670_v41  ;;  %v7640_v33 = vpop.f32.mrf.mxu1 }
 0x258   : > { %8345 = vmatprep.subr.bf16.mxu1 %v8671_v35  ;;  %v11504_v55 = vpop.f32.mrf.mxu0  ;;  %v7641_v4 = vadd.f32 %v7640_v33, %v7639_v53 }
 0x259   : > { %v7642_v17 = vpop.f32.mrf.mxu1 }
 0x25a   : > { %5885 = vmatmul.mubr.bf16.gmra.mxu1 %v11225_v60  ;;  %v11507_v60 = vadd.f32 %v11419_v11, %v7641_v4  ;;  %v11509_v27 = vpop.f32.mrf.mxu0 }
 0x25b   : > { %5892 = vmatprep.mubr.bf16.mxu1 %v11223_v37  ;;  %8346 = vmatpush3.bf16.msra.mxu1 %v8671_v35  ;;  %v7643_v37 = vpop.f32.mrf.mxu1 }
 0x25c   : > { %8347 = vmatprep.subr.bf16.mxu1 %v8672_v34  ;;  %6431 = vmatmul.mubr.bf16.gmra.mxu0 %v11259_v62  ;;  %v11514_v47 = vpop.f32.mrf.mxu0  ;;  %v7644_v52 = vadd.f32 %v7643_v37, %v7642_v17  ;;  %v8711_v17 = vld [vmem:[#allocation2] sm:$0xff] }
 0x25d   : > { %6438 = vmatprep.mubr.bf16.mxu0 %v11264_v42  ;;  %v7479_v37 = vcombine.high %v8711_v17, %v8711_v17 }
 0x25e   : > { %v11518_v5 = vadd.f32 %v11432_v18, %v7644_v52  ;;  %v11520_v11 = vpop.f32.mrf.mxu0 }
 0x25f   : > { %8348 = vmatpush3.bf16.msra.mxu1 %v8672_v34 }
 0x260   : > { %8365 = vmatprep.subr.bf16.mxu1 %v11502_v38  ;;  %v7677_v9 = vpop.f32.mrf.mxu1  ;;  %v11523_v20 = vpop.f32.mrf.mxu0 }
 0x262   : > { %5893 = vmatmul.mubr.bf16.gmra.mxu1 %v11239_v56  ;;  %v7678_v21 = vpop.f32.mrf.mxu1  ;;  %v11526_v41 = vpop.f32.mrf.mxu0 }
 0x263   : > { %5900 = vmatprep.mubr.bf16.mxu1 %v11244_v3  ;;  %v7679_v26 = vadd.f32 %v7678_v21, %v7677_v9 }
 0x264   : > { %v7680_v63 = vpop.f32.mrf.mxu1  ;;  %6439 = vmatmul.mubr.bf16.gmra.mxu0 %v11273_v50  ;;  %v11530_v18 = vpop.f32.mrf.mxu0 }
 0x265   : > { %v3994_v59 = vadd.f32 %v7679_v26, %v11336_v23  ;;  %6446 = vmatprep.mubr.bf16.mxu0 %v11278_v61 }
 0x266   : > { %v7681_v56 = vpop.f32.mrf.mxu1  ;;  %v11537_v35 = vpop.f32.mrf.mxu0 }
 0x267   : > { %v7682_v12 = vadd.f32 %v7681_v56, %v7680_v63  ;;  %v11533_v24 = vadd.f32 %v11445_v39, %v3994_v59  ;;  %v8673_v63 = vld [vmem:[#allocation2 + $0xf8] ss:$12 sps:$4 sm:$0xff]  }
 0x268   : > { %v7683_v3 = vpop.f32.mrf.mxu1  ;;  %v11540_v15 = vpop.f32.mrf.mxu0 }
 0x269   : > { %v3997_v36 = vadd.f32 %v7682_v12, %v11350_v6 }
 0x26a   : > { %5901 = vmatmul.mubr.bf16.gmra.mxu1 %v11259_v62  ;;  %v7684_v23 = vpop.f32.mrf.mxu1  ;;  %v11546_v7 = vpop.f32.mrf.mxu0 }
 0x26b   : > { %5908 = vmatprep.mubr.bf16.mxu1 %v11264_v42  ;;  %v7685_v29 = vadd.f32 %v7684_v23, %v7683_v3  ;;  %v11543_v46 = vadd.f32 %v11456_v1, %v3997_v36 }
 0x26c   : > { %v7686_v34 = vpop.f32.mrf.mxu1  ;;  %6447 = vmatmul.mubr.bf16.gmra.mxu0 %v11287_v25  ;;  %v11550_v6 = vpop.f32.mrf.mxu0 }
 0x26d   : > { %v4002_v39 = vadd.f32 %v7685_v29, %v11352_v8  ;;  %6454 = vmatprep.mubr.bf16.mxu0 %v11292_v48 }
 0x26e   : > { %v7687_v62 = vpop.f32.mrf.mxu1  ;;  %v11557_v4 = vpop.f32.mrf.mxu0 }
 0x26f   : > { %v7688_v42 = vadd.f32 %v7687_v62, %v7686_v34  ;;  %v11553_v53 = vadd.f32 %v11440_v13, %v4002_v39  ;;  %v8675_v39 = vld [vmem:[#allocation2 + $0x110] ss:$12 sps:$4 sm:$0xff]  }
 0x270   : > { %v7689_v33 = vpop.f32.mrf.mxu1  ;;  %v11560_v48 = vpop.f32.mrf.mxu0 }
 0x271   : > { %v4005_v1 = vadd.f32 %v7688_v42, %v11368_v32 }
 0x272   : > { %5909 = vmatmul.mubr.bf16.gmra.mxu1 %v11273_v50  ;;  %v7690_v8 = vpop.f32.mrf.mxu1  ;;  %v11566_v26 = vpop.f32.mrf.mxu0 }
 0x273   : > { %5916 = vmatprep.mubr.bf16.mxu1 %v11278_v61  ;;  %v7691_v52 = vadd.f32 %v7690_v8, %v7689_v33  ;;  %v11563_v9 = vadd.f32 %v11450_v58, %v4005_v1  ;;  %v8676_v33 = vld [vmem:[#allocation2 + $0x128] ss:$12 sps:$4 sm:$0xff]  }
 0x274   : > { %v7692_v13 = vpop.f32.mrf.mxu1  ;;  %6455 = vmatmul.mubr.bf16.gmra.mxu0 %v11300_v31  ;;  %v11569_v32 = vpop.f32.mrf.mxu0 }
 0x275   : > { %v4010_v21 = vadd.f32 %v7691_v52, %v11384_v22  ;;  %6462 = vmatprep.mubr.bf16.mxu0 %v7479_v37  ;;  %v7478_v22 = vcombine.low %v8711_v17, %v8711_v17  ;;  %v8678_v37 = vld [vmem:[%s12254_s5 + $0x28] sm:$0xff]  }
 0x276   : > { %v7693_v50 = vpop.f32.mrf.mxu1  ;;  %v11576_v12 = vpop.f32.mrf.mxu0 }
 0x277   : > { %v7694_v61 = vadd.f32 %v7693_v50, %v7692_v13  ;;  %v11572_v59 = vadd.f32 %v11467_v49, %v4010_v21 }
 0x278   : > { %v7695_v56 = vpop.f32.mrf.mxu1  ;;  %v11578_v31 = vpop.f32.mrf.mxu0 }
 0x279   : > { %v4013_v58 = vadd.f32 %v7694_v61, %v11400_v30  ;;  %v8677_v30 = vld [vmem:[%s12254_s5 + $0x30] sm:$0xff]   ;;  %v8679_v61 = vld [vmem:[#allocation2 + $0x140] ss:$12 sps:$4 sm:$0xff]  }
 0x27a   : > { %5917 = vmatmul.mubr.bf16.gmra.mxu1 %v11287_v25  ;;  %v7696_v3 = vpop.f32.mrf.mxu1  ;;  %v11584_v34 = vpop.f32.mrf.mxu0 }
 0x27b   : > { %8349 = vmatprep.mubr.bf16.mxu1 %v8673_v63  ;;  %v7697_v36 = vadd.f32 %v7696_v3, %v7695_v56  ;;  %v11581_v23 = vadd.f32 %v11479_v54, %v4013_v58  ;;  %v8681_v63 = vld [vmem:[%s12254_s5 + $0x20] sm:$0xff]  }
 0x27c   : > { %v7698_v29 = vpop.f32.mrf.mxu1  ;;  %6463 = vmatmul.mubr.bf16.gmra.mxu0 %v7478_v22  ;;  %v11589_v62 = vpop.f32.mrf.mxu0  ;;  %v8680_v22 = vld [vmem:[#allocation2 + $0x158] ss:$12 sps:$4 sm:$0xff]  }
 0x27d   : > { %v4018_v49 = vadd.f32 %v7697_v36, %v11417_v10 }
 0x27e   : > { %v7699_v25 = vpop.f32.mrf.mxu1  ;;  %v11595_v8 = vpop.f32.mrf.mxu0 }
 0x27f   : > { %v7700_v42 = vadd.f32 %v7699_v25, %v7698_v29  ;;  %v11592_v1 = vadd.f32 %v11461_v19, %v4018_v49  ;;  %v8682_v49 = vld [vmem:[%s12254_s5 + $0x18] sm:$0xff]  }
 0x280   : > { %v7701_v54 = vpop.f32.mrf.mxu1  ;;  %v11601_v52 = vpop.f32.mrf.mxu0 }
 0x281   : > { %v4021_v10 = vadd.f32 %v7700_v42, %v11430_v44 }
 0x282   : > { %8350 = vmatmul.mubr.bf16.vlgmr.msra.gmra.mxu1 %v8675_v39  ;;  %v7702_v17 = vpop.f32.mrf.mxu1 }
 0x283   : > { %8366 = vmatpush3.bf16.msra.mxu1 %v11502_v38  ;;  %8353 = vmatprep.mubr.bf16.mxu1 %v8676_v33  ;;  %v7703_v13 = vadd.f32 %v7702_v17, %v7701_v54  ;;  %v11604_v19 = vadd.f32 %v11473_v45, %v4021_v10  ;;  %v11607_v50 = vpop.f32.mrf.mxu0  ;;  %v8683_v54 = vld [vmem:[#allocation2 + $0x170] ss:$12 sps:$4 sm:$0xff]  }
 0x284   : > { %8367 = vmatprep.subr.bf16.mxu1 %v8677_v30  ;;  %v7704_v21 = vpop.f32.mrf.mxu1  ;;  %v8685_v10 = vld [vmem:[%s12254_s5 + $0x10] sm:$0xff]  }
 0x285   : > { %v4026_v44 = vadd.f32 %v7703_v13, %v11438_v51  ;;  %v11612_v56 = vpop.f32.mrf.mxu0  ;;  %v8684_v13 = vld [vmem:[#allocation2 + $0x188] ss:$12 sps:$4 sm:$0xff]  }
 0x286   : > { %v7705_v38 = vpop.f32.mrf.mxu1 }
 0x287   : > { %8368 = vmatpush3.bf16.msra.mxu1 %v8677_v30  ;;  %v7706_v58 = vadd.f32 %v7705_v38, %v7704_v21  ;;  %v11615_v45 = vadd.f32 %v11491_v57, %v4026_v44  ;;  %v11618_v36 = vpop.f32.mrf.mxu0 }
 0x288   : > { %8369 = vmatprep.subr.bf16.mxu1 %v8678_v37 }
 0x289   : > { %12637 = vst [vmem:[#allocation33_spill] sm:$0xff] %v11615_v45  ;;  %v4029_v51 = vadd.f32 %v7706_v58, %v11448_v14  ;;  %v11623_v25 = vpop.f32.mrf.mxu0 }
 0x28a   : > { %v7707_v3 = vpop.f32.mrf.mxu1  ;;  %8354 = vmatmul.mubr.bf16.gmra.mxu1 %v8679_v61  ;;  %v8686_v61 = vld [vmem:[%s12254_s5 + $0x8] sm:$0xff]  }
 0x28b   : > { %8370 = vmatpush3.bf16.msra.mxu1 %v8678_v37  ;;  %8357 = vmatprep.mubr.bf16.mxu1 %v8680_v22  ;;  %v11626_v57 = vadd.f32 %v11504_v55, %v4029_v51  ;;  %v11629_v14 = vpop.f32.mrf.mxu0 }
 0x28c   : > { %v7708_v29 = vpop.f32.mrf.mxu1  ;;  %8371 = vmatprep.subr.bf16.mxu1 %v8681_v63 }
 0x28d   : > { %v7709_v39 = vadd.f32 %v7708_v29, %v7707_v3  ;;  %12638 = vst [vmem:[#allocation15_spill] sm:$0xff] %v11626_v57  ;;  %v11634_v17 = vpop.f32.mrf.mxu0  ;;  %v8687_v3 = vld [vmem:[#allocation2 + $0x1a0] ss:$12 sps:$4 sm:$0xff]  }
 0x28e   : > { %v7710_v30 = vpop.f32.mrf.mxu1  ;;  %v8689_v29 = vld [vmem:[%s8785_s12 + $0x40] sm:$0xff]  }
 0x28f   : > { %v4034_v42 = vadd.f32 %v7709_v39, %v11459_v0  ;;  %8372 = vmatpush3.bf16.msra.mxu1 %v8681_v63  ;;  %v11640_v44 = vpop.f32.mrf.mxu0  ;;  %v8688_v39 = vld [vmem:[%s12254_s5] sm:$0xff]  }
 0x290   : > { %v7711_v33 = vpop.f32.mrf.mxu1  ;;  %8373 = vmatprep.subr.bf16.mxu1 %v8682_v49 }
 0x291   : > { %v7712_v37 = vadd.f32 %v7711_v33, %v7710_v30  ;;  %v11637_v55 = vadd.f32 %v11484_v40, %v4034_v42  ;;  %v11645_v63 = vpop.f32.mrf.mxu0 }
 0x292   : > { %v7713_v21 = vpop.f32.mrf.mxu1  ;;  %8358 = vmatmul.mubr.bf16.gmra.mxu1 %v8683_v54 }
 0x293   : > { %v4037_v0 = vadd.f32 %v7712_v37, %v11471_v28  ;;  %8374 = vmatpush3.bf16.msra.mxu1 %v8682_v49  ;;  %8361 = vmatprep.mubr.bf16.mxu1 %v8684_v13  ;;  %v11651_v51 = vpop.f32.mrf.mxu0 }
 0x294   : > { %v7714_v38 = vpop.f32.mrf.mxu1  ;;  %8375 = vmatprep.subr.bf16.mxu1 %v8685_v10 }
 0x295   : > { %v7715_v58 = vadd.f32 %v7714_v38, %v7713_v21  ;;  %v11648_v40 = vadd.f32 %v11496_v2, %v4037_v0  ;;  %v11657_v30 = vpop.f32.mrf.mxu0 }
 0x296   : > { %v7716_v22 = vpop.f32.mrf.mxu1 }
 0x297   : > { %12639 = vst [vmem:[#allocation10_spill] sm:$0xff] %v11648_v40  ;;  %v4042_v28 = vadd.f32 %v7715_v58, %v11482_v16  ;;  %8376 = vmatpush3.bf16.msra.mxu1 %v8685_v10  ;;  %v11663_v54 = vpop.f32.mrf.mxu0 }
 0x298   : > { %v7717_v49 = vpop.f32.mrf.mxu1  ;;  %8377 = vmatprep.subr.bf16.mxu1 %v8686_v61 }
 0x299   : > { %v7718_v42 = vadd.f32 %v7717_v49, %v7716_v22  ;;  %v11660_v2 = vadd.f32 %v11514_v47, %v4042_v28  ;;  %v11665_v37 = vpop.f32.mrf.mxu0  ;;  %v8690_v47 = vld [vmem:[%s8785_s12 + $0x48] sm:$0xff]  }
 0x29a   : > { %v7719_v33 = vpop.f32.mrf.mxu1  ;;  %8362 = vmatmul.mubr.bf16.gmra.mxu1 %v8687_v3 }
 0x29b   : > { %12640 = vst [vmem:[#allocation31_spill] sm:$0xff] %v11660_v2  ;;  %v4045_v16 = vadd.f32 %v7718_v42, %v11494_v43  ;;  %8378 = vmatpush3.bf16.msra.mxu1 %v8686_v61  ;;  %8381 = vmatprep.mubr.bf16.mxu1 %v8689_v29  ;;  %v11672_v58 = vpop.f32.mrf.mxu0  ;;  %v8691_v43 = vld [vmem:[%s8785_s12 + $0x50] sm:$0xff]  }
 0x29c   : > { %v7720_v10 = vpop.f32.mrf.mxu1  ;;  %8379 = vmatprep.subr.bf16.mxu1 %v8688_v39 }
 0x29d   : > { %v7721_v13 = vadd.f32 %v7720_v10, %v7719_v33  ;;  %v11668_v21 = vadd.f32 %v11523_v20, %v4045_v16  ;;  %v11675_v22 = vpop.f32.mrf.mxu0  ;;  %v8692_v16 = vld [vmem:[%s8785_s12 + $0x58] sm:$0xff]  }
 0x29e   : > { %v7722_v0 = vpop.f32.mrf.mxu1 }
 0x29f   : > { %12641 = vst [vmem:[#allocation14_spill] sm:$0xff] %v11668_v21  ;;  %v4050_v38 = vadd.f32 %v7721_v13, %v11507_v60  ;;  %8380 = vmatpush3.bf16.msra.mxu1 %v8688_v39  ;;  %v11681_v49 = vpop.f32.mrf.mxu0 }
 0x2a0   : > { %v7723_v61 = vpop.f32.mrf.mxu1 }
 0x2a1   : > { %v7724_v3 = vadd.f32 %v7723_v61, %v7722_v0  ;;  %v11678_v28 = vadd.f32 %v11509_v27, %v4050_v38  ;;  %v11683_v42 = vpop.f32.mrf.mxu0  ;;  %v8693_v27 = vld [vmem:[%s8785_s12 + $0x60] sm:$0xff]  }
 0x2a2   : > { %v8223_v29 = vpop.f32.mrf.mxu1  ;;  %8382 = vmatmul.mubr.bf16.vlgmr.msra.gmra.mxu1 %v8690_v47 }
 0x2a3   : > { %12642 = vst [vmem:[#allocation19_spill] sm:$0xff] %v11678_v28  ;;  %v4053_v20 = vadd.f32 %v7724_v3, %v11518_v5  ;;  %8385 = vmatprep.mubr.bf16.mxu1 %v8691_v43 }
 0x2a4   : > { %v4637_v60 = vpop.f32.mrf.mxu1  ;;  %v7853_v10 = vpop.f32.mrf.mxu0 }
 0x2a5   : > { %v11686_v39 = vadd.f32 %v11520_v11, %v4053_v20  ;;  %v8694_v20 = vld [vmem:[%s8785_s12 + $0x68] sm:$0xff]  }
 0x2a6   : > { %v8224_v33 = vpop.f32.mrf.mxu1  ;;  %v7854_v0 = vpop.f32.mrf.mxu0 }
 0x2a7   : > { %12643 = vst [vmem:[#allocation35_spill] sm:$0xff] %v11686_v39  ;;  %v11690_v47 = vadd.f32 %v7854_v0, %v7853_v10  ;;  %v8695_v39 = vld [vmem:[%s8785_s12 + $0x70] sm:$0xff]  }
 0x2a8   : > { %v4640_v13 = vpop.f32.mrf.mxu1  ;;  %v7856_v38 = vpop.f32.mrf.mxu0 }
 0x2a9   : > { %12644 = vst [vmem:[#allocation13_spill] sm:$0xff] %v11690_v47  ;;  %v7759_v47 = vadd.f32 %v11530_v18, %v11526_v41 }
 0x2aa   : > { %v8227_v5 = vpop.f32.mrf.mxu1  ;;  %8386 = vmatmul.mubr.bf16.gmra.mxu1 %v8692_v16  ;;  %v7857_v61 = vpop.f32.mrf.mxu0 }
 0x2ab   : > { %8389 = vmatprep.mubr.bf16.mxu1 %v8693_v27  ;;  %v11692_v3 = vadd.f32 %v7857_v61, %v7856_v38  ;;  %v4638_v40 = vadd.f32 %v7759_v47, %v4637_v60  ;;  %v12648_v60 = vld [vmem:[#allocation4_spill] sm:$0xff] }
 0x2ac   : > { %v4653_v43 = vpop.f32.mrf.mxu1  ;;  %v7859_v21 = vpop.f32.mrf.mxu0 }
 0x2ad   : > { %12645 = vst [vmem:[#allocation24_spill] sm:$0xff] %v11692_v3  ;;  %v8696_v3 = vld [vmem:[%s8785_s12 + $0x78] sm:$0xff]   ;;  %v4700_v47 = vadd.f32 %v4638_v40, %v11533_v24  ;;  %v7780_v24 = vadd.f32 %v11601_v52, %v11595_v8 }
 0x2ae   : > { %v8228_v11 = vpop.f32.mrf.mxu1  ;;  %v7860_v28 = vpop.f32.mrf.mxu0 }
 0x2af   : > { %v11698_v57 = vadd.f32 %v7860_v28, %v7859_v21  ;;  %v7765_v21 = vadd.f32 %v11550_v6, %v11546_v7 }
 0x2b0   : > { %v11696_v2 = vpop.f32.mrf.mxu1  ;;  %v7862_v16 = vpop.f32.mrf.mxu0 }
 0x2b1   : > { %12646 = vst [vmem:[#allocation32_spill] sm:$0xff] %v11698_v57 }
 0x2b2   : > { %v11700_v10 = vpop.f32.mrf.mxu1  ;;  %8390 = vmatmul.mubr.bf16.gmra.mxu1 %v8694_v20  ;;  %v7863_v0 = vpop.f32.mrf.mxu0  ;;  %v4646_v20 = vadd.f32 %v8223_v29, %v7765_v21 }
 0x2b3   : > { %8393 = vmatprep.mubr.bf16.mxu1 %v8695_v39  ;;  %v11704_v38 = vadd.f32 %v7863_v0, %v7862_v16  ;;  %v7768_v39 = vadd.f32 %v11560_v48, %v11557_v4  ;;  %v7762_v16 = vadd.f32 %v11540_v15, %v11537_v35  ;;  %v3199_v0 = vld [vmem:[%s12253_s4] sm:$0x3]  ;;  %v7777_v48 = vadd.f32 %v11589_v62, %v11584_v34 }
 0x2b4   : > { %v11702_v27 = vpop.f32.mrf.mxu1  ;;  %v7865_v28 = vpop.f32.mrf.mxu0  ;;  %v4756_v4 = vld [vmem:[%s12255_s6] sm:$0x3]  ;;  %v4702_v15 = vadd.f32 %v4646_v20, %v11553_v53  ;;  %v7774_v53 = vadd.f32 %v11578_v31, %v11576_v12  ;;  %v7789_v31 = vadd.f32 %v11634_v17, %v11629_v14  ;;  %v11782_v14 = vadd.f32 %v11665_v37, %v11663_v54 }
 0x2b5   : > { %v4649_v7 = vadd.f32 %v8224_v33, %v7768_v39  ;;  %v4641_v29 = vadd.f32 %v7762_v16, %v4640_v13  ;;  %v12649_v33 = vld [vmem:[#allocation5_spill] sm:$0xff]  ;;  %v4662_v39 = vadd.f32 %v8227_v5, %v7777_v48  ;;  %v11748_v62 = vrot.slane %v4756_v4, %v12648_v60 }
 0x2b6   : > { %v11706_v61 = vpop.f32.mrf.mxu1  ;;  %v7866_v45 = vpop.f32.mrf.mxu0  ;;  %v11739_v21 = vrot.slane %v3199_v0, %v12649_v33  ;;  %v11756_v20 = vrot.slane %v4756_v4, %v12649_v33  ;;  %v11786_v17 = vadd.f32 %v11675_v22, %v11672_v58  ;;  %v4657_v54 = vadd.f32 %v7774_v53, %v11696_v2 }
 0x2b7   : > { %v11722_v41 = vadd.f32 %v7866_v45, %v7865_v28  ;;  %v11735_v45 = vrot.slane %v3199_v0, %v12648_v60  ;;  %v7771_v28 = vadd.f32 %v11569_v32, %v11566_v26  ;;  %v4703_v40 = vadd.f32 %v4649_v7, %v11563_v9 }
 0x2b8   : > { %v11713_v57 = vpop.f32.mrf.mxu1  ;;  %v7868_v6 = vpop.f32.mrf.mxu0  ;;  %v7783_v26 = vadd.f32 %v11612_v56, %v11607_v50  ;;  %v11762_v32 = vadd.f32 %v11623_v25, %v11618_v36  ;;  %v4701_v5 = vadd.f32 %v4641_v29, %v11543_v46  ;;  %v7792_v9 = vadd.f32 %v11645_v63, %v11640_v44 }
 0x2b9   : > { %12647 = vst [vmem:[#allocation12_spill] sm:$0xff] %v11722_v41  ;;  %v4654_v16 = vadd.f32 %v7771_v28, %v4653_v43  ;;  %v4722_v8 = vmul.f32 %v11735_v45, %v4702_v15  ;;  %v4720_v52 = vmul.f32 %v11735_v45, %v4700_v47  ;;  %v11775_v56 = vadd.f32 %v11657_v30, %v11651_v51 }
 0x2ba   : > { %v11724_v18 = vpop.f32.mrf.mxu1  ;;  %8394 = vmatmul.mubr.bf16.gmra.mxu1 %v8696_v3  ;;  %v7869_v3 = vpop.f32.mrf.mxu0  ;;  %v4706_v46 = vadd.f32 %v4662_v39, %v11592_v1  ;;  %v4665_v36 = vadd.f32 %v8228_v11, %v7780_v24  ;;  %v4723_v44 = vmul.f32 %v11735_v45, %v4703_v40  ;;  %v11792_v1 = vadd.f32 %v11683_v42, %v11681_v49 }
 0x2bb   : > { %v11743_v41 = vadd.f32 %v7869_v3, %v7868_v6  ;;  %v4721_v30 = vmul.f32 %v11735_v45, %v4701_v5  ;;  %v4704_v11 = vadd.f32 %v4654_v16, %v11572_v59  ;;  %v4742_v58 = vadd.f32 %v11739_v21, %v4722_v8 }
 0x2bc   : > { %v11731_v35 = vpop.f32.mrf.mxu1  ;;  %v7871_v13 = vpop.f32.mrf.mxu0  ;;  %v4740_v7 = vadd.f32 %v11739_v21, %v4720_v52  ;;  %v4726_v49 = vmul.f32 %v11735_v45, %v4706_v46  ;;  %v4707_v42 = vadd.f32 %v4665_v36, %v11604_v19  ;;  %v4678_v4 = vadd.f32 %v11700_v10, %v7789_v31 }
 0x2bd   : > { %v4743_v47 = vadd.f32 %v11739_v21, %v4723_v44  ;;  %v4724_v28 = vmul.f32 %v11735_v45, %v4704_v11  ;;  %v4705_v39 = vadd.f32 %v4657_v54, %v11581_v23  ;;  %v4670_v53 = vadd.f32 %v7783_v26, %v11702_v27 }
 0x2be   : > { %v11745_v34 = vpop.f32.mrf.mxu1  ;;  %v7872_v50 = vpop.f32.mrf.mxu0  ;;  %v4741_v19 = vadd.f32 %v11739_v21, %v4721_v30  ;;  %v4727_v23 = vmul.f32 %v11735_v45, %v4707_v42  ;;  %v4710_v27 = vadd.f32 %v4678_v4, %v11637_v55  ;;  %v4746_v31 = vadd.f32 %v11739_v21, %v4726_v49 }
 0x2bf   : > { %v11778_v25 = vadd.f32 %v7872_v50, %v7871_v13  ;;  %v4725_v44 = vmul.f32 %v11735_v45, %v4705_v39  ;;  %v4681_v55 = vadd.f32 %v11706_v61, %v7792_v9  ;;  %v4744_v30 = vadd.f32 %v11739_v21, %v4724_v28 }
 0x2c0   : > { %v11765_v12 = vpop.f32.mrf.mxu1  ;;  %v7874_v63 = vpop.f32.mrf.mxu0  ;;  %v4747_v61 = vadd.f32 %v11739_v21, %v4727_v23 }
 0x2c2   : > { %v8255_v43 = vpop.f32.mrf.mxu1  ;;  %v7875_v0 = vpop.f32.mrf.mxu0 }
 0x2c3   : > { %v4988_v51 = vmul.f32 %v8255_v43, %v11748_v62  ;;  %v11805_v59 = vadd.f32 %v7875_v0, %v7874_v63  ;;  %v12650_v63 = vld [vmem:[#allocation33_spill] sm:$0xff] }
 0x2c4   : > { %v4919_v37 = vpop.f32.mrf.mxu1  ;;  %v7877_v15 = vpop.f32.mrf.mxu0 }
 0x2c5   : > { %v5008_v22 = vadd.f32 %v11756_v20, %v4988_v51  ;;  %v4986_v6 = vmul.f32 %v11748_v62, %v4919_v37  ;;  %v4708_v51 = vadd.f32 %v4670_v53, %v12650_v63 }
 0x2c6   : > { %v8256_v2 = vpop.f32.mrf.mxu1  ;;  %v7878_v5 = vpop.f32.mrf.mxu0 }
 0x2c7   : > { %v5024_v48 = vadd.f32 %v5008_v22, %v4742_v58  ;;  %v5006_v29 = vadd.f32 %v11756_v20, %v4986_v6  ;;  %v4989_v3 = vmul.f32 %v8256_v2, %v11748_v62  ;;  %v11823_v26 = vadd.f32 %v7878_v5, %v7877_v15 }
 0x2c8   : > { %v4922_v10 = vpop.f32.mrf.mxu1  ;;  %v7880_v36 = vpop.f32.mrf.mxu0  ;;  %v4673_v6 = vadd.f32 %v11762_v32, %v11713_v57  ;;  %v4728_v15 = vmul.f32 %v11735_v45, %v4708_v51  ;;  %v4694_v57 = vadd.f32 %v11724_v18, %v11786_v17  ;;  %v4745_v32 = vadd.f32 %v11739_v21, %v4725_v44 }
 0x2c9   : > { %v5040_v24 = vmax.f32 %v5024_v48, 0.0  ;;  %v5022_v40 = vadd.f32 %v5006_v29, %v4740_v7  ;;  %v5009_v13 = vadd.f32 %v11756_v20, %v4989_v3  ;;  %v4987_v16 = vmul.f32 %v11748_v62, %v4922_v10 }
 0x2ca   : > { %v8259_v8 = vpop.f32.mrf.mxu1  ;;  %v7881_v22 = vpop.f32.mrf.mxu0  ;;  %v4730_v7 = vmul.f32 %v11735_v45, %v4710_v27  ;;  %v4686_v5 = vadd.f32 %v11775_v56, %v11731_v35  ;;  %v4697_v35 = vadd.f32 %v11745_v34, %v11792_v1  ;;  %v4748_v56 = vadd.f32 %v11739_v21, %v4728_v15 }
 0x2cb   : > { %5056 = vst [vmem:[%s11816_s11 + $0x10] sm:$0xff] %v5040_v24  ;;  %v5038_v52 = vmax.f32 %v5022_v40, 0.0  ;;  %v5025_v50 = vadd.f32 %v5009_v13, %v4743_v47  ;;  %v5007_v46 = vadd.f32 %v11756_v20, %v4987_v16  ;;  %v4992_v43 = vmul.f32 %v8259_v8, %v11748_v62  ;;  %v12651_v47 = vld [vmem:[#allocation10_spill] sm:$0xff]  ;;  %v12652_v40 = vld [vmem:[#allocation15_spill] sm:$0xff] }
 0x2cc   : > { %v4935_v11 = vpop.f32.mrf.mxu1  ;;  %v11839_v49 = vadd.f32 %v7881_v22, %v7880_v36  ;;  %v7883_v48 = vpop.f32.mrf.mxu0  ;;  %v4711_v3 = vadd.f32 %v4681_v55, %v12651_v47  ;;  %v4709_v13 = vadd.f32 %v4673_v6, %v12652_v40  ;;  %v4750_v18 = vadd.f32 %v11739_v21, %v4730_v7 }
 0x2cd   : > { %5054 = vst [vmem:[%s11816_s11] sm:$0xff] %v5038_v52  ;;  %v5041_v54 = vmax.f32 %v5025_v50, 0.0  ;;  %v5023_v37 = vadd.f32 %v5007_v46, %v4741_v19  ;;  %v5012_v58 = vadd.f32 %v11756_v20, %v4992_v43  ;;  %v4990_v0 = vmul.f32 %v11748_v62, %v4935_v11  ;;  %v12653_v46 = vld [vmem:[#allocation19_spill] sm:$0xff] }
 0x2ce   : > { %v8260_v9 = vpop.f32.mrf.mxu1  ;;  %v7884_v10 = vpop.f32.mrf.mxu0  ;;  %v4731_v50 = vmul.f32 %v11735_v45, %v4711_v3  ;;  %v4714_v36 = vadd.f32 %v4694_v57, %v12653_v46  ;;  %v4729_v11 = vmul.f32 %v11735_v45, %v4709_v13  ;;  %v12656_v57 = vld [vmem:[#allocation14_spill] sm:$0xff] }
 0x2cf   : > { %5057 = vst [vmem:[%s11816_s11 + $0x18] sm:$0xff] %v5041_v54  ;;  %v5039_v42 = vmax.f32 %v5023_v37, 0.0  ;;  %v5028_v4 = vadd.f32 %v5012_v58, %v4746_v31  ;;  %v5010_v2 = vadd.f32 %v11756_v20, %v4990_v0  ;;  %v4993_v29 = vmul.f32 %v8260_v9, %v11748_v62  ;;  %v12654_v54 = vld [vmem:[#allocation31_spill] sm:$0xff] }
 0x2d0   : > { %v4938_v28 = vpop.f32.mrf.mxu1  ;;  %v11856_v16 = vadd.f32 %v7884_v10, %v7883_v48  ;;  %v7886_v8 = vpop.f32.mrf.mxu0  ;;  %v4712_v37 = vadd.f32 %v4686_v5, %v12654_v54  ;;  %v4689_v58 = vadd.f32 %v11782_v14, %v11765_v12  ;;  %v4734_v9 = vmul.f32 %v11735_v45, %v4714_v36 }
 0x2d1   : > { %5055 = vst [vmem:[%s11816_s11 + $0x8] sm:$0xff] %v5039_v42  ;;  %v5044_v39 = vmax.f32 %v5028_v4, 0.0  ;;  %v5026_v53 = vadd.f32 %v5010_v2, %v4744_v30  ;;  %v5013_v19 = vadd.f32 %v11756_v20, %v4993_v29  ;;  %v4991_v24 = vmul.f32 %v11748_v62, %v4938_v28  ;;  %v12655_v42 = vld [vmem:[#allocation35_spill] sm:$0xff] }
 0x2d2   : > { %v8263_v17 = vpop.f32.mrf.mxu1  ;;  %v7887_v55 = vpop.f32.mrf.mxu0  ;;  %v4715_v4 = vadd.f32 %v4697_v35, %v12655_v42  ;;  %v4751_v2 = vadd.f32 %v11739_v21, %v4731_v50  ;;  %v4732_v3 = vmul.f32 %v11735_v45, %v4712_v37 }
 0x2d3   : > { %5060 = vst [vmem:[%s11816_s11 + $0x30] sm:$0xff] %v5044_v39  ;;  %v5042_v23 = vmax.f32 %v5026_v53, 0.0  ;;  %v5029_v27 = vadd.f32 %v5013_v19, %v4747_v61  ;;  %v5011_v31 = vadd.f32 %v11756_v20, %v4991_v24  ;;  %v4996_v52 = vmul.f32 %v8263_v17, %v11748_v62 }
 0x2d4   : > { %v4951_v43 = vpop.f32.mrf.mxu1  ;;  %v11874_v34 = vadd.f32 %v7887_v55, %v7886_v8  ;;  %v7889_v6 = vpop.f32.mrf.mxu0  ;;  %v4749_v39 = vadd.f32 %v11739_v21, %v4729_v11  ;;  %v4735_v5 = vmul.f32 %v11735_v45, %v4715_v4  ;;  %v4752_v36 = vadd.f32 %v11739_v21, %v4732_v3  ;;  %v12657_v4 = vld [vmem:[#allocation32_spill] sm:$0xff] }
 0x2d5   : > { %5058 = vst [vmem:[%s11816_s11 + $0x20] sm:$0xff] %v5042_v23  ;;  %v5045_v44 = vmax.f32 %v5029_v27, 0.0  ;;  %v5027_v63 = vadd.f32 %v5011_v31, %v4745_v32  ;;  %v5016_v51 = vadd.f32 %v11756_v20, %v4996_v52  ;;  %v4994_v30 = vmul.f32 %v11748_v62, %v4951_v43 }
 0x2d6   : > { %v8264_v1 = vpop.f32.mrf.mxu1  ;;  %v7890_v15 = vpop.f32.mrf.mxu0  ;;  %v4713_v32 = vadd.f32 %v4689_v58, %v12656_v57  ;;  %v4755_v55 = vadd.f32 %v11739_v21, %v4735_v5 }
 0x2d7   : > { %5061 = vst [vmem:[%s11816_s11 + $0x38] sm:$0xff] %v5045_v44  ;;  %v5043_v22 = vmax.f32 %v5027_v63, 0.0  ;;  %v5032_v0 = vadd.f32 %v5016_v51, %v4750_v18  ;;  %v5014_v7 = vadd.f32 %v11756_v20, %v4994_v30  ;;  %v4997_v61 = vmul.f32 %v8264_v1, %v11748_v62 }
 0x2d8   : > { %v4954_v48 = vpop.f32.mrf.mxu1  ;;  %v11887_v28 = vadd.f32 %v7890_v15, %v7889_v6  ;;  %v7892_v40 = vpop.f32.mrf.mxu0  ;;  %v4754_v18 = vadd.f32 %v11739_v21, %v4734_v9  ;;  %v4733_v50 = vmul.f32 %v11735_v45, %v4713_v32 }
 0x2d9   : > { %5059 = vst [vmem:[%s11816_s11 + $0x28] sm:$0xff] %v5043_v22  ;;  %v5048_v12 = vmax.f32 %v5032_v0, 0.0  ;;  %v5030_v14 = vadd.f32 %v5014_v7, %v4748_v56  ;;  %v5017_v29 = vadd.f32 %v11756_v20, %v4997_v61  ;;  %v4995_v47 = vmul.f32 %v11748_v62, %v4954_v48 }
 0x2da   : > { %v8267_v53 = vpop.f32.mrf.mxu1  ;;  %v7893_v8 = vpop.f32.mrf.mxu0  ;;  %v4753_v0 = vadd.f32 %v11739_v21, %v4733_v50 }
 0x2db   : > { %5064 = vst [vmem:[%s11816_s11 + $0x50] sm:$0xff] %v5048_v12  ;;  %v5046_v19 = vmax.f32 %v5030_v14, 0.0  ;;  %v5033_v10 = vadd.f32 %v5017_v29, %v4751_v2  ;;  %v5015_v24 = vadd.f32 %v11756_v20, %v4995_v47  ;;  %v5000_v13 = vmul.f32 %v8267_v53, %v11748_v62  ;;  %v12658_v29 = vld [vmem:[#allocation13_spill] sm:$0xff] }
 0x2dc   : > { %v4967_v17 = vpop.f32.mrf.mxu1  ;;  %v11899_v46 = vadd.f32 %v7893_v8, %v7892_v40  ;;  %v7895_v63 = vpop.f32.mrf.mxu0 }
 0x2dd   : > { %5062 = vst [vmem:[%s11816_s11 + $0x40] sm:$0xff] %v5046_v19  ;;  %v5049_v23 = vmax.f32 %v5033_v10, 0.0  ;;  %v5031_v27 = vadd.f32 %v5015_v24, %v4749_v39  ;;  %v5020_v31 = vadd.f32 %v11756_v20, %v5000_v13  ;;  %v4998_v52 = vmul.f32 %v11748_v62, %v4967_v17  ;;  %v12659_v19 = vld [vmem:[#allocation24_spill] sm:$0xff] }
 0x2de   : > { %v8268_v35 = vpop.f32.mrf.mxu1  ;;  %v7896_v58 = vpop.f32.mrf.mxu0  ;;  %v12660_v17 = vld [vmem:[#allocation12_spill] sm:$0xff] }
 0x2df   : > { %5065 = vst [vmem:[%s11816_s11 + $0x58] sm:$0xff] %v5049_v23  ;;  %v5047_v56 = vmax.f32 %v5031_v27, 0.0  ;;  %v5036_v43 = vadd.f32 %v5020_v31, %v4754_v18  ;;  %v5018_v44 = vadd.f32 %v11756_v20, %v4998_v52  ;;  %v5001_v51 = vmul.f32 %v8268_v35, %v11748_v62 }
 0x2e0   : > { %v4970_v30 = vpop.f32.mrf.mxu1  ;;  %v7897_v22 = vadd.f32 %v7896_v58, %v7895_v63  ;;  %v7898_v42 = vpop.f32.mrf.mxu0 }
 0x2e1   : > { %5063 = vst [vmem:[%s11816_s11 + $0x48] sm:$0xff] %v5047_v56  ;;  %v5052_v11 = vmax.f32 %v5036_v43, 0.0  ;;  %v5034_v54 = vadd.f32 %v5018_v44, %v4752_v36  ;;  %v5021_v37 = vadd.f32 %v11756_v20, %v5001_v51  ;;  %v4999_v1 = vmul.f32 %v11748_v62, %v4970_v30 }
 0x2e2   : > { %v8287_v7 = vpop.f32.mrf.mxu1  ;;  %v7899_v62 = vpop.f32.mrf.mxu0 }
 0x2e3   : > { %5068 = vst [vmem:[%s11816_s11 + $0x70] sm:$0xff] %v5052_v11  ;;  %v5050_v6 = vmax.f32 %v5034_v54, 0.0  ;;  %v5037_v61 = vadd.f32 %v5021_v37, %v4755_v55  ;;  %v5019_v9 = vadd.f32 %v11756_v20, %v4999_v1  ;;  %v11913_v2 = vadd.f32 %v8287_v7, %v12657_v4 }
 0x2e4   : > { %v5605_v48 = vpop.f32.mrf.mxu1  ;;  %v7900_v47 = vadd.f32 %v7899_v62, %v7898_v42  ;;  %v11918_v32 = vpop.f32.mrf.mxu0 }
 0x2e5   : > { %5066 = vst [vmem:[%s11816_s11 + $0x60] sm:$0xff] %v5050_v6  ;;  %v5053_v12 = vmax.f32 %v5037_v61, 0.0  ;;  %v5035_v14 = vadd.f32 %v5019_v9, %v4753_v0  ;;  %v5606_v15 = vadd.f32 %v12658_v29, %v5605_v48 }
 0x2e6   : > { %v8288_v3 = vpop.f32.mrf.mxu1  ;;  %v5959_v53 = vpop.f32.mrf.mxu0 }
 0x2e7   : > { %5069 = vst [vmem:[%s11816_s11 + $0x78] sm:$0xff] %v5053_v12  ;;  %v5051_v57 = vmax.f32 %v5035_v14, 0.0  ;;  %v11921_v20 = vadd.f32 %v8288_v3, %v11704_v38 }
 0x2e8   : > { %v5608_v39 = vpop.f32.mrf.mxu1  ;;  %v11925_v40 = vpop.f32.mrf.mxu0 }
 0x2e9   : > { %5067 = vst [vmem:[%s11816_s11 + $0x68] sm:$0xff] %v5051_v57  ;;  %v5609_v10 = vadd.f32 %v12659_v19, %v5608_v39 }
 0x2ea   : > { %v8291_v24 = vpop.f32.mrf.mxu1  ;;  %v5962_v18 = vpop.f32.mrf.mxu0 }
 0x2eb   : > { %v11928_v13 = vadd.f32 %v8291_v24, %v11778_v25 }
 0x2ec   : > { %v5621_v5 = vpop.f32.mrf.mxu1  ;;  %v11933_v31 = vpop.f32.mrf.mxu0 }
 0x2ed   : > { %v11931_v23 = vadd.f32 %v12660_v17, %v5621_v5 }
 0x2ee   : > { %v8292_v27 = vpop.f32.mrf.mxu1  ;;  %v11938_v52 = vpop.f32.mrf.mxu0 }
 0x2ef   : > { %v11936_v38 = vadd.f32 %v8292_v27, %v11805_v59 }
 0x2f0   : > { %v5624_v8 = vpop.f32.mrf.mxu1  ;;  %v11943_v25 = vpop.f32.mrf.mxu0 }
 0x2f1   : > { %v11941_v50 = vadd.f32 %v11743_v41, %v5624_v8 }
 0x2f2   : > { %v8295_v36 = vpop.f32.mrf.mxu1  ;;  %v11948_v43 = vpop.f32.mrf.mxu0 }
 0x2f3   : > { %v11946_v35 = vadd.f32 %v8295_v36, %v11856_v16 }
 0x2f4   : > { %v5637_v56 = vpop.f32.mrf.mxu1  ;;  %v11953_v63 = vpop.f32.mrf.mxu0 }
 0x2f5   : > { %v11951_v44 = vadd.f32 %v11823_v26, %v5637_v56 }
 0x2f6   : > { %v8296_v59 = vpop.f32.mrf.mxu1  ;;  %v11958_v55 = vpop.f32.mrf.mxu0 }
 0x2f7   : > { %v11956_v51 = vadd.f32 %v8296_v59, %v11874_v34 }
 0x2f8   : > { %v5640_v41 = vpop.f32.mrf.mxu1  ;;  %v11963_v11 = vpop.f32.mrf.mxu0 }
 0x2f9   : > { %v11961_v30 = vadd.f32 %v11839_v49, %v5640_v41 }
 0x2fa   : > { %v8299_v16 = vpop.f32.mrf.mxu1  ;;  %v11967_v26 = vpop.f32.mrf.mxu0 }
 0x2fb   : > { %v11965_v54 = vadd.f32 %v8299_v16, %v7897_v22 }
 0x2fc   : > { %v5653_v37 = vpop.f32.mrf.mxu1  ;;  %v11972_v34 = vpop.f32.mrf.mxu0 }
 0x2fd   : > { %v11970_v58 = vadd.f32 %v11887_v28, %v5653_v37 }
 0x2fe   : > { %v8300_v1 = vpop.f32.mrf.mxu1  ;;  %v11976_v6 = vpop.f32.mrf.mxu0 }
 0x2ff   : > { %v11974_v0 = vadd.f32 %v8300_v1, %v7900_v47 }
 0x300   : > { %v5656_v7 = vpop.f32.mrf.mxu1  ;;  %v11981_v22 = vpop.f32.mrf.mxu0 }
 0x301   : > { %v11979_v49 = vadd.f32 %v11899_v46, %v5656_v7 }
 0x302   : > { %v7933_v61 = vpop.f32.mrf.mxu1  ;;  %v11983_v42 = vpop.f32.mrf.mxu0 }
 0x304   : > { %v7934_v9 = vpop.f32.mrf.mxu1  ;;  %v11985_v12 = vpop.f32.mrf.mxu0 }
 0x305   : > { %v7935_v4 = vadd.f32 %v7934_v9, %v7933_v61 }
 0x306   : > { %v7936_v28 = vpop.f32.mrf.mxu1  ;;  %v11987_v62 = vpop.f32.mrf.mxu0 }
 0x307   : > { %v5863_v48 = vadd.f32 %v7935_v4, %v5606_v15 }
 0x308   : > { %v7937_v14 = vpop.f32.mrf.mxu1  ;;  %v11991_v57 = vpop.f32.mrf.mxu0 }
 0x309   : > { %v7938_v29 = vadd.f32 %v7937_v14, %v7936_v28  ;;  %v11989_v47 = vadd.f32 %v5959_v53, %v5863_v48 }
 0x30a   : > { %v7939_v3 = vpop.f32.mrf.mxu1  ;;  %v11993_v19 = vpop.f32.mrf.mxu0 }
 0x30b   : > { %v5866_v46 = vadd.f32 %v7938_v29, %v5609_v10 }
 0x30c   : > { %v7940_v39 = vpop.f32.mrf.mxu1  ;;  %v11998_v27 = vpop.f32.mrf.mxu0 }
 0x30d   : > { %v7941_v24 = vadd.f32 %v7940_v39, %v7939_v3  ;;  %v11995_v5 = vadd.f32 %v5962_v18, %v5866_v46 }
 0x30e   : > { %v7942_v17 = vpop.f32.mrf.mxu1  ;;  %v12000_v36 = vpop.f32.mrf.mxu0 }
 0x30f   : > { %v5871_v15 = vadd.f32 %v7941_v24, %v11913_v2 }
 0x310   : > { %v7943_v8 = vpop.f32.mrf.mxu1  ;;  %v12006_v41 = vpop.f32.mrf.mxu0 }
 0x311   : > { %v7944_v53 = vadd.f32 %v7943_v8, %v7942_v17  ;;  %v12003_v56 = vadd.f32 %v11918_v32, %v5871_v15 }
 0x312   : > { %v7945_v10 = vpop.f32.mrf.mxu1  ;;  %v12008_v18 = vpop.f32.mrf.mxu0 }
 0x313   : > { %v5874_v59 = vadd.f32 %v7944_v53, %v11921_v20 }
 0x314   : > { %v7946_v16 = vpop.f32.mrf.mxu1  ;;  %v12014_v61 = vpop.f32.mrf.mxu0 }
 0x315   : > { %v7947_v37 = vadd.f32 %v7946_v16, %v7945_v10  ;;  %v12011_v2 = vadd.f32 %v11925_v40, %v5874_v59 }
 0x316   : > { %v7948_v1 = vpop.f32.mrf.mxu1  ;;  %v12016_v32 = vpop.f32.mrf.mxu0 }
 0x317   : > { %v5879_v7 = vadd.f32 %v7947_v37, %v11931_v23 }
 0x318   : > { %v7949_v9 = vpop.f32.mrf.mxu1  ;;  %v12022_v14 = vpop.f32.mrf.mxu0 }
 0x319   : > { %v7950_v4 = vadd.f32 %v7949_v9, %v7948_v1  ;;  %v12019_v20 = vadd.f32 %v11938_v52, %v5879_v7 }
 0x31a   : > { %v7951_v28 = vpop.f32.mrf.mxu1  ;;  %v12024_v40 = vpop.f32.mrf.mxu0 }
 0x31b   : > { %v5882_v48 = vadd.f32 %v7950_v4, %v11941_v50 }
 0x31c   : > { %v7952_v29 = vpop.f32.mrf.mxu1  ;;  %v12030_v24 = vpop.f32.mrf.mxu0 }
 0x31d   : > { %v7953_v3 = vadd.f32 %v7952_v29, %v7951_v28  ;;  %v12027_v23 = vadd.f32 %v11948_v43, %v5882_v48 }
 0x31e   : > { %v7954_v46 = vpop.f32.mrf.mxu1  ;;  %v12032_v52 = vpop.f32.mrf.mxu0 }
 0x31f   : > { %v5887_v39 = vadd.f32 %v7953_v3, %v11928_v13 }
 0x320   : > { %v7955_v17 = vpop.f32.mrf.mxu1  ;;  %v12038_v10 = vpop.f32.mrf.mxu0 }
 0x321   : > { %v7956_v15 = vadd.f32 %v7955_v17, %v7954_v46  ;;  %v12035_v50 = vadd.f32 %v11933_v31, %v5887_v39 }
 0x322   : > { %v7957_v8 = vpop.f32.mrf.mxu1  ;;  %v12040_v43 = vpop.f32.mrf.mxu0 }
 0x323   : > { %v5890_v53 = vadd.f32 %v7956_v15, %v11936_v38 }
 0x324   : > { %v7958_v59 = vpop.f32.mrf.mxu1  ;;  %v12046_v9 = vpop.f32.mrf.mxu0 }
 0x325   : > { %v7959_v16 = vadd.f32 %v7958_v59, %v7957_v8  ;;  %v12043_v13 = vadd.f32 %v11943_v25, %v5890_v53 }
 0x326   : > { %v7960_v37 = vpop.f32.mrf.mxu1  ;;  %v12052_v29 = vpop.f32.mrf.mxu0 }
 0x327   : > { %v5895_v1 = vadd.f32 %v7959_v16, %v11951_v44 }
 0x328   : > { %v7961_v7 = vpop.f32.mrf.mxu1  ;;  %v12058_v17 = vpop.f32.mrf.mxu0 }
 0x329   : > { %v7962_v31 = vadd.f32 %v7961_v7, %v7960_v37  ;;  %v12049_v4 = vadd.f32 %v11958_v55, %v5895_v1 }
 0x32a   : > { %v7963_v38 = vpop.f32.mrf.mxu1  ;;  %v12064_v59 = vpop.f32.mrf.mxu0 }
 0x32b   : > { %12661 = vst [vmem:[#allocation17_spill] sm:$0xff] %v12049_v4  ;;  %v5898_v28 = vadd.f32 %v7962_v31, %v11961_v30 }
 0x32c   : > { %v7964_v48 = vpop.f32.mrf.mxu1  ;;  %v12070_v7 = vpop.f32.mrf.mxu0 }
 0x32d   : > { %v7965_v3 = vadd.f32 %v7964_v48, %v7963_v38  ;;  %v12055_v25 = vadd.f32 %v11967_v26, %v5898_v28 }
 0x32e   : > { %v7966_v46 = vpop.f32.mrf.mxu1  ;;  %v8044_v48 = vpop.f32.mrf.mxu0 }
 0x32f   : > { %12662 = vst [vmem:[#allocation16_spill] sm:$0xff] %v12055_v25  ;;  %v5903_v44 = vadd.f32 %v7965_v3, %v11946_v35  ;;  %v8018_v25 = vadd.f32 %v11993_v19, %v11991_v57  ;;  %v8027_v19 = vadd.f32 %v12016_v32, %v12014_v61  ;;  %v8045_v61 = vadd.f32 %v8044_v48, %v12070_v7 }
 0x330   : > { %v7967_v39 = vpop.f32.mrf.mxu1 }
 0x331   : > { %v7968_v15 = vadd.f32 %v7967_v39, %v7966_v46  ;;  %v12061_v55 = vadd.f32 %v11953_v63, %v5903_v44  ;;  %v8046_v39 = vpop.f32.mrf.mxu0 }
 0x332   : > { %v7969_v8 = vpop.f32.mrf.mxu1 }
 0x333   : > { %v5906_v30 = vadd.f32 %v7968_v15, %v11956_v51 }
 0x334   : > { %v7970_v53 = vpop.f32.mrf.mxu1 }
 0x335   : > { %v7971_v16 = vadd.f32 %v7970_v53, %v7969_v8  ;;  %v12067_v26 = vadd.f32 %v11963_v11, %v5906_v30 }
 0x336   : > { %v7972_v37 = vpop.f32.mrf.mxu1 }
 0x337   : > { %12663 = vst [vmem:[#allocation37_spill] sm:$0xff] %v12067_v26  ;;  %v5911_v35 = vadd.f32 %v7971_v16, %v11970_v58 }
 0x338   : > { %v7973_v1 = vpop.f32.mrf.mxu1 }
 0x339   : > { %v7974_v31 = vadd.f32 %v7973_v1, %v7972_v37  ;;  %v12073_v63 = vadd.f32 %v11976_v6, %v5911_v35 }
 0x33a   : > { %v7975_v38 = vpop.f32.mrf.mxu1 }
 0x33b   : > { %12664 = vst [vmem:[#allocation6_spill] sm:$0xff] %v12073_v63  ;;  %v5914_v51 = vadd.f32 %v7974_v31, %v11979_v49  ;;  %v8047_v49 = vpop.f32.mrf.mxu0 }
 0x33c   : > { %v7976_v28 = vpop.f32.mrf.mxu1 }
 0x33d   : > { %v7977_v3 = vadd.f32 %v7976_v28, %v7975_v38  ;;  %v12077_v46 = vadd.f32 %v11983_v42, %v5914_v51  ;;  %v8049_v35 = vpop.f32.mrf.mxu0 }
 0x33e   : > { %v7978_v11 = vpop.f32.mrf.mxu1 }
 0x33f   : > { %12665 = vst [vmem:[#allocation25_spill] sm:$0xff] %v12077_v46  ;;  %v5919_v44 = vadd.f32 %v7977_v3, %v11965_v54  ;;  %v8050_v54 = vpop.f32.mrf.mxu0  ;;  %v8024_v46 = vadd.f32 %v12008_v18, %v12006_v41 }
 0x340   : > { %v7979_v58 = vpop.f32.mrf.mxu1 }
 0x341   : > { %v7980_v15 = vadd.f32 %v7979_v58, %v7978_v11  ;;  %v12081_v8 = vadd.f32 %v11972_v34, %v5919_v44  ;;  %v8052_v28 = vpop.f32.mrf.mxu0 }
 0x342   : > { %v8351_v6 = vpop.f32.mrf.mxu1 }
 0x343   : > { %12666 = vst [vmem:[#allocation28_spill] sm:$0xff] %v12081_v8  ;;  %v5922_v30 = vadd.f32 %v7980_v15, %v11974_v0  ;;  %v8053_v11 = vpop.f32.mrf.mxu0  ;;  %v8015_v15 = vadd.f32 %v11987_v62, %v11985_v12  ;;  %v8033_v62 = vadd.f32 %v12032_v52, %v12030_v24  ;;  %v8030_v24 = vadd.f32 %v12024_v40, %v12022_v14 }
 0x344   : > { %v6505_v53 = vpop.f32.mrf.mxu1 }
 0x345   : > { %v12085_v16 = vadd.f32 %v11981_v22, %v5922_v30  ;;  %v8021_v22 = vadd.f32 %v12000_v36, %v11998_v27  ;;  %v8055_v44 = vpop.f32.mrf.mxu0  ;;  %v6506_v63 = vadd.f32 %v8015_v15, %v6505_v53  ;;  %v6616_v27 = vld [vmem:[%s12255_s6] sm:$0x3] }
 0x346   : > { %v8352_v37 = vpop.f32.mrf.mxu1  ;;  %v12117_v57 = vrot.slane %v6616_v27, %v12648_v60  ;;  %v8039_v60 = vadd.f32 %v12052_v29, %v12046_v9 }
 0x347   : > { %12667 = vst [vmem:[#allocation8_spill] sm:$0xff] %v12085_v16  ;;  %v6514_v30 = vadd.f32 %v8351_v6, %v8021_v22  ;;  %v8056_v8 = vpop.f32.mrf.mxu0  ;;  %v6517_v26 = vadd.f32 %v8352_v37, %v8024_v46  ;;  %v6568_v18 = vadd.f32 %v6506_v63, %v11989_v47  ;;  %v8036_v47 = vadd.f32 %v12040_v43, %v12038_v10 }
 0x348   : > { %v6508_v42 = vpop.f32.mrf.mxu1  ;;  %v12138_v63 = vadd.f32 %v8050_v54, %v8049_v35  ;;  %v12142_v43 = vadd.f32 %v8053_v11, %v8052_v28  ;;  %v8057_v7 = vadd.f32 %v8056_v8, %v8055_v44 }
 0x349   : > { %v6570_v12 = vadd.f32 %v6514_v30, %v12003_v56  ;;  %v6509_v36 = vadd.f32 %v8018_v25, %v6508_v42  ;;  %v8058_v6 = vpop.f32.mrf.mxu0  ;;  %v6571_v46 = vadd.f32 %v6517_v26, %v12011_v2  ;;  %v12125_v56 = vrot.slane %v6616_v27, %v12649_v33 }
 0x34a   : > { %v8355_v1 = vpop.f32.mrf.mxu1  ;;  %v8042_v2 = vadd.f32 %v12064_v59, %v12058_v17  ;;  %v8048_v26 = vadd.f32 %v8047_v49, %v8046_v39  ;;  %v6584_v14 = vmul.f32 %v6568_v18, %v11735_v45 }
 0x34b   : > { %v6530_v53 = vadd.f32 %v8355_v1, %v8033_v62  ;;  %v6586_v52 = vmul.f32 %v6570_v12, %v11735_v45  ;;  %v6569_v32 = vadd.f32 %v6509_v36, %v11995_v5  ;;  %v8059_v40 = vpop.f32.mrf.mxu0  ;;  %v6587_v9 = vmul.f32 %v6571_v46, %v11735_v45 }
 0x34c   : > { %v6521_v31 = vpop.f32.mrf.mxu1  ;;  %v12151_v1 = vadd.f32 %v8059_v40, %v8058_v6 }
 0x34d   : > { %v6522_v33 = vadd.f32 %v8027_v19, %v6521_v31  ;;  %v6574_v29 = vadd.f32 %v6530_v53, %v12035_v50  ;;  %v6602_v5 = vadd.f32 %v6586_v52, %v11739_v21  ;;  %v6585_v49 = vmul.f32 %v6569_v32, %v11735_v45 }
 0x34e   : > { %v8356_v38 = vpop.f32.mrf.mxu1  ;;  %v6600_v50 = vadd.f32 %v6584_v14, %v11739_v21 }
 0x34f   : > { %v6533_v17 = vadd.f32 %v8356_v38, %v8036_v47  ;;  %v6572_v42 = vadd.f32 %v6522_v33, %v12019_v20  ;;  %v6590_v28 = vmul.f32 %v6574_v29, %v11735_v45  ;;  %v6603_v20 = vadd.f32 %v6587_v9, %v11739_v21 }
 0x350   : > { %v6524_v51 = vpop.f32.mrf.mxu1 }
 0x351   : > { %v6525_v35 = vadd.f32 %v8030_v24, %v6524_v51  ;;  %v6575_v11 = vadd.f32 %v6533_v17, %v12043_v13  ;;  %v6588_v12 = vmul.f32 %v6572_v42, %v11735_v45  ;;  %v6601_v13 = vadd.f32 %v6585_v49, %v11739_v21 }
 0x352   : > { %v12087_v3 = vpop.f32.mrf.mxu1 }
 0x353   : > { %v6546_v22 = vadd.f32 %v12087_v3, %v8045_v61  ;;  %v6573_v62 = vadd.f32 %v6525_v35, %v12027_v23  ;;  %v6591_v53 = vmul.f32 %v6575_v11, %v11735_v45  ;;  %v6606_v23 = vadd.f32 %v6590_v28, %v11739_v21 }
 0x354   : > { %v12089_v34 = vpop.f32.mrf.mxu1 }
 0x355   : > { %v6538_v36 = vadd.f32 %v8039_v60, %v12089_v34  ;;  %v6578_v24 = vadd.f32 %v6546_v22, %v12061_v55  ;;  %v6589_v33 = vmul.f32 %v6573_v62, %v11735_v45  ;;  %v6604_v55 = vadd.f32 %v6588_v12, %v11739_v21 }
 0x356   : > { %v12091_v0 = vpop.f32.mrf.mxu1 }
 0x357   : > { %v6549_v47 = vadd.f32 %v12091_v0, %v8048_v26  ;;  %v6594_v17 = vmul.f32 %v6578_v24, %v11735_v45 }
 0x358   : > { %v12095_v58 = vpop.f32.mrf.mxu1 }
 0x359   : > { %v6541_v40 = vadd.f32 %v8042_v2, %v12095_v58 }
 0x35a   : > { %v12101_v16 = vpop.f32.mrf.mxu1 }
 0x35c   : > { %v12105_v4 = vpop.f32.mrf.mxu1 }
 0x35e   : > { %v12113_v41 = vpop.f32.mrf.mxu1 }
 0x360   : > { %v12122_v37 = vpop.f32.mrf.mxu1 }
 0x362   : > { %v8383_v25 = vpop.f32.mrf.mxu1 }
 0x363   : > { %v6848_v10 = vmul.f32 %v8383_v25, %v12117_v57  ;;  %v12668_v25 = vld [vmem:[#allocation17_spill] sm:$0xff] }
 0x364   : > { %v6779_v59 = vpop.f32.mrf.mxu1  ;;  %v6576_v14 = vadd.f32 %v6538_v36, %v12668_v25 }
 0x365   : > { %v6868_v48 = vadd.f32 %v12125_v56, %v6848_v10  ;;  %v6846_v39 = vmul.f32 %v12117_v57, %v6779_v59  ;;  %v12669_v59 = vld [vmem:[#allocation37_spill] sm:$0xff] }
 0x366   : > { %v8384_v31 = vpop.f32.mrf.mxu1 }
 0x367   : > { %v6884_v54 = vadd.f32 %v6868_v48, %v6602_v5  ;;  %v6866_v38 = vadd.f32 %v12125_v56, %v6846_v39  ;;  %v6849_v8 = vmul.f32 %v8384_v31, %v12117_v57  ;;  %v6579_v5 = vadd.f32 %v6549_v47, %v12669_v59  ;;  %v12673_v47 = vld [vmem:[#allocation8_spill] sm:$0xff] }
 0x368   : > { %v6782_v51 = vpop.f32.mrf.mxu1  ;;  %v6562_v48 = vadd.f32 %v12101_v16, %v8057_v7  ;;  %v6607_v39 = vadd.f32 %v6591_v53, %v11739_v21  ;;  %v6592_v31 = vmul.f32 %v6576_v14, %v11735_v45  ;;  %v6605_v16 = vadd.f32 %v6589_v33, %v11739_v21  ;;  %v12674_v33 = vld [vmem:[#allocation25_spill] sm:$0xff] }
 0x369   : > { %v6900_v44 = vmax.f32 %v6884_v54, 0.0  ;;  %v6882_v15 = vadd.f32 %v6866_v38, %v6600_v50  ;;  %v6869_v30 = vadd.f32 %v12125_v56, %v6849_v8  ;;  %v6847_v27 = vmul.f32 %v12117_v57, %v6782_v51  ;;  %v12670_v54 = vld [vmem:[#allocation16_spill] sm:$0xff] }
 0x36a   : > { %v8387_v18 = vpop.f32.mrf.mxu1  ;;  %v6577_v50 = vadd.f32 %v6541_v40, %v12670_v54  ;;  %v6554_v38 = vadd.f32 %v12138_v63, %v12105_v4  ;;  %v12671_v51 = vld [vmem:[#allocation28_spill] sm:$0xff]  ;;  %v6610_v4 = vadd.f32 %v6594_v17, %v11739_v21 }
 0x36b   : > { %6916 = vst [vmem:[%s11816_s11 + $0x90] sm:$0xff] %v6900_v44  ;;  %v6898_v3 = vmax.f32 %v6882_v15, 0.0  ;;  %v6885_v6 = vadd.f32 %v6869_v30, %v6603_v20  ;;  %v6867_v19 = vadd.f32 %v12125_v56, %v6847_v27  ;;  %v6852_v46 = vmul.f32 %v8387_v18, %v12117_v57 }
 0x36c   : > { %v6795_v34 = vpop.f32.mrf.mxu1  ;;  %v6595_v20 = vmul.f32 %v6579_v5, %v11735_v45  ;;  %v6582_v44 = vadd.f32 %v6562_v48, %v12671_v51  ;;  %v6565_v15 = vadd.f32 %v12113_v41, %v12151_v1  ;;  %v6593_v36 = vmul.f32 %v6577_v50, %v11735_v45 }
 0x36d   : > { %6914 = vst [vmem:[%s11816_s11 + $0x80] sm:$0xff] %v6898_v3  ;;  %v6901_v60 = vmax.f32 %v6885_v6, 0.0  ;;  %v6883_v52 = vadd.f32 %v6867_v19, %v6601_v13  ;;  %v6872_v61 = vadd.f32 %v12125_v56, %v6852_v46  ;;  %v6850_v32 = vmul.f32 %v12117_v57, %v6795_v34  ;;  %v12672_v13 = vld [vmem:[#allocation6_spill] sm:$0xff] }
 0x36e   : > { %v8388_v0 = vpop.f32.mrf.mxu1  ;;  %v6580_v18 = vadd.f32 %v6554_v38, %v12672_v13  ;;  %v6557_v3 = vadd.f32 %v12142_v43, %v12122_v37  ;;  %v6608_v41 = vadd.f32 %v6592_v31, %v11739_v21  ;;  %v6598_v24 = vmul.f32 %v6582_v44, %v11735_v45 }
 0x36f   : > { %6917 = vst [vmem:[%s11816_s11 + $0x98] sm:$0xff] %v6901_v60  ;;  %v6899_v26 = vmax.f32 %v6883_v52, 0.0  ;;  %v6888_v10 = vadd.f32 %v6872_v61, %v6606_v23  ;;  %v6870_v9 = vadd.f32 %v12125_v56, %v6850_v32  ;;  %v6853_v29 = vmul.f32 %v8388_v0, %v12117_v57 }
 0x370   : > { %v6798_v58 = vpop.f32.mrf.mxu1  ;;  %v6583_v23 = vadd.f32 %v6565_v15, %v12673_v47  ;;  %v6611_v34 = vadd.f32 %v6595_v20, %v11739_v21  ;;  %v6596_v32 = vmul.f32 %v6580_v18, %v11735_v45  ;;  %v6581_v25 = vadd.f32 %v6557_v3, %v12674_v33 }
 0x371   : > { %6915 = vst [vmem:[%s11816_s11 + $0x88] sm:$0xff] %v6899_v26  ;;  %v6904_v2 = vmax.f32 %v6888_v10, 0.0  ;;  %v6886_v49 = vadd.f32 %v6870_v9, %v6604_v55  ;;  %v6873_v42 = vadd.f32 %v12125_v56, %v6853_v29  ;;  %v6851_v35 = vmul.f32 %v12117_v57, %v6798_v58 }
 0x372   : > { %v8391_v7 = vpop.f32.mrf.mxu1  ;;  %v6609_v14 = vadd.f32 %v6593_v36, %v11739_v21  ;;  %v6599_v9 = vmul.f32 %v6583_v23, %v11735_v45  ;;  %v6614_v29 = vadd.f32 %v6598_v24, %v11739_v21  ;;  %v6597_v58 = vmul.f32 %v6581_v25, %v11735_v45 }
 0x373   : > { %6920 = vst [vmem:[%s11816_s11 + $0xb0] sm:$0xff] %v6904_v2  ;;  %v6902_v8 = vmax.f32 %v6886_v49, 0.0  ;;  %v6889_v28 = vadd.f32 %v6873_v42, %v6607_v39  ;;  %v6871_v11 = vadd.f32 %v12125_v56, %v6851_v35  ;;  %v6856_v22 = vmul.f32 %v8391_v7, %v12117_v57 }
 0x374   : > { %v6811_v63 = vpop.f32.mrf.mxu1  ;;  %v6612_v2 = vadd.f32 %v6596_v32, %v11739_v21  ;;  %v6615_v50 = vadd.f32 %v6599_v9, %v11739_v21 }
 0x375   : > { %6918 = vst [vmem:[%s11816_s11 + $0xa0] sm:$0xff] %v6902_v8  ;;  %v6905_v30 = vmax.f32 %v6889_v28, 0.0  ;;  %v6887_v27 = vadd.f32 %v6871_v11, %v6605_v16  ;;  %v6876_v12 = vadd.f32 %v12125_v56, %v6856_v22  ;;  %v6854_v62 = vmul.f32 %v12117_v57, %v6811_v63 }
 0x376   : > { %v8392_v1 = vpop.f32.mrf.mxu1  ;;  %v6613_v22 = vadd.f32 %v6597_v58, %v11739_v21 }
 0x377   : > { %6921 = vst [vmem:[%s11816_s11 + $0xb8] sm:$0xff] %v6905_v30  ;;  %v6903_v6 = vmax.f32 %v6887_v27, 0.0  ;;  %v6892_v19 = vadd.f32 %v6876_v12, %v6610_v4  ;;  %v6874_v46 = vadd.f32 %v12125_v56, %v6854_v62  ;;  %v6857_v53 = vmul.f32 %v8392_v1, %v12117_v57 }
 0x378   : > { %v6814_v60 = vpop.f32.mrf.mxu1 }
 0x379   : > { %6919 = vst [vmem:[%s11816_s11 + $0xa8] sm:$0xff] %v6903_v6  ;;  %v6908_v37 = vmax.f32 %v6892_v19, 0.0  ;;  %v6890_v43 = vadd.f32 %v6874_v46, %v6608_v41  ;;  %v6877_v52 = vadd.f32 %v12125_v56, %v6857_v53  ;;  %v6855_v61 = vmul.f32 %v12117_v57, %v6814_v60 }
 0x37a   : > { %v8395_v40 = vpop.f32.mrf.mxu1 }
 0x37b   : > { %6924 = vst [vmem:[%s11816_s11 + $0xd0] sm:$0xff] %v6908_v37  ;;  %v6906_v55 = vmax.f32 %v6890_v43, 0.0  ;;  %v6893_v0 = vadd.f32 %v6877_v52, %v6611_v34  ;;  %v6875_v26 = vadd.f32 %v12125_v56, %v6855_v61  ;;  %v6860_v10 = vmul.f32 %v8395_v40, %v12117_v57 }
 0x37c   : > { %v6827_v17 = vpop.f32.mrf.mxu1 }
 0x37d   : > { %6922 = vst [vmem:[%s11816_s11 + $0xc0] sm:$0xff] %v6906_v55  ;;  %v6909_v59 = vmax.f32 %v6893_v0, 0.0  ;;  %v6891_v5 = vadd.f32 %v6875_v26, %v6609_v14  ;;  %v6880_v48 = vadd.f32 %v12125_v56, %v6860_v10  ;;  %v6858_v39 = vmul.f32 %v12117_v57, %v6827_v17 }
 0x37e   : > { %v8396_v49 = vpop.f32.mrf.mxu1 }
 0x37f   : > { %6925 = vst [vmem:[%s11816_s11 + $0xd8] sm:$0xff] %v6909_v59  ;;  %v6907_v42 = vmax.f32 %v6891_v5, 0.0  ;;  %v6896_v35 = vadd.f32 %v6880_v48, %v6614_v29  ;;  %v6878_v31 = vadd.f32 %v12125_v56, %v6858_v39  ;;  %v6861_v54 = vmul.f32 %v8396_v49, %v12117_v57 }
 0x380   : > { %v6830_v38 = vpop.f32.mrf.mxu1 }
 0x381   : > { %6923 = vst [vmem:[%s11816_s11 + $0xc8] sm:$0xff] %v6907_v42  ;;  %v6912_v16 = vmax.f32 %v6896_v35, 0.0  ;;  %v6894_v7 = vadd.f32 %v6878_v31, %v6612_v2  ;;  %v6881_v45 = vadd.f32 %v12125_v56, %v6861_v54  ;;  %v6859_v8 = vmul.f32 %v12117_v57, %v6830_v38 }
 0x383   : > { %6928 = vst [vmem:[%s11816_s11 + $0xf0] sm:$0xff] %v6912_v16  ;;  %v6910_v28 = vmax.f32 %v6894_v7, 0.0  ;;  %v6897_v11 = vadd.f32 %v6881_v45, %v6615_v50  ;;  %v6879_v20 = vadd.f32 %v12125_v56, %v6859_v8 }
 0x385   : > { %6926 = vst [vmem:[%s11816_s11 + $0xe0] sm:$0xff] %v6910_v28  ;;  %v6913_v51 = vmax.f32 %v6897_v11, 0.0  ;;  %v6895_v44 = vadd.f32 %v6879_v20, %v6613_v22 }
 0x387   : > { %6929 = vst [vmem:[%s11816_s11 + $0xf8] sm:$0xff] %v6913_v51  ;;  %v6911_v15 = vmax.f32 %v6895_v44, 0.0 }
 0x389   : > { %6927 = vst [vmem:[%s11816_s11 + $0xe8] sm:$0xff] %v6911_v15 }
 0x38a PF: > { %s17_s24 = sadd.s32 1, %s8718_s24  }
 0x38b   : > { %p14_p4 = scmp.ge.s32.totalorder %s17_s24, 4  }
 0x38d   :  { %16 = sbr.rel (!%p14_p4) target bundleno = 1 (0x1), region = 80 }

</bundles_post_ra>
